<compile_context>
chip_gen: v7x
topology: tpu7x:2x2x1
jax: 0.10.0
libtpu: 0.0.40
codegen_flags: <defaults>
</compile_context>

<pallas_src>
import functools

import jax
import jax.numpy as jnp
from jax import lax
from jax.experimental import pallas as pl
from jax.experimental.pallas import tpu as pltpu


CHUNK_ROWS = 8      # sublane rows per inner step -> one (8,128) vreg per f32 plane
ROW_UNIT = 1024     # batch rows per (8,128) plane


def _sigmoid(x):
    return 1.0 / (1.0 + jnp.exp(-x))


def _cloud_impact_kernel(cf_ref, cc_ref, ssc_ref, w_ref, out_ref,
                         *, g2, off, n_chunks):
    """Fused forward over one batch tile.

    cf_ref, cc_ref : (g2, r, 128) VMEM  - batch-lane-dense cloud fraction / class
    ssc_ref        : (3,  r, 128) VMEM  - [sza, saa, csm] planes
    w_ref          : (W,)         SMEM  - all weights flattened; static offsets `off`
    out_ref        : (r, 128)     VMEM
    """

    def wv(name, i):
        # Scalar SMEM read; broadcasts against (8,128) planes.  If a bundle
        # dump ever shows per-use (8,128) broadcast materializations, pre-splat
        # the hot weights once outside the chunk loop instead.
        return w_ref[off[name] + i]

    def dense(x_planes, wname, bname, out_dim, in_dim, act):
        outs = []
        for o in range(out_dim):
            acc = x_planes[0] * wv(wname, o * in_dim)
            for k in range(1, in_dim):
                acc = acc + x_planes[k] * wv(wname, o * in_dim + k)
            acc = acc + wv(bname, o)
            outs.append(act(acc) if act is not None else acc)
        return outs

    a = wv("abcde", 0)
    b = wv("abcde", 1)
    c = wv("abcde", 2)
    d = wv("abcde", 3)
    e = wv("abcde", 4)

    def chunk_body(ci, carry):
        i = pl.multiple_of(ci * CHUNK_ROWS, CHUNK_ROWS)
        rows = pl.ds(i, CHUNK_ROWS)

        sza = ssc_ref[0, rows, :]
        saa = ssc_ref[1, rows, :]
        csm = ssc_ref[2, rows, :]

        # SZASAAtoGridPos, first two layers: Linear(2,4)+Sigmoid, Linear(4,8)+Sigmoid.
        h = dense([sza, saa], "sp_w1", "sp_b1", 4, 2, _sigmoid)
        h = dense(h, "sp_w2", "sp_b2", 8, 4, _sigmoid)

        # Fused per-grid-cell pipeline: coefficient select -> reth -> solar_g
        # -> impactVector_g -> FMA into the 8 accumulators of iv layer 1.
        acc = [None] * 8
        for g in range(g2):
            cf_g = cf_ref[g, rows, :]
            cc_g = cc_ref[g, rows, :]
            coeff = jnp.where(cc_g == 0.0, a,
                    jnp.where(cc_g == 1.0, b,
                    jnp.where(cc_g == 2.0, c,
                    jnp.where(cc_g == 3.0, d,
                    jnp.where(cc_g == 4.0, e, 0.0)))))
            cloud_g = jnp.maximum(jnp.tanh(coeff * cf_g), 0.0)      # reth
            s_pre = h[0] * wv("sp_w3", g * 8)
            for k in range(1, 8):
                s_pre = s_pre + h[k] * wv("sp_w3", g * 8 + k)
            solar_g = _sigmoid(s_pre + wv("sp_b3", g))
            iv_g = cloud_g * solar_g
            for j in range(8):
                term = iv_g * wv("iv_w1", j * g2 + g)
                acc[j] = term if acc[j] is None else acc[j] + term

        # impactVectorToImpactScalar tail: (+bias)Tanh, Linear(8,4)+Tanh, Linear(4,1)+Tanh.
        t = [jnp.tanh(acc[j] + wv("iv_b1", j)) for j in range(8)]
        t = dense(t, "iv_w2", "iv_b2", 4, 8, jnp.tanh)
        s = dense(t, "iv_w3", "iv_b3", 1, 4, jnp.tanh)[0]

        # impactCSMToGHI on concat(impactScalar, csm): Linear(2,4)+Tanh, Linear(4,1).
        gh = dense([s, csm], "gh_w1", "gh_b1", 4, 2, jnp.tanh)
        out = dense(gh, "gh_w2", "gh_b2", 1, 4, None)[0]

        out_ref[rows, :] = out.astype(out_ref.dtype)
        return carry

    lax.fori_loop(0, n_chunks, chunk_body, 0)


_PARAM_ORDER = ("abcde", "sp_w1", "sp_b1", "sp_w2", "sp_b2", "sp_w3", "sp_b3",
                "iv_w1", "iv_b1", "iv_w2", "iv_b2", "iv_w3", "iv_b3",
                "gh_w1", "gh_b1", "gh_w2", "gh_b2")


def cloud_impact_nn_to_ghi(cloud_fraction, cloud_class, csm, sza, saa, params,
                           *, tile_rows=32768):
    """Fused forward pass (spFlag=False path).  Inputs in the module's (B, feat) layout."""
    B, g2 = cloud_fraction.shape
    f32 = jnp.float32

    # --- tile sizing --------------------------------------------------------
    # Pad batch to 1024-row units only; pick the largest tile <= tile_rows that
    # divides the padded batch, and use >= 2 tiles when possible so the
    # "parallel" grid axis can feed both v7x TensorCores.
    units = pl.cdiv(B, ROW_UNIT)
    want_units = max(1, tile_rows // ROW_UNIT)
    num_tiles = max(pl.cdiv(units, want_units), min(2, units))
    tile_units = pl.cdiv(units, num_tiles)
    tile_b = tile_units * ROW_UNIT
    bpad = num_tiles * tile_b            # at most (num_tiles-1) extra 1024-row units
    rows = bpad // 128                   # total sublane rows (lane-dense batch)
    r = tile_b // 128                    # sublane rows per grid step

    # --- input repacking ----------------------------------------------------
    # NOTE(perf): run this wrapper under jax.jit with its caller so XLA fuses
    # the pad+transpose with the producer into a single HBM pass.
    # TODO(synk): move this repack onto the (idle) in-kernel XLU once Mosaic's
    # (1024, g2) f32 transpose lowering is verified on all target chips.
    def to_planes(x):                    # (B, F) -> (F, rows, 128), batch lane-dense
        x = jnp.pad(x.astype(f32), ((0, bpad - B), (0, 0)))
        return jnp.transpose(x, (1, 0)).reshape(x.shape[1], rows, 128)

    cf3 = to_planes(cloud_fraction)
    cc3 = to_planes(cloud_class)
    ssc = to_planes(jnp.concatenate(
        [sza.reshape(B, 1), saa.reshape(B, 1), csm.reshape(B, 1)], axis=1))

    # --- pack all weights into ONE flat SMEM array --------------------------
    off, pieces, pos = {}, [], 0
    for name in _PARAM_ORDER:
        v = params[name].astype(f32).reshape(-1)
        off[name] = pos
        pos += int(v.shape[0])
        pieces.append(v)
    wflat = jnp.concatenate(pieces)

    # --- pallas call ---------------------------------------------------------
    in_specs = [
        pl.BlockSpec((g2, r, 128), lambda i: (0, i, 0)),    # cloudFraction planes
        pl.BlockSpec((g2, r, 128), lambda i: (0, i, 0)),    # cloudClass planes
        pl.BlockSpec((3, r, 128), lambda i: (0, i, 0)),     # [sza, saa, csm] planes
        pl.BlockSpec(memory_space=pltpu.MemorySpace.SMEM),  # flat weights
    ]
    out_spec = pl.BlockSpec((r, 128), lambda i: (i, 0))

    step_bytes = (2 * g2 + 3 + 1) * r * 128 * 4             # per-step VMEM blocks
    vmem_limit = int(min(max(32 << 20, 2 * step_bytes + (8 << 20)), 96 << 20))

    per_row_flops = (12 * g2 + 2 * (4 * 2 + 8 * 4 + g2 * 8) + g2
                     + 2 * (8 * g2 + 4 * 8 + 4) + 2 * (4 * 2 + 4))
    per_row_trans = g2 + (4 + 8 + g2) + (8 + 4 + 1) + 4
    cost = pl.CostEstimate(
        flops=int(bpad) * int(per_row_flops),
        transcendentals=int(bpad) * int(per_row_trans),
        bytes_accessed=int(bpad) * (2 * g2 + 3 + 1) * 4)

    out2 = pl.pallas_call(
        functools.partial(_cloud_impact_kernel, g2=g2, off=off,
                          n_chunks=r // CHUNK_ROWS),
        out_shape=jax.ShapeDtypeStruct((rows, 128), jnp.float32),
        grid=(num_tiles,),
        in_specs=in_specs,
        out_specs=out_spec,
        compiler_params=pltpu.CompilerParams(
            dimension_semantics=("parallel",),
            vmem_limit_bytes=vmem_limit),
        cost_estimate=cost,
    )(cf3, cc3, ssc, wflat)

    return out2.reshape(bpad)[:B].reshape(B, 1)


def init_params(key, grid_size):
    """PyTorch-style init; weights kept in native (out, in) layout."""
    g2 = grid_size * grid_size
    keys = jax.random.split(key, 8)

    def linear(k, fan_in, fan_out):
        kw, kb = jax.random.split(k)
        bound = 1.0 / float(fan_in) ** 0.5
        w = jax.random.uniform(kw, (fan_out, fan_in), jnp.float32, -bound, bound)
        b = jax.random.uniform(kb, (fan_out,), jnp.float32, -bound, bound)
        return w, b

    p = {"abcde": jnp.array([0.1, 0.5, 0.9, 0.8, 0.3], dtype=jnp.float32)}
    p["sp_w1"], p["sp_b1"] = linear(keys[0], 2, 4)        # SZASAAtoGridPos
    p["sp_w2"], p["sp_b2"] = linear(keys[1], 4, 8)
    p["sp_w3"], p["sp_b3"] = linear(keys[2], 8, g2)
    p["iv_w1"], p["iv_b1"] = linear(keys[3], g2, 8)       # impactVectorToImpactScalar
    p["iv_w2"], p["iv_b2"] = linear(keys[4], 8, 4)
    p["iv_w3"], p["iv_b3"] = linear(keys[5], 4, 1)
    p["gh_w1"], p["gh_b1"] = linear(keys[6], 2, 4)        # impactCSMToGHI
    p["gh_w2"], p["gh_b2"] = linear(keys[7], 4, 1)
    return p


def reference_forward(cf, cc, csm, sza, saa, p):
    sig = lambda x: 1.0 / (1.0 + jnp.exp(-x))
    a, b, c, d, e = (p["abcde"][i] for i in range(5))
    ind = lambda s: jnp.where((cc - s) != 0.0, 0.0, 1.0)
    cloud = (a * cf * ind(0.0) + b * cf * ind(1.0) + c * cf * ind(2.0)
             + d * cf * ind(3.0) + e * cf * ind(4.0))
    cloud = jnp.maximum(jnp.tanh(cloud), 0.0)                       # reth
    x = jnp.concatenate([sza, saa], axis=1)
    x = sig(x @ p["sp_w1"].T + p["sp_b1"])
    x = sig(x @ p["sp_w2"].T + p["sp_b2"])
    solar = sig(x @ p["sp_w3"].T + p["sp_b3"])
    iv = cloud * solar
    t = jnp.tanh(iv @ p["iv_w1"].T + p["iv_b1"])
    t = jnp.tanh(t @ p["iv_w2"].T + p["iv_b2"])
    s = jnp.tanh(t @ p["iv_w3"].T + p["iv_b3"])
    y = jnp.tanh(jnp.concatenate([s, csm], axis=1) @ p["gh_w1"].T + p["gh_b1"])
    return y @ p["gh_w2"].T + p["gh_b2"]


if __name__ == "__main__":
    # Keep the pure-JAX reference matmuls in full f32 so the comparison only
    # measures kernel numerics (kernel itself uses no matmuls).
    jax.config.update("jax_default_matmul_precision", "highest")

    key = jax.random.PRNGKey(0)
    k_params, k_cf, k_cc, k_sza, k_saa, k_csm = jax.random.split(key, 6)

    grid_size = 4          # G*G = 16 cloud grid cells
    batch = 8
    g2 = grid_size * grid_size

    params = init_params(k_params, grid_size)

    cloud_fraction = jax.random.uniform(k_cf, (batch, g2), dtype=jnp.float32)
    cloud_class = jax.random.randint(k_cc, (batch, g2), 0, 5).astype(jnp.float32)
    sza = jax.random.uniform(k_sza, (batch, 1), dtype=jnp.float32)
    saa = jax.random.uniform(k_saa, (batch, 1), dtype=jnp.float32)
    csm = jax.random.uniform(k_csm, (batch, 1), dtype=jnp.float32) * 1000.0

    fwd = jax.jit(cloud_impact_nn_to_ghi)
    out = jax.block_until_ready(fwd(cloud_fraction, cloud_class, csm, sza, saa, params))

    ref = reference_forward(cloud_fraction, cloud_class, csm, sza, saa, params)
    assert out.shape == (batch, 1), out.shape
    assert jnp.allclose(out, ref, atol=1e-4, rtol=1e-4), (out, ref)

    print("KERNEL_OK")
</pallas_src>

<mosaic_0001>
module attributes {stable_mosaic.version = 11 : i64} {
  func.func @_cloud_impact_kernel(%arg0: i32, %arg1: memref<16x8x128xf32, #tpu.memory_space<vmem>>, %arg2: memref<16x8x128xf32, #tpu.memory_space<vmem>>, %arg3: memref<3x8x128xf32, #tpu.memory_space<vmem>>, %arg4: memref<395xf32, #tpu.memory_space<smem>>, %arg5: memref<8x128xf32, #tpu.memory_space<vmem>>) attributes {dimension_semantics = [#tpu.dimension_semantics<parallel>], iteration_bounds = array<i64: 1>, scalar_prefetch = 0 : i64, scratch_operands = 0 : i64, tpu.core_type = #tpu.core_type<tc>, window_params = [{transform_indices = @transform_0, window_bounds = array<i64: 16, 8, 128>}, {transform_indices = @transform_1, window_bounds = array<i64: 16, 8, 128>}, {transform_indices = @transform_2, window_bounds = array<i64: 3, 8, 128>}, {transform_indices = @transform_3, window_bounds = array<i64: 395>}, {transform_indices = @transform_4, window_bounds = array<i64: 8, 128>}]} {
    %c0 = arith.constant 0 : index
    %0 = memref.load %arg4[%c0] : memref<395xf32, #tpu.memory_space<smem>>
    %c1 = arith.constant 1 : index
    %1 = memref.load %arg4[%c1] : memref<395xf32, #tpu.memory_space<smem>>
    %c2 = arith.constant 2 : index
    %2 = memref.load %arg4[%c2] : memref<395xf32, #tpu.memory_space<smem>>
    %c3 = arith.constant 3 : index
    %3 = memref.load %arg4[%c3] : memref<395xf32, #tpu.memory_space<smem>>
    %c4 = arith.constant 4 : index
    %4 = memref.load %arg4[%c4] : memref<395xf32, #tpu.memory_space<smem>>
    %c0_i32 = arith.constant 0 : i32
    %c8_i32 = arith.constant 8 : i32
    %5 = arith.muli %c0_i32, %c8_i32 : i32
    %6 = tpu.assume_multiple %5, 8 : i32
    %c0_0 = arith.constant 0 : index
    %7 = arith.index_cast %6 : i32 to index
    %c0_1 = arith.constant 0 : index
    %8 = vector.load %arg3[%c0_0, %7, %c0_1] : memref<3x8x128xf32, #tpu.memory_space<vmem>>, vector<1x8x128xf32>
    %9 = vector.shape_cast %8 : vector<1x8x128xf32> to vector<8x128xf32>
    %c1_2 = arith.constant 1 : index
    %10 = arith.index_cast %6 : i32 to index
    %c0_3 = arith.constant 0 : index
    %11 = vector.load %arg3[%c1_2, %10, %c0_3] : memref<3x8x128xf32, #tpu.memory_space<vmem>>, vector<1x8x128xf32>
    %12 = vector.shape_cast %11 : vector<1x8x128xf32> to vector<8x128xf32>
    %c2_4 = arith.constant 2 : index
    %13 = arith.index_cast %6 : i32 to index
    %c0_5 = arith.constant 0 : index
    %14 = vector.load %arg3[%c2_4, %13, %c0_5] : memref<3x8x128xf32, #tpu.memory_space<vmem>>, vector<1x8x128xf32>
    %15 = vector.shape_cast %14 : vector<1x8x128xf32> to vector<8x128xf32>
    %c5 = arith.constant 5 : index
    %16 = memref.load %arg4[%c5] : memref<395xf32, #tpu.memory_space<smem>>
    %17 = vector.broadcast %16 : f32 to vector<8x128xf32>
    %18 = arith.mulf %9, %17 : vector<8x128xf32>
    %c6 = arith.constant 6 : index
    %19 = memref.load %arg4[%c6] : memref<395xf32, #tpu.memory_space<smem>>
    %20 = vector.broadcast %19 : f32 to vector<8x128xf32>
    %21 = arith.mulf %12, %20 : vector<8x128xf32>
    %22 = arith.addf %18, %21 : vector<8x128xf32>
    %c13 = arith.constant 13 : index
    %23 = memref.load %arg4[%c13] : memref<395xf32, #tpu.memory_space<smem>>
    %24 = vector.broadcast %23 : f32 to vector<8x128xf32>
    %25 = arith.addf %22, %24 : vector<8x128xf32>
    %cst = arith.constant 0.000000e+00 : f32
    %26 = vector.broadcast %cst : f32 to vector<8x128xf32>
    %27 = arith.subf %26, %25 : vector<8x128xf32>
    %28 = math.exp %27 : vector<8x128xf32>
    %cst_6 = arith.constant 1.000000e+00 : f32
    %29 = vector.broadcast %cst_6 : f32 to vector<8x128xf32>
    %30 = arith.addf %29, %28 : vector<8x128xf32>
    %cst_7 = arith.constant 1.000000e+00 : f32
    %31 = vector.broadcast %cst_7 : f32 to vector<8x128xf32>
    %32 = arith.divf %31, %30 : vector<8x128xf32>
    %c7 = arith.constant 7 : index
    %33 = memref.load %arg4[%c7] : memref<395xf32, #tpu.memory_space<smem>>
    %34 = vector.broadcast %33 : f32 to vector<8x128xf32>
    %35 = arith.mulf %9, %34 : vector<8x128xf32>
    %c8 = arith.constant 8 : index
    %36 = memref.load %arg4[%c8] : memref<395xf32, #tpu.memory_space<smem>>
    %37 = vector.broadcast %36 : f32 to vector<8x128xf32>
    %38 = arith.mulf %12, %37 : vector<8x128xf32>
    %39 = arith.addf %35, %38 : vector<8x128xf32>
    %c14 = arith.constant 14 : index
    %40 = memref.load %arg4[%c14] : memref<395xf32, #tpu.memory_space<smem>>
    %41 = vector.broadcast %40 : f32 to vector<8x128xf32>
    %42 = arith.addf %39, %41 : vector<8x128xf32>
    %cst_8 = arith.constant 0.000000e+00 : f32
    %43 = vector.broadcast %cst_8 : f32 to vector<8x128xf32>
    %44 = arith.subf %43, %42 : vector<8x128xf32>
    %45 = math.exp %44 : vector<8x128xf32>
    %cst_9 = arith.constant 1.000000e+00 : f32
    %46 = vector.broadcast %cst_9 : f32 to vector<8x128xf32>
    %47 = arith.addf %46, %45 : vector<8x128xf32>
    %cst_10 = arith.constant 1.000000e+00 : f32
    %48 = vector.broadcast %cst_10 : f32 to vector<8x128xf32>
    %49 = arith.divf %48, %47 : vector<8x128xf32>
    %c9 = arith.constant 9 : index
    %50 = memref.load %arg4[%c9] : memref<395xf32, #tpu.memory_space<smem>>
    %51 = vector.broadcast %50 : f32 to vector<8x128xf32>
    %52 = arith.mulf %9, %51 : vector<8x128xf32>
    %c10 = arith.constant 10 : index
    %53 = memref.load %arg4[%c10] : memref<395xf32, #tpu.memory_space<smem>>
    %54 = vector.broadcast %53 : f32 to vector<8x128xf32>
    %55 = arith.mulf %12, %54 : vector<8x128xf32>
    %56 = arith.addf %52, %55 : vector<8x128xf32>
    %c15 = arith.constant 15 : index
    %57 = memref.load %arg4[%c15] : memref<395xf32, #tpu.memory_space<smem>>
    %58 = vector.broadcast %57 : f32 to vector<8x128xf32>
    %59 = arith.addf %56, %58 : vector<8x128xf32>
    %cst_11 = arith.constant 0.000000e+00 : f32
    %60 = vector.broadcast %cst_11 : f32 to vector<8x128xf32>
    %61 = arith.subf %60, %59 : vector<8x128xf32>
    %62 = math.exp %61 : vector<8x128xf32>
    %cst_12 = arith.constant 1.000000e+00 : f32
    %63 = vector.broadcast %cst_12 : f32 to vector<8x128xf32>
    %64 = arith.addf %63, %62 : vector<8x128xf32>
    %cst_13 = arith.constant 1.000000e+00 : f32
    %65 = vector.broadcast %cst_13 : f32 to vector<8x128xf32>
    %66 = arith.divf %65, %64 : vector<8x128xf32>
    %c11 = arith.constant 11 : index
    %67 = memref.load %arg4[%c11] : memref<395xf32, #tpu.memory_space<smem>>
    %68 = vector.broadcast %67 : f32 to vector<8x128xf32>
    %69 = arith.mulf %9, %68 : vector<8x128xf32>
    %c12 = arith.constant 12 : index
    %70 = memref.load %arg4[%c12] : memref<395xf32, #tpu.memory_space<smem>>
    %71 = vector.broadcast %70 : f32 to vector<8x128xf32>
    %72 = arith.mulf %12, %71 : vector<8x128xf32>
    %73 = arith.addf %69, %72 : vector<8x128xf32>
    %c16 = arith.constant 16 : index
    %74 = memref.load %arg4[%c16] : memref<395xf32, #tpu.memory_space<smem>>
    %75 = vector.broadcast %74 : f32 to vector<8x128xf32>
    %76 = arith.addf %73, %75 : vector<8x128xf32>
    %cst_14 = arith.constant 0.000000e+00 : f32
    %77 = vector.broadcast %cst_14 : f32 to vector<8x128xf32>
    %78 = arith.subf %77, %76 : vector<8x128xf32>
    %79 = math.exp %78 : vector<8x128xf32>
    %cst_15 = arith.constant 1.000000e+00 : f32
    %80 = vector.broadcast %cst_15 : f32 to vector<8x128xf32>
    %81 = arith.addf %80, %79 : vector<8x128xf32>
    %cst_16 = arith.constant 1.000000e+00 : f32
    %82 = vector.broadcast %cst_16 : f32 to vector<8x128xf32>
    %83 = arith.divf %82, %81 : vector<8x128xf32>
    %c17 = arith.constant 17 : index
    %84 = memref.load %arg4[%c17] : memref<395xf32, #tpu.memory_space<smem>>
    %85 = vector.broadcast %84 : f32 to vector<8x128xf32>
    %86 = arith.mulf %32, %85 : vector<8x128xf32>
    %c18 = arith.constant 18 : index
    %87 = memref.load %arg4[%c18] : memref<395xf32, #tpu.memory_space<smem>>
    %88 = vector.broadcast %87 : f32 to vector<8x128xf32>
    %89 = arith.mulf %49, %88 : vector<8x128xf32>
    %90 = arith.addf %86, %89 : vector<8x128xf32>
    %c19 = arith.constant 19 : index
    %91 = memref.load %arg4[%c19] : memref<395xf32, #tpu.memory_space<smem>>
    %92 = vector.broadcast %91 : f32 to vector<8x128xf32>
    %93 = arith.mulf %66, %92 : vector<8x128xf32>
    %94 = arith.addf %90, %93 : vector<8x128xf32>
    %c20 = arith.constant 20 : index
    %95 = memref.load %arg4[%c20] : memref<395xf32, #tpu.memory_space<smem>>
    %96 = vector.broadcast %95 : f32 to vector<8x128xf32>
    %97 = arith.mulf %83, %96 : vector<8x128xf32>
    %98 = arith.addf %94, %97 : vector<8x128xf32>
    %c49 = arith.constant 49 : index
    %99 = memref.load %arg4[%c49] : memref<395xf32, #tpu.memory_space<smem>>
    %100 = vector.broadcast %99 : f32 to vector<8x128xf32>
    %101 = arith.addf %98, %100 : vector<8x128xf32>
    %cst_17 = arith.constant 0.000000e+00 : f32
    %102 = vector.broadcast %cst_17 : f32 to vector<8x128xf32>
    %103 = arith.subf %102, %101 : vector<8x128xf32>
    %104 = math.exp %103 : vector<8x128xf32>
    %cst_18 = arith.constant 1.000000e+00 : f32
    %105 = vector.broadcast %cst_18 : f32 to vector<8x128xf32>
    %106 = arith.addf %105, %104 : vector<8x128xf32>
    %cst_19 = arith.constant 1.000000e+00 : f32
    %107 = vector.broadcast %cst_19 : f32 to vector<8x128xf32>
    %108 = arith.divf %107, %106 : vector<8x128xf32>
    %c21 = arith.constant 21 : index
    %109 = memref.load %arg4[%c21] : memref<395xf32, #tpu.memory_space<smem>>
    %110 = vector.broadcast %109 : f32 to vector<8x128xf32>
    %111 = arith.mulf %32, %110 : vector<8x128xf32>
    %c22 = arith.constant 22 : index
    %112 = memref.load %arg4[%c22] : memref<395xf32, #tpu.memory_space<smem>>
    %113 = vector.broadcast %112 : f32 to vector<8x128xf32>
    %114 = arith.mulf %49, %113 : vector<8x128xf32>
    %115 = arith.addf %111, %114 : vector<8x128xf32>
    %c23 = arith.constant 23 : index
    %116 = memref.load %arg4[%c23] : memref<395xf32, #tpu.memory_space<smem>>
    %117 = vector.broadcast %116 : f32 to vector<8x128xf32>
    %118 = arith.mulf %66, %117 : vector<8x128xf32>
    %119 = arith.addf %115, %118 : vector<8x128xf32>
    %c24 = arith.constant 24 : index
    %120 = memref.load %arg4[%c24] : memref<395xf32, #tpu.memory_space<smem>>
    %121 = vector.broadcast %120 : f32 to vector<8x128xf32>
    %122 = arith.mulf %83, %121 : vector<8x128xf32>
    %123 = arith.addf %119, %122 : vector<8x128xf32>
    %c50 = arith.constant 50 : index
    %124 = memref.load %arg4[%c50] : memref<395xf32, #tpu.memory_space<smem>>
    %125 = vector.broadcast %124 : f32 to vector<8x128xf32>
    %126 = arith.addf %123, %125 : vector<8x128xf32>
    %cst_20 = arith.constant 0.000000e+00 : f32
    %127 = vector.broadcast %cst_20 : f32 to vector<8x128xf32>
    %128 = arith.subf %127, %126 : vector<8x128xf32>
    %129 = math.exp %128 : vector<8x128xf32>
    %cst_21 = arith.constant 1.000000e+00 : f32
    %130 = vector.broadcast %cst_21 : f32 to vector<8x128xf32>
    %131 = arith.addf %130, %129 : vector<8x128xf32>
    %cst_22 = arith.constant 1.000000e+00 : f32
    %132 = vector.broadcast %cst_22 : f32 to vector<8x128xf32>
    %133 = arith.divf %132, %131 : vector<8x128xf32>
    %c25 = arith.constant 25 : index
    %134 = memref.load %arg4[%c25] : memref<395xf32, #tpu.memory_space<smem>>
    %135 = vector.broadcast %134 : f32 to vector<8x128xf32>
    %136 = arith.mulf %32, %135 : vector<8x128xf32>
    %c26 = arith.constant 26 : index
    %137 = memref.load %arg4[%c26] : memref<395xf32, #tpu.memory_space<smem>>
    %138 = vector.broadcast %137 : f32 to vector<8x128xf32>
    %139 = arith.mulf %49, %138 : vector<8x128xf32>
    %140 = arith.addf %136, %139 : vector<8x128xf32>
    %c27 = arith.constant 27 : index
    %141 = memref.load %arg4[%c27] : memref<395xf32, #tpu.memory_space<smem>>
    %142 = vector.broadcast %141 : f32 to vector<8x128xf32>
    %143 = arith.mulf %66, %142 : vector<8x128xf32>
    %144 = arith.addf %140, %143 : vector<8x128xf32>
    %c28 = arith.constant 28 : index
    %145 = memref.load %arg4[%c28] : memref<395xf32, #tpu.memory_space<smem>>
    %146 = vector.broadcast %145 : f32 to vector<8x128xf32>
    %147 = arith.mulf %83, %146 : vector<8x128xf32>
    %148 = arith.addf %144, %147 : vector<8x128xf32>
    %c51 = arith.constant 51 : index
    %149 = memref.load %arg4[%c51] : memref<395xf32, #tpu.memory_space<smem>>
    %150 = vector.broadcast %149 : f32 to vector<8x128xf32>
    %151 = arith.addf %148, %150 : vector<8x128xf32>
    %cst_23 = arith.constant 0.000000e+00 : f32
    %152 = vector.broadcast %cst_23 : f32 to vector<8x128xf32>
    %153 = arith.subf %152, %151 : vector<8x128xf32>
    %154 = math.exp %153 : vector<8x128xf32>
    %cst_24 = arith.constant 1.000000e+00 : f32
    %155 = vector.broadcast %cst_24 : f32 to vector<8x128xf32>
    %156 = arith.addf %155, %154 : vector<8x128xf32>
    %cst_25 = arith.constant 1.000000e+00 : f32
    %157 = vector.broadcast %cst_25 : f32 to vector<8x128xf32>
    %158 = arith.divf %157, %156 : vector<8x128xf32>
    %c29 = arith.constant 29 : index
    %159 = memref.load %arg4[%c29] : memref<395xf32, #tpu.memory_space<smem>>
    %160 = vector.broadcast %159 : f32 to vector<8x128xf32>
    %161 = arith.mulf %32, %160 : vector<8x128xf32>
    %c30 = arith.constant 30 : index
    %162 = memref.load %arg4[%c30] : memref<395xf32, #tpu.memory_space<smem>>
    %163 = vector.broadcast %162 : f32 to vector<8x128xf32>
    %164 = arith.mulf %49, %163 : vector<8x128xf32>
    %165 = arith.addf %161, %164 : vector<8x128xf32>
    %c31 = arith.constant 31 : index
    %166 = memref.load %arg4[%c31] : memref<395xf32, #tpu.memory_space<smem>>
    %167 = vector.broadcast %166 : f32 to vector<8x128xf32>
    %168 = arith.mulf %66, %167 : vector<8x128xf32>
    %169 = arith.addf %165, %168 : vector<8x128xf32>
    %c32 = arith.constant 32 : index
    %170 = memref.load %arg4[%c32] : memref<395xf32, #tpu.memory_space<smem>>
    %171 = vector.broadcast %170 : f32 to vector<8x128xf32>
    %172 = arith.mulf %83, %171 : vector<8x128xf32>
    %173 = arith.addf %169, %172 : vector<8x128xf32>
    %c52 = arith.constant 52 : index
    %174 = memref.load %arg4[%c52] : memref<395xf32, #tpu.memory_space<smem>>
    %175 = vector.broadcast %174 : f32 to vector<8x128xf32>
    %176 = arith.addf %173, %175 : vector<8x128xf32>
    %cst_26 = arith.constant 0.000000e+00 : f32
    %177 = vector.broadcast %cst_26 : f32 to vector<8x128xf32>
    %178 = arith.subf %177, %176 : vector<8x128xf32>
    %179 = math.exp %178 : vector<8x128xf32>
    %cst_27 = arith.constant 1.000000e+00 : f32
    %180 = vector.broadcast %cst_27 : f32 to vector<8x128xf32>
    %181 = arith.addf %180, %179 : vector<8x128xf32>
    %cst_28 = arith.constant 1.000000e+00 : f32
    %182 = vector.broadcast %cst_28 : f32 to vector<8x128xf32>
    %183 = arith.divf %182, %181 : vector<8x128xf32>
    %c33 = arith.constant 33 : index
    %184 = memref.load %arg4[%c33] : memref<395xf32, #tpu.memory_space<smem>>
    %185 = vector.broadcast %184 : f32 to vector<8x128xf32>
    %186 = arith.mulf %32, %185 : vector<8x128xf32>
    %c34 = arith.constant 34 : index
    %187 = memref.load %arg4[%c34] : memref<395xf32, #tpu.memory_space<smem>>
    %188 = vector.broadcast %187 : f32 to vector<8x128xf32>
    %189 = arith.mulf %49, %188 : vector<8x128xf32>
    %190 = arith.addf %186, %189 : vector<8x128xf32>
    %c35 = arith.constant 35 : index
    %191 = memref.load %arg4[%c35] : memref<395xf32, #tpu.memory_space<smem>>
    %192 = vector.broadcast %191 : f32 to vector<8x128xf32>
    %193 = arith.mulf %66, %192 : vector<8x128xf32>
    %194 = arith.addf %190, %193 : vector<8x128xf32>
    %c36 = arith.constant 36 : index
    %195 = memref.load %arg4[%c36] : memref<395xf32, #tpu.memory_space<smem>>
    %196 = vector.broadcast %195 : f32 to vector<8x128xf32>
    %197 = arith.mulf %83, %196 : vector<8x128xf32>
    %198 = arith.addf %194, %197 : vector<8x128xf32>
    %c53 = arith.constant 53 : index
    %199 = memref.load %arg4[%c53] : memref<395xf32, #tpu.memory_space<smem>>
    %200 = vector.broadcast %199 : f32 to vector<8x128xf32>
    %201 = arith.addf %198, %200 : vector<8x128xf32>
    %cst_29 = arith.constant 0.000000e+00 : f32
    %202 = vector.broadcast %cst_29 : f32 to vector<8x128xf32>
    %203 = arith.subf %202, %201 : vector<8x128xf32>
    %204 = math.exp %203 : vector<8x128xf32>
    %cst_30 = arith.constant 1.000000e+00 : f32
    %205 = vector.broadcast %cst_30 : f32 to vector<8x128xf32>
    %206 = arith.addf %205, %204 : vector<8x128xf32>
    %cst_31 = arith.constant 1.000000e+00 : f32
    %207 = vector.broadcast %cst_31 : f32 to vector<8x128xf32>
    %208 = arith.divf %207, %206 : vector<8x128xf32>
    %c37 = arith.constant 37 : index
    %209 = memref.load %arg4[%c37] : memref<395xf32, #tpu.memory_space<smem>>
    %210 = vector.broadcast %209 : f32 to vector<8x128xf32>
    %211 = arith.mulf %32, %210 : vector<8x128xf32>
    %c38 = arith.constant 38 : index
    %212 = memref.load %arg4[%c38] : memref<395xf32, #tpu.memory_space<smem>>
    %213 = vector.broadcast %212 : f32 to vector<8x128xf32>
    %214 = arith.mulf %49, %213 : vector<8x128xf32>
    %215 = arith.addf %211, %214 : vector<8x128xf32>
    %c39 = arith.constant 39 : index
    %216 = memref.load %arg4[%c39] : memref<395xf32, #tpu.memory_space<smem>>
    %217 = vector.broadcast %216 : f32 to vector<8x128xf32>
    %218 = arith.mulf %66, %217 : vector<8x128xf32>
    %219 = arith.addf %215, %218 : vector<8x128xf32>
    %c40 = arith.constant 40 : index
    %220 = memref.load %arg4[%c40] : memref<395xf32, #tpu.memory_space<smem>>
    %221 = vector.broadcast %220 : f32 to vector<8x128xf32>
    %222 = arith.mulf %83, %221 : vector<8x128xf32>
    %223 = arith.addf %219, %222 : vector<8x128xf32>
    %c54 = arith.constant 54 : index
    %224 = memref.load %arg4[%c54] : memref<395xf32, #tpu.memory_space<smem>>
    %225 = vector.broadcast %224 : f32 to vector<8x128xf32>
    %226 = arith.addf %223, %225 : vector<8x128xf32>
    %cst_32 = arith.constant 0.000000e+00 : f32
    %227 = vector.broadcast %cst_32 : f32 to vector<8x128xf32>
    %228 = arith.subf %227, %226 : vector<8x128xf32>
    %229 = math.exp %228 : vector<8x128xf32>
    %cst_33 = arith.constant 1.000000e+00 : f32
    %230 = vector.broadcast %cst_33 : f32 to vector<8x128xf32>
    %231 = arith.addf %230, %229 : vector<8x128xf32>
    %cst_34 = arith.constant 1.000000e+00 : f32
    %232 = vector.broadcast %cst_34 : f32 to vector<8x128xf32>
    %233 = arith.divf %232, %231 : vector<8x128xf32>
    %c41 = arith.constant 41 : index
    %234 = memref.load %arg4[%c41] : memref<395xf32, #tpu.memory_space<smem>>
    %235 = vector.broadcast %234 : f32 to vector<8x128xf32>
    %236 = arith.mulf %32, %235 : vector<8x128xf32>
    %c42 = arith.constant 42 : index
    %237 = memref.load %arg4[%c42] : memref<395xf32, #tpu.memory_space<smem>>
    %238 = vector.broadcast %237 : f32 to vector<8x128xf32>
    %239 = arith.mulf %49, %238 : vector<8x128xf32>
    %240 = arith.addf %236, %239 : vector<8x128xf32>
    %c43 = arith.constant 43 : index
    %241 = memref.load %arg4[%c43] : memref<395xf32, #tpu.memory_space<smem>>
    %242 = vector.broadcast %241 : f32 to vector<8x128xf32>
    %243 = arith.mulf %66, %242 : vector<8x128xf32>
    %244 = arith.addf %240, %243 : vector<8x128xf32>
    %c44 = arith.constant 44 : index
    %245 = memref.load %arg4[%c44] : memref<395xf32, #tpu.memory_space<smem>>
    %246 = vector.broadcast %245 : f32 to vector<8x128xf32>
    %247 = arith.mulf %83, %246 : vector<8x128xf32>
    %248 = arith.addf %244, %247 : vector<8x128xf32>
    %c55 = arith.constant 55 : index
    %249 = memref.load %arg4[%c55] : memref<395xf32, #tpu.memory_space<smem>>
    %250 = vector.broadcast %249 : f32 to vector<8x128xf32>
    %251 = arith.addf %248, %250 : vector<8x128xf32>
    %cst_35 = arith.constant 0.000000e+00 : f32
    %252 = vector.broadcast %cst_35 : f32 to vector<8x128xf32>
    %253 = arith.subf %252, %251 : vector<8x128xf32>
    %254 = math.exp %253 : vector<8x128xf32>
    %cst_36 = arith.constant 1.000000e+00 : f32
    %255 = vector.broadcast %cst_36 : f32 to vector<8x128xf32>
    %256 = arith.addf %255, %254 : vector<8x128xf32>
    %cst_37 = arith.constant 1.000000e+00 : f32
    %257 = vector.broadcast %cst_37 : f32 to vector<8x128xf32>
    %258 = arith.divf %257, %256 : vector<8x128xf32>
    %c45 = arith.constant 45 : index
    %259 = memref.load %arg4[%c45] : memref<395xf32, #tpu.memory_space<smem>>
    %260 = vector.broadcast %259 : f32 to vector<8x128xf32>
    %261 = arith.mulf %32, %260 : vector<8x128xf32>
    %c46 = arith.constant 46 : index
    %262 = memref.load %arg4[%c46] : memref<395xf32, #tpu.memory_space<smem>>
    %263 = vector.broadcast %262 : f32 to vector<8x128xf32>
    %264 = arith.mulf %49, %263 : vector<8x128xf32>
    %265 = arith.addf %261, %264 : vector<8x128xf32>
    %c47 = arith.constant 47 : index
    %266 = memref.load %arg4[%c47] : memref<395xf32, #tpu.memory_space<smem>>
    %267 = vector.broadcast %266 : f32 to vector<8x128xf32>
    %268 = arith.mulf %66, %267 : vector<8x128xf32>
    %269 = arith.addf %265, %268 : vector<8x128xf32>
    %c48 = arith.constant 48 : index
    %270 = memref.load %arg4[%c48] : memref<395xf32, #tpu.memory_space<smem>>
    %271 = vector.broadcast %270 : f32 to vector<8x128xf32>
    %272 = arith.mulf %83, %271 : vector<8x128xf32>
    %273 = arith.addf %269, %272 : vector<8x128xf32>
    %c56 = arith.constant 56 : index
    %274 = memref.load %arg4[%c56] : memref<395xf32, #tpu.memory_space<smem>>
    %275 = vector.broadcast %274 : f32 to vector<8x128xf32>
    %276 = arith.addf %273, %275 : vector<8x128xf32>
    %cst_38 = arith.constant 0.000000e+00 : f32
    %277 = vector.broadcast %cst_38 : f32 to vector<8x128xf32>
    %278 = arith.subf %277, %276 : vector<8x128xf32>
    %279 = math.exp %278 : vector<8x128xf32>
    %cst_39 = arith.constant 1.000000e+00 : f32
    %280 = vector.broadcast %cst_39 : f32 to vector<8x128xf32>
    %281 = arith.addf %280, %279 : vector<8x128xf32>
    %cst_40 = arith.constant 1.000000e+00 : f32
    %282 = vector.broadcast %cst_40 : f32 to vector<8x128xf32>
    %283 = arith.divf %282, %281 : vector<8x128xf32>
    %c0_41 = arith.constant 0 : index
    %284 = arith.index_cast %6 : i32 to index
    %c0_42 = arith.constant 0 : index
    %285 = vector.load %arg1[%c0_41, %284, %c0_42] : memref<16x8x128xf32, #tpu.memory_space<vmem>>, vector<1x8x128xf32>
    %286 = vector.shape_cast %285 : vector<1x8x128xf32> to vector<8x128xf32>
    %c0_43 = arith.constant 0 : index
    %287 = arith.index_cast %6 : i32 to index
    %c0_44 = arith.constant 0 : index
    %288 = vector.load %arg2[%c0_43, %287, %c0_44] : memref<16x8x128xf32, #tpu.memory_space<vmem>>, vector<1x8x128xf32>
    %289 = vector.shape_cast %288 : vector<1x8x128xf32> to vector<8x128xf32>
    %cst_45 = arith.constant 0.000000e+00 : f32
    %290 = vector.broadcast %cst_45 : f32 to vector<8x128xf32>
    %291 = arith.cmpf oeq, %289, %290 : vector<8x128xf32>
    %cst_46 = arith.constant 1.000000e+00 : f32
    %292 = vector.broadcast %cst_46 : f32 to vector<8x128xf32>
    %293 = arith.cmpf oeq, %289, %292 : vector<8x128xf32>
    %cst_47 = arith.constant 2.000000e+00 : f32
    %294 = vector.broadcast %cst_47 : f32 to vector<8x128xf32>
    %295 = arith.cmpf oeq, %289, %294 : vector<8x128xf32>
    %cst_48 = arith.constant 3.000000e+00 : f32
    %296 = vector.broadcast %cst_48 : f32 to vector<8x128xf32>
    %297 = arith.cmpf oeq, %289, %296 : vector<8x128xf32>
    %cst_49 = arith.constant 4.000000e+00 : f32
    %298 = vector.broadcast %cst_49 : f32 to vector<8x128xf32>
    %299 = arith.cmpf oeq, %289, %298 : vector<8x128xf32>
    %cst_50 = arith.constant 0.000000e+00 : f32
    %300 = vector.broadcast %4 : f32 to vector<8x128xf32>
    %301 = vector.broadcast %cst_50 : f32 to vector<8x128xf32>
    %302 = arith.select %299, %300, %301 : vector<8x128xi1>, vector<8x128xf32>
    %303 = vector.broadcast %3 : f32 to vector<8x128xf32>
    %304 = arith.select %297, %303, %302 : vector<8x128xi1>, vector<8x128xf32>
    %305 = vector.broadcast %2 : f32 to vector<8x128xf32>
    %306 = arith.select %295, %305, %304 : vector<8x128xi1>, vector<8x128xf32>
    %307 = vector.broadcast %1 : f32 to vector<8x128xf32>
    %308 = arith.select %293, %307, %306 : vector<8x128xi1>, vector<8x128xf32>
    %309 = vector.broadcast %0 : f32 to vector<8x128xf32>
    %310 = arith.select %291, %309, %308 : vector<8x128xi1>, vector<8x128xf32>
    %311 = arith.mulf %310, %286 : vector<8x128xf32>
    %312 = math.tanh %311 : vector<8x128xf32>
    %cst_51 = arith.constant 0.000000e+00 : f32
    %313 = vector.broadcast %cst_51 : f32 to vector<8x128xf32>
    %314 = arith.maximumf %312, %313 : vector<8x128xf32>
    %c57 = arith.constant 57 : index
    %315 = memref.load %arg4[%c57] : memref<395xf32, #tpu.memory_space<smem>>
    %316 = vector.broadcast %315 : f32 to vector<8x128xf32>
    %317 = arith.mulf %108, %316 : vector<8x128xf32>
    %c58 = arith.constant 58 : index
    %318 = memref.load %arg4[%c58] : memref<395xf32, #tpu.memory_space<smem>>
    %319 = vector.broadcast %318 : f32 to vector<8x128xf32>
    %320 = arith.mulf %133, %319 : vector<8x128xf32>
    %321 = arith.addf %317, %320 : vector<8x128xf32>
    %c59 = arith.constant 59 : index
    %322 = memref.load %arg4[%c59] : memref<395xf32, #tpu.memory_space<smem>>
    %323 = vector.broadcast %322 : f32 to vector<8x128xf32>
    %324 = arith.mulf %158, %323 : vector<8x128xf32>
    %325 = arith.addf %321, %324 : vector<8x128xf32>
    %c60 = arith.constant 60 : index
    %326 = memref.load %arg4[%c60] : memref<395xf32, #tpu.memory_space<smem>>
    %327 = vector.broadcast %326 : f32 to vector<8x128xf32>
    %328 = arith.mulf %183, %327 : vector<8x128xf32>
    %329 = arith.addf %325, %328 : vector<8x128xf32>
    %c61 = arith.constant 61 : index
    %330 = memref.load %arg4[%c61] : memref<395xf32, #tpu.memory_space<smem>>
    %331 = vector.broadcast %330 : f32 to vector<8x128xf32>
    %332 = arith.mulf %208, %331 : vector<8x128xf32>
    %333 = arith.addf %329, %332 : vector<8x128xf32>
    %c62 = arith.constant 62 : index
    %334 = memref.load %arg4[%c62] : memref<395xf32, #tpu.memory_space<smem>>
    %335 = vector.broadcast %334 : f32 to vector<8x128xf32>
    %336 = arith.mulf %233, %335 : vector<8x128xf32>
    %337 = arith.addf %333, %336 : vector<8x128xf32>
    %c63 = arith.constant 63 : index
    %338 = memref.load %arg4[%c63] : memref<395xf32, #tpu.memory_space<smem>>
    %339 = vector.broadcast %338 : f32 to vector<8x128xf32>
    %340 = arith.mulf %258, %339 : vector<8x128xf32>
    %341 = arith.addf %337, %340 : vector<8x128xf32>
    %c64 = arith.constant 64 : index
    %342 = memref.load %arg4[%c64] : memref<395xf32, #tpu.memory_space<smem>>
    %343 = vector.broadcast %342 : f32 to vector<8x128xf32>
    %344 = arith.mulf %283, %343 : vector<8x128xf32>
    %345 = arith.addf %341, %344 : vector<8x128xf32>
    %c185 = arith.constant 185 : index
    %346 = memref.load %arg4[%c185] : memref<395xf32, #tpu.memory_space<smem>>
    %347 = vector.broadcast %346 : f32 to vector<8x128xf32>
    %348 = arith.addf %345, %347 : vector<8x128xf32>
    %cst_52 = arith.constant 0.000000e+00 : f32
    %349 = vector.broadcast %cst_52 : f32 to vector<8x128xf32>
    %350 = arith.subf %349, %348 : vector<8x128xf32>
    %351 = math.exp %350 : vector<8x128xf32>
    %cst_53 = arith.constant 1.000000e+00 : f32
    %352 = vector.broadcast %cst_53 : f32 to vector<8x128xf32>
    %353 = arith.addf %352, %351 : vector<8x128xf32>
    %cst_54 = arith.constant 1.000000e+00 : f32
    %354 = vector.broadcast %cst_54 : f32 to vector<8x128xf32>
    %355 = arith.divf %354, %353 : vector<8x128xf32>
    %356 = arith.mulf %314, %355 : vector<8x128xf32>
    %c201 = arith.constant 201 : index
    %357 = memref.load %arg4[%c201] : memref<395xf32, #tpu.memory_space<smem>>
    %358 = vector.broadcast %357 : f32 to vector<8x128xf32>
    %359 = arith.mulf %356, %358 : vector<8x128xf32>
    %c217 = arith.constant 217 : index
    %360 = memref.load %arg4[%c217] : memref<395xf32, #tpu.memory_space<smem>>
    %361 = vector.broadcast %360 : f32 to vector<8x128xf32>
    %362 = arith.mulf %356, %361 : vector<8x128xf32>
    %c233 = arith.constant 233 : index
    %363 = memref.load %arg4[%c233] : memref<395xf32, #tpu.memory_space<smem>>
    %364 = vector.broadcast %363 : f32 to vector<8x128xf32>
    %365 = arith.mulf %356, %364 : vector<8x128xf32>
    %c249 = arith.constant 249 : index
    %366 = memref.load %arg4[%c249] : memref<395xf32, #tpu.memory_space<smem>>
    %367 = vector.broadcast %366 : f32 to vector<8x128xf32>
    %368 = arith.mulf %356, %367 : vector<8x128xf32>
    %c265 = arith.constant 265 : index
    %369 = memref.load %arg4[%c265] : memref<395xf32, #tpu.memory_space<smem>>
    %370 = vector.broadcast %369 : f32 to vector<8x128xf32>
    %371 = arith.mulf %356, %370 : vector<8x128xf32>
    %c281 = arith.constant 281 : index
    %372 = memref.load %arg4[%c281] : memref<395xf32, #tpu.memory_space<smem>>
    %373 = vector.broadcast %372 : f32 to vector<8x128xf32>
    %374 = arith.mulf %356, %373 : vector<8x128xf32>
    %c297 = arith.constant 297 : index
    %375 = memref.load %arg4[%c297] : memref<395xf32, #tpu.memory_space<smem>>
    %376 = vector.broadcast %375 : f32 to vector<8x128xf32>
    %377 = arith.mulf %356, %376 : vector<8x128xf32>
    %c313 = arith.constant 313 : index
    %378 = memref.load %arg4[%c313] : memref<395xf32, #tpu.memory_space<smem>>
    %379 = vector.broadcast %378 : f32 to vector<8x128xf32>
    %380 = arith.mulf %356, %379 : vector<8x128xf32>
    %c1_55 = arith.constant 1 : index
    %381 = arith.index_cast %6 : i32 to index
    %c0_56 = arith.constant 0 : index
    %382 = vector.load %arg1[%c1_55, %381, %c0_56] : memref<16x8x128xf32, #tpu.memory_space<vmem>>, vector<1x8x128xf32>
    %383 = vector.shape_cast %382 : vector<1x8x128xf32> to vector<8x128xf32>
    %c1_57 = arith.constant 1 : index
    %384 = arith.index_cast %6 : i32 to index
    %c0_58 = arith.constant 0 : index
    %385 = vector.load %arg2[%c1_57, %384, %c0_58] : memref<16x8x128xf32, #tpu.memory_space<vmem>>, vector<1x8x128xf32>
    %386 = vector.shape_cast %385 : vector<1x8x128xf32> to vector<8x128xf32>
    %cst_59 = arith.constant 0.000000e+00 : f32
    %387 = vector.broadcast %cst_59 : f32 to vector<8x128xf32>
    %388 = arith.cmpf oeq, %386, %387 : vector<8x128xf32>
    %cst_60 = arith.constant 1.000000e+00 : f32
    %389 = vector.broadcast %cst_60 : f32 to vector<8x128xf32>
    %390 = arith.cmpf oeq, %386, %389 : vector<8x128xf32>
    %cst_61 = arith.constant 2.000000e+00 : f32
    %391 = vector.broadcast %cst_61 : f32 to vector<8x128xf32>
    %392 = arith.cmpf oeq, %386, %391 : vector<8x128xf32>
    %cst_62 = arith.constant 3.000000e+00 : f32
    %393 = vector.broadcast %cst_62 : f32 to vector<8x128xf32>
    %394 = arith.cmpf oeq, %386, %393 : vector<8x128xf32>
    %cst_63 = arith.constant 4.000000e+00 : f32
    %395 = vector.broadcast %cst_63 : f32 to vector<8x128xf32>
    %396 = arith.cmpf oeq, %386, %395 : vector<8x128xf32>
    %cst_64 = arith.constant 0.000000e+00 : f32
    %397 = vector.broadcast %4 : f32 to vector<8x128xf32>
    %398 = vector.broadcast %cst_64 : f32 to vector<8x128xf32>
    %399 = arith.select %396, %397, %398 : vector<8x128xi1>, vector<8x128xf32>
    %400 = vector.broadcast %3 : f32 to vector<8x128xf32>
    %401 = arith.select %394, %400, %399 : vector<8x128xi1>, vector<8x128xf32>
    %402 = vector.broadcast %2 : f32 to vector<8x128xf32>
    %403 = arith.select %392, %402, %401 : vector<8x128xi1>, vector<8x128xf32>
    %404 = vector.broadcast %1 : f32 to vector<8x128xf32>
    %405 = arith.select %390, %404, %403 : vector<8x128xi1>, vector<8x128xf32>
    %406 = vector.broadcast %0 : f32 to vector<8x128xf32>
    %407 = arith.select %388, %406, %405 : vector<8x128xi1>, vector<8x128xf32>
    %408 = arith.mulf %407, %383 : vector<8x128xf32>
    %409 = math.tanh %408 : vector<8x128xf32>
    %cst_65 = arith.constant 0.000000e+00 : f32
    %410 = vector.broadcast %cst_65 : f32 to vector<8x128xf32>
    %411 = arith.maximumf %409, %410 : vector<8x128xf32>
    %c65 = arith.constant 65 : index
    %412 = memref.load %arg4[%c65] : memref<395xf32, #tpu.memory_space<smem>>
    %413 = vector.broadcast %412 : f32 to vector<8x128xf32>
    %414 = arith.mulf %108, %413 : vector<8x128xf32>
    %c66 = arith.constant 66 : index
    %415 = memref.load %arg4[%c66] : memref<395xf32, #tpu.memory_space<smem>>
    %416 = vector.broadcast %415 : f32 to vector<8x128xf32>
    %417 = arith.mulf %133, %416 : vector<8x128xf32>
    %418 = arith.addf %414, %417 : vector<8x128xf32>
    %c67 = arith.constant 67 : index
    %419 = memref.load %arg4[%c67] : memref<395xf32, #tpu.memory_space<smem>>
    %420 = vector.broadcast %419 : f32 to vector<8x128xf32>
    %421 = arith.mulf %158, %420 : vector<8x128xf32>
    %422 = arith.addf %418, %421 : vector<8x128xf32>
    %c68 = arith.constant 68 : index
    %423 = memref.load %arg4[%c68] : memref<395xf32, #tpu.memory_space<smem>>
    %424 = vector.broadcast %423 : f32 to vector<8x128xf32>
    %425 = arith.mulf %183, %424 : vector<8x128xf32>
    %426 = arith.addf %422, %425 : vector<8x128xf32>
    %c69 = arith.constant 69 : index
    %427 = memref.load %arg4[%c69] : memref<395xf32, #tpu.memory_space<smem>>
    %428 = vector.broadcast %427 : f32 to vector<8x128xf32>
    %429 = arith.mulf %208, %428 : vector<8x128xf32>
    %430 = arith.addf %426, %429 : vector<8x128xf32>
    %c70 = arith.constant 70 : index
    %431 = memref.load %arg4[%c70] : memref<395xf32, #tpu.memory_space<smem>>
    %432 = vector.broadcast %431 : f32 to vector<8x128xf32>
    %433 = arith.mulf %233, %432 : vector<8x128xf32>
    %434 = arith.addf %430, %433 : vector<8x128xf32>
    %c71 = arith.constant 71 : index
    %435 = memref.load %arg4[%c71] : memref<395xf32, #tpu.memory_space<smem>>
    %436 = vector.broadcast %435 : f32 to vector<8x128xf32>
    %437 = arith.mulf %258, %436 : vector<8x128xf32>
    %438 = arith.addf %434, %437 : vector<8x128xf32>
    %c72 = arith.constant 72 : index
    %439 = memref.load %arg4[%c72] : memref<395xf32, #tpu.memory_space<smem>>
    %440 = vector.broadcast %439 : f32 to vector<8x128xf32>
    %441 = arith.mulf %283, %440 : vector<8x128xf32>
    %442 = arith.addf %438, %441 : vector<8x128xf32>
    %c186 = arith.constant 186 : index
    %443 = memref.load %arg4[%c186] : memref<395xf32, #tpu.memory_space<smem>>
    %444 = vector.broadcast %443 : f32 to vector<8x128xf32>
    %445 = arith.addf %442, %444 : vector<8x128xf32>
    %cst_66 = arith.constant 0.000000e+00 : f32
    %446 = vector.broadcast %cst_66 : f32 to vector<8x128xf32>
    %447 = arith.subf %446, %445 : vector<8x128xf32>
    %448 = math.exp %447 : vector<8x128xf32>
    %cst_67 = arith.constant 1.000000e+00 : f32
    %449 = vector.broadcast %cst_67 : f32 to vector<8x128xf32>
    %450 = arith.addf %449, %448 : vector<8x128xf32>
    %cst_68 = arith.constant 1.000000e+00 : f32
    %451 = vector.broadcast %cst_68 : f32 to vector<8x128xf32>
    %452 = arith.divf %451, %450 : vector<8x128xf32>
    %453 = arith.mulf %411, %452 : vector<8x128xf32>
    %c202 = arith.constant 202 : index
    %454 = memref.load %arg4[%c202] : memref<395xf32, #tpu.memory_space<smem>>
    %455 = vector.broadcast %454 : f32 to vector<8x128xf32>
    %456 = arith.mulf %453, %455 : vector<8x128xf32>
    %457 = arith.addf %359, %456 : vector<8x128xf32>
    %c218 = arith.constant 218 : index
    %458 = memref.load %arg4[%c218] : memref<395xf32, #tpu.memory_space<smem>>
    %459 = vector.broadcast %458 : f32 to vector<8x128xf32>
    %460 = arith.mulf %453, %459 : vector<8x128xf32>
    %461 = arith.addf %362, %460 : vector<8x128xf32>
    %c234 = arith.constant 234 : index
    %462 = memref.load %arg4[%c234] : memref<395xf32, #tpu.memory_space<smem>>
    %463 = vector.broadcast %462 : f32 to vector<8x128xf32>
    %464 = arith.mulf %453, %463 : vector<8x128xf32>
    %465 = arith.addf %365, %464 : vector<8x128xf32>
    %c250 = arith.constant 250 : index
    %466 = memref.load %arg4[%c250] : memref<395xf32, #tpu.memory_space<smem>>
    %467 = vector.broadcast %466 : f32 to vector<8x128xf32>
    %468 = arith.mulf %453, %467 : vector<8x128xf32>
    %469 = arith.addf %368, %468 : vector<8x128xf32>
    %c266 = arith.constant 266 : index
    %470 = memref.load %arg4[%c266] : memref<395xf32, #tpu.memory_space<smem>>
    %471 = vector.broadcast %470 : f32 to vector<8x128xf32>
    %472 = arith.mulf %453, %471 : vector<8x128xf32>
    %473 = arith.addf %371, %472 : vector<8x128xf32>
    %c282 = arith.constant 282 : index
    %474 = memref.load %arg4[%c282] : memref<395xf32, #tpu.memory_space<smem>>
    %475 = vector.broadcast %474 : f32 to vector<8x128xf32>
    %476 = arith.mulf %453, %475 : vector<8x128xf32>
    %477 = arith.addf %374, %476 : vector<8x128xf32>
    %c298 = arith.constant 298 : index
    %478 = memref.load %arg4[%c298] : memref<395xf32, #tpu.memory_space<smem>>
    %479 = vector.broadcast %478 : f32 to vector<8x128xf32>
    %480 = arith.mulf %453, %479 : vector<8x128xf32>
    %481 = arith.addf %377, %480 : vector<8x128xf32>
    %c314 = arith.constant 314 : index
    %482 = memref.load %arg4[%c314] : memref<395xf32, #tpu.memory_space<smem>>
    %483 = vector.broadcast %482 : f32 to vector<8x128xf32>
    %484 = arith.mulf %453, %483 : vector<8x128xf32>
    %485 = arith.addf %380, %484 : vector<8x128xf32>
    %c2_69 = arith.constant 2 : index
    %486 = arith.index_cast %6 : i32 to index
    %c0_70 = arith.constant 0 : index
    %487 = vector.load %arg1[%c2_69, %486, %c0_70] : memref<16x8x128xf32, #tpu.memory_space<vmem>>, vector<1x8x128xf32>
    %488 = vector.shape_cast %487 : vector<1x8x128xf32> to vector<8x128xf32>
    %c2_71 = arith.constant 2 : index
    %489 = arith.index_cast %6 : i32 to index
    %c0_72 = arith.constant 0 : index
    %490 = vector.load %arg2[%c2_71, %489, %c0_72] : memref<16x8x128xf32, #tpu.memory_space<vmem>>, vector<1x8x128xf32>
    %491 = vector.shape_cast %490 : vector<1x8x128xf32> to vector<8x128xf32>
    %cst_73 = arith.constant 0.000000e+00 : f32
    %492 = vector.broadcast %cst_73 : f32 to vector<8x128xf32>
    %493 = arith.cmpf oeq, %491, %492 : vector<8x128xf32>
    %cst_74 = arith.constant 1.000000e+00 : f32
    %494 = vector.broadcast %cst_74 : f32 to vector<8x128xf32>
    %495 = arith.cmpf oeq, %491, %494 : vector<8x128xf32>
    %cst_75 = arith.constant 2.000000e+00 : f32
    %496 = vector.broadcast %cst_75 : f32 to vector<8x128xf32>
    %497 = arith.cmpf oeq, %491, %496 : vector<8x128xf32>
    %cst_76 = arith.constant 3.000000e+00 : f32
    %498 = vector.broadcast %cst_76 : f32 to vector<8x128xf32>
    %499 = arith.cmpf oeq, %491, %498 : vector<8x128xf32>
    %cst_77 = arith.constant 4.000000e+00 : f32
    %500 = vector.broadcast %cst_77 : f32 to vector<8x128xf32>
    %501 = arith.cmpf oeq, %491, %500 : vector<8x128xf32>
    %cst_78 = arith.constant 0.000000e+00 : f32
    %502 = vector.broadcast %4 : f32 to vector<8x128xf32>
    %503 = vector.broadcast %cst_78 : f32 to vector<8x128xf32>
    %504 = arith.select %501, %502, %503 : vector<8x128xi1>, vector<8x128xf32>
    %505 = vector.broadcast %3 : f32 to vector<8x128xf32>
    %506 = arith.select %499, %505, %504 : vector<8x128xi1>, vector<8x128xf32>
    %507 = vector.broadcast %2 : f32 to vector<8x128xf32>
    %508 = arith.select %497, %507, %506 : vector<8x128xi1>, vector<8x128xf32>
    %509 = vector.broadcast %1 : f32 to vector<8x128xf32>
    %510 = arith.select %495, %509, %508 : vector<8x128xi1>, vector<8x128xf32>
    %511 = vector.broadcast %0 : f32 to vector<8x128xf32>
    %512 = arith.select %493, %511, %510 : vector<8x128xi1>, vector<8x128xf32>
    %513 = arith.mulf %512, %488 : vector<8x128xf32>
    %514 = math.tanh %513 : vector<8x128xf32>
    %cst_79 = arith.constant 0.000000e+00 : f32
    %515 = vector.broadcast %cst_79 : f32 to vector<8x128xf32>
    %516 = arith.maximumf %514, %515 : vector<8x128xf32>
    %c73 = arith.constant 73 : index
    %517 = memref.load %arg4[%c73] : memref<395xf32, #tpu.memory_space<smem>>
    %518 = vector.broadcast %517 : f32 to vector<8x128xf32>
    %519 = arith.mulf %108, %518 : vector<8x128xf32>
    %c74 = arith.constant 74 : index
    %520 = memref.load %arg4[%c74] : memref<395xf32, #tpu.memory_space<smem>>
    %521 = vector.broadcast %520 : f32 to vector<8x128xf32>
    %522 = arith.mulf %133, %521 : vector<8x128xf32>
    %523 = arith.addf %519, %522 : vector<8x128xf32>
    %c75 = arith.constant 75 : index
    %524 = memref.load %arg4[%c75] : memref<395xf32, #tpu.memory_space<smem>>
    %525 = vector.broadcast %524 : f32 to vector<8x128xf32>
    %526 = arith.mulf %158, %525 : vector<8x128xf32>
    %527 = arith.addf %523, %526 : vector<8x128xf32>
    %c76 = arith.constant 76 : index
    %528 = memref.load %arg4[%c76] : memref<395xf32, #tpu.memory_space<smem>>
    %529 = vector.broadcast %528 : f32 to vector<8x128xf32>
    %530 = arith.mulf %183, %529 : vector<8x128xf32>
    %531 = arith.addf %527, %530 : vector<8x128xf32>
    %c77 = arith.constant 77 : index
    %532 = memref.load %arg4[%c77] : memref<395xf32, #tpu.memory_space<smem>>
    %533 = vector.broadcast %532 : f32 to vector<8x128xf32>
    %534 = arith.mulf %208, %533 : vector<8x128xf32>
    %535 = arith.addf %531, %534 : vector<8x128xf32>
    %c78 = arith.constant 78 : index
    %536 = memref.load %arg4[%c78] : memref<395xf32, #tpu.memory_space<smem>>
    %537 = vector.broadcast %536 : f32 to vector<8x128xf32>
    %538 = arith.mulf %233, %537 : vector<8x128xf32>
    %539 = arith.addf %535, %538 : vector<8x128xf32>
    %c79 = arith.constant 79 : index
    %540 = memref.load %arg4[%c79] : memref<395xf32, #tpu.memory_space<smem>>
    %541 = vector.broadcast %540 : f32 to vector<8x128xf32>
    %542 = arith.mulf %258, %541 : vector<8x128xf32>
    %543 = arith.addf %539, %542 : vector<8x128xf32>
    %c80 = arith.constant 80 : index
    %544 = memref.load %arg4[%c80] : memref<395xf32, #tpu.memory_space<smem>>
    %545 = vector.broadcast %544 : f32 to vector<8x128xf32>
    %546 = arith.mulf %283, %545 : vector<8x128xf32>
    %547 = arith.addf %543, %546 : vector<8x128xf32>
    %c187 = arith.constant 187 : index
    %548 = memref.load %arg4[%c187] : memref<395xf32, #tpu.memory_space<smem>>
    %549 = vector.broadcast %548 : f32 to vector<8x128xf32>
    %550 = arith.addf %547, %549 : vector<8x128xf32>
    %cst_80 = arith.constant 0.000000e+00 : f32
    %551 = vector.broadcast %cst_80 : f32 to vector<8x128xf32>
    %552 = arith.subf %551, %550 : vector<8x128xf32>
    %553 = math.exp %552 : vector<8x128xf32>
    %cst_81 = arith.constant 1.000000e+00 : f32
    %554 = vector.broadcast %cst_81 : f32 to vector<8x128xf32>
    %555 = arith.addf %554, %553 : vector<8x128xf32>
    %cst_82 = arith.constant 1.000000e+00 : f32
    %556 = vector.broadcast %cst_82 : f32 to vector<8x128xf32>
    %557 = arith.divf %556, %555 : vector<8x128xf32>
    %558 = arith.mulf %516, %557 : vector<8x128xf32>
    %c203 = arith.constant 203 : index
    %559 = memref.load %arg4[%c203] : memref<395xf32, #tpu.memory_space<smem>>
    %560 = vector.broadcast %559 : f32 to vector<8x128xf32>
    %561 = arith.mulf %558, %560 : vector<8x128xf32>
    %562 = arith.addf %457, %561 : vector<8x128xf32>
    %c219 = arith.constant 219 : index
    %563 = memref.load %arg4[%c219] : memref<395xf32, #tpu.memory_space<smem>>
    %564 = vector.broadcast %563 : f32 to vector<8x128xf32>
    %565 = arith.mulf %558, %564 : vector<8x128xf32>
    %566 = arith.addf %461, %565 : vector<8x128xf32>
    %c235 = arith.constant 235 : index
    %567 = memref.load %arg4[%c235] : memref<395xf32, #tpu.memory_space<smem>>
    %568 = vector.broadcast %567 : f32 to vector<8x128xf32>
    %569 = arith.mulf %558, %568 : vector<8x128xf32>
    %570 = arith.addf %465, %569 : vector<8x128xf32>
    %c251 = arith.constant 251 : index
    %571 = memref.load %arg4[%c251] : memref<395xf32, #tpu.memory_space<smem>>
    %572 = vector.broadcast %571 : f32 to vector<8x128xf32>
    %573 = arith.mulf %558, %572 : vector<8x128xf32>
    %574 = arith.addf %469, %573 : vector<8x128xf32>
    %c267 = arith.constant 267 : index
    %575 = memref.load %arg4[%c267] : memref<395xf32, #tpu.memory_space<smem>>
    %576 = vector.broadcast %575 : f32 to vector<8x128xf32>
    %577 = arith.mulf %558, %576 : vector<8x128xf32>
    %578 = arith.addf %473, %577 : vector<8x128xf32>
    %c283 = arith.constant 283 : index
    %579 = memref.load %arg4[%c283] : memref<395xf32, #tpu.memory_space<smem>>
    %580 = vector.broadcast %579 : f32 to vector<8x128xf32>
    %581 = arith.mulf %558, %580 : vector<8x128xf32>
    %582 = arith.addf %477, %581 : vector<8x128xf32>
    %c299 = arith.constant 299 : index
    %583 = memref.load %arg4[%c299] : memref<395xf32, #tpu.memory_space<smem>>
    %584 = vector.broadcast %583 : f32 to vector<8x128xf32>
    %585 = arith.mulf %558, %584 : vector<8x128xf32>
    %586 = arith.addf %481, %585 : vector<8x128xf32>
    %c315 = arith.constant 315 : index
    %587 = memref.load %arg4[%c315] : memref<395xf32, #tpu.memory_space<smem>>
    %588 = vector.broadcast %587 : f32 to vector<8x128xf32>
    %589 = arith.mulf %558, %588 : vector<8x128xf32>
    %590 = arith.addf %485, %589 : vector<8x128xf32>
    %c3_83 = arith.constant 3 : index
    %591 = arith.index_cast %6 : i32 to index
    %c0_84 = arith.constant 0 : index
    %592 = vector.load %arg1[%c3_83, %591, %c0_84] : memref<16x8x128xf32, #tpu.memory_space<vmem>>, vector<1x8x128xf32>
    %593 = vector.shape_cast %592 : vector<1x8x128xf32> to vector<8x128xf32>
    %c3_85 = arith.constant 3 : index
    %594 = arith.index_cast %6 : i32 to index
    %c0_86 = arith.constant 0 : index
    %595 = vector.load %arg2[%c3_85, %594, %c0_86] : memref<16x8x128xf32, #tpu.memory_space<vmem>>, vector<1x8x128xf32>
    %596 = vector.shape_cast %595 : vector<1x8x128xf32> to vector<8x128xf32>
    %cst_87 = arith.constant 0.000000e+00 : f32
    %597 = vector.broadcast %cst_87 : f32 to vector<8x128xf32>
    %598 = arith.cmpf oeq, %596, %597 : vector<8x128xf32>
    %cst_88 = arith.constant 1.000000e+00 : f32
    %599 = vector.broadcast %cst_88 : f32 to vector<8x128xf32>
    %600 = arith.cmpf oeq, %596, %599 : vector<8x128xf32>
    %cst_89 = arith.constant 2.000000e+00 : f32
    %601 = vector.broadcast %cst_89 : f32 to vector<8x128xf32>
    %602 = arith.cmpf oeq, %596, %601 : vector<8x128xf32>
    %cst_90 = arith.constant 3.000000e+00 : f32
    %603 = vector.broadcast %cst_90 : f32 to vector<8x128xf32>
    %604 = arith.cmpf oeq, %596, %603 : vector<8x128xf32>
    %cst_91 = arith.constant 4.000000e+00 : f32
    %605 = vector.broadcast %cst_91 : f32 to vector<8x128xf32>
    %606 = arith.cmpf oeq, %596, %605 : vector<8x128xf32>
    %cst_92 = arith.constant 0.000000e+00 : f32
    %607 = vector.broadcast %4 : f32 to vector<8x128xf32>
    %608 = vector.broadcast %cst_92 : f32 to vector<8x128xf32>
    %609 = arith.select %606, %607, %608 : vector<8x128xi1>, vector<8x128xf32>
    %610 = vector.broadcast %3 : f32 to vector<8x128xf32>
    %611 = arith.select %604, %610, %609 : vector<8x128xi1>, vector<8x128xf32>
    %612 = vector.broadcast %2 : f32 to vector<8x128xf32>
    %613 = arith.select %602, %612, %611 : vector<8x128xi1>, vector<8x128xf32>
    %614 = vector.broadcast %1 : f32 to vector<8x128xf32>
    %615 = arith.select %600, %614, %613 : vector<8x128xi1>, vector<8x128xf32>
    %616 = vector.broadcast %0 : f32 to vector<8x128xf32>
    %617 = arith.select %598, %616, %615 : vector<8x128xi1>, vector<8x128xf32>
    %618 = arith.mulf %617, %593 : vector<8x128xf32>
    %619 = math.tanh %618 : vector<8x128xf32>
    %cst_93 = arith.constant 0.000000e+00 : f32
    %620 = vector.broadcast %cst_93 : f32 to vector<8x128xf32>
    %621 = arith.maximumf %619, %620 : vector<8x128xf32>
    %c81 = arith.constant 81 : index
    %622 = memref.load %arg4[%c81] : memref<395xf32, #tpu.memory_space<smem>>
    %623 = vector.broadcast %622 : f32 to vector<8x128xf32>
    %624 = arith.mulf %108, %623 : vector<8x128xf32>
    %c82 = arith.constant 82 : index
    %625 = memref.load %arg4[%c82] : memref<395xf32, #tpu.memory_space<smem>>
    %626 = vector.broadcast %625 : f32 to vector<8x128xf32>
    %627 = arith.mulf %133, %626 : vector<8x128xf32>
    %628 = arith.addf %624, %627 : vector<8x128xf32>
    %c83 = arith.constant 83 : index
    %629 = memref.load %arg4[%c83] : memref<395xf32, #tpu.memory_space<smem>>
    %630 = vector.broadcast %629 : f32 to vector<8x128xf32>
    %631 = arith.mulf %158, %630 : vector<8x128xf32>
    %632 = arith.addf %628, %631 : vector<8x128xf32>
    %c84 = arith.constant 84 : index
    %633 = memref.load %arg4[%c84] : memref<395xf32, #tpu.memory_space<smem>>
    %634 = vector.broadcast %633 : f32 to vector<8x128xf32>
    %635 = arith.mulf %183, %634 : vector<8x128xf32>
    %636 = arith.addf %632, %635 : vector<8x128xf32>
    %c85 = arith.constant 85 : index
    %637 = memref.load %arg4[%c85] : memref<395xf32, #tpu.memory_space<smem>>
    %638 = vector.broadcast %637 : f32 to vector<8x128xf32>
    %639 = arith.mulf %208, %638 : vector<8x128xf32>
    %640 = arith.addf %636, %639 : vector<8x128xf32>
    %c86 = arith.constant 86 : index
    %641 = memref.load %arg4[%c86] : memref<395xf32, #tpu.memory_space<smem>>
    %642 = vector.broadcast %641 : f32 to vector<8x128xf32>
    %643 = arith.mulf %233, %642 : vector<8x128xf32>
    %644 = arith.addf %640, %643 : vector<8x128xf32>
    %c87 = arith.constant 87 : index
    %645 = memref.load %arg4[%c87] : memref<395xf32, #tpu.memory_space<smem>>
    %646 = vector.broadcast %645 : f32 to vector<8x128xf32>
    %647 = arith.mulf %258, %646 : vector<8x128xf32>
    %648 = arith.addf %644, %647 : vector<8x128xf32>
    %c88 = arith.constant 88 : index
    %649 = memref.load %arg4[%c88] : memref<395xf32, #tpu.memory_space<smem>>
    %650 = vector.broadcast %649 : f32 to vector<8x128xf32>
    %651 = arith.mulf %283, %650 : vector<8x128xf32>
    %652 = arith.addf %648, %651 : vector<8x128xf32>
    %c188 = arith.constant 188 : index
    %653 = memref.load %arg4[%c188] : memref<395xf32, #tpu.memory_space<smem>>
    %654 = vector.broadcast %653 : f32 to vector<8x128xf32>
    %655 = arith.addf %652, %654 : vector<8x128xf32>
    %cst_94 = arith.constant 0.000000e+00 : f32
    %656 = vector.broadcast %cst_94 : f32 to vector<8x128xf32>
    %657 = arith.subf %656, %655 : vector<8x128xf32>
    %658 = math.exp %657 : vector<8x128xf32>
    %cst_95 = arith.constant 1.000000e+00 : f32
    %659 = vector.broadcast %cst_95 : f32 to vector<8x128xf32>
    %660 = arith.addf %659, %658 : vector<8x128xf32>
    %cst_96 = arith.constant 1.000000e+00 : f32
    %661 = vector.broadcast %cst_96 : f32 to vector<8x128xf32>
    %662 = arith.divf %661, %660 : vector<8x128xf32>
    %663 = arith.mulf %621, %662 : vector<8x128xf32>
    %c204 = arith.constant 204 : index
    %664 = memref.load %arg4[%c204] : memref<395xf32, #tpu.memory_space<smem>>
    %665 = vector.broadcast %664 : f32 to vector<8x128xf32>
    %666 = arith.mulf %663, %665 : vector<8x128xf32>
    %667 = arith.addf %562, %666 : vector<8x128xf32>
    %c220 = arith.constant 220 : index
    %668 = memref.load %arg4[%c220] : memref<395xf32, #tpu.memory_space<smem>>
    %669 = vector.broadcast %668 : f32 to vector<8x128xf32>
    %670 = arith.mulf %663, %669 : vector<8x128xf32>
    %671 = arith.addf %566, %670 : vector<8x128xf32>
    %c236 = arith.constant 236 : index
    %672 = memref.load %arg4[%c236] : memref<395xf32, #tpu.memory_space<smem>>
    %673 = vector.broadcast %672 : f32 to vector<8x128xf32>
    %674 = arith.mulf %663, %673 : vector<8x128xf32>
    %675 = arith.addf %570, %674 : vector<8x128xf32>
    %c252 = arith.constant 252 : index
    %676 = memref.load %arg4[%c252] : memref<395xf32, #tpu.memory_space<smem>>
    %677 = vector.broadcast %676 : f32 to vector<8x128xf32>
    %678 = arith.mulf %663, %677 : vector<8x128xf32>
    %679 = arith.addf %574, %678 : vector<8x128xf32>
    %c268 = arith.constant 268 : index
    %680 = memref.load %arg4[%c268] : memref<395xf32, #tpu.memory_space<smem>>
    %681 = vector.broadcast %680 : f32 to vector<8x128xf32>
    %682 = arith.mulf %663, %681 : vector<8x128xf32>
    %683 = arith.addf %578, %682 : vector<8x128xf32>
    %c284 = arith.constant 284 : index
    %684 = memref.load %arg4[%c284] : memref<395xf32, #tpu.memory_space<smem>>
    %685 = vector.broadcast %684 : f32 to vector<8x128xf32>
    %686 = arith.mulf %663, %685 : vector<8x128xf32>
    %687 = arith.addf %582, %686 : vector<8x128xf32>
    %c300 = arith.constant 300 : index
    %688 = memref.load %arg4[%c300] : memref<395xf32, #tpu.memory_space<smem>>
    %689 = vector.broadcast %688 : f32 to vector<8x128xf32>
    %690 = arith.mulf %663, %689 : vector<8x128xf32>
    %691 = arith.addf %586, %690 : vector<8x128xf32>
    %c316 = arith.constant 316 : index
    %692 = memref.load %arg4[%c316] : memref<395xf32, #tpu.memory_space<smem>>
    %693 = vector.broadcast %692 : f32 to vector<8x128xf32>
    %694 = arith.mulf %663, %693 : vector<8x128xf32>
    %695 = arith.addf %590, %694 : vector<8x128xf32>
    %c4_97 = arith.constant 4 : index
    %696 = arith.index_cast %6 : i32 to index
    %c0_98 = arith.constant 0 : index
    %697 = vector.load %arg1[%c4_97, %696, %c0_98] : memref<16x8x128xf32, #tpu.memory_space<vmem>>, vector<1x8x128xf32>
    %698 = vector.shape_cast %697 : vector<1x8x128xf32> to vector<8x128xf32>
    %c4_99 = arith.constant 4 : index
    %699 = arith.index_cast %6 : i32 to index
    %c0_100 = arith.constant 0 : index
    %700 = vector.load %arg2[%c4_99, %699, %c0_100] : memref<16x8x128xf32, #tpu.memory_space<vmem>>, vector<1x8x128xf32>
    %701 = vector.shape_cast %700 : vector<1x8x128xf32> to vector<8x128xf32>
    %cst_101 = arith.constant 0.000000e+00 : f32
    %702 = vector.broadcast %cst_101 : f32 to vector<8x128xf32>
    %703 = arith.cmpf oeq, %701, %702 : vector<8x128xf32>
    %cst_102 = arith.constant 1.000000e+00 : f32
    %704 = vector.broadcast %cst_102 : f32 to vector<8x128xf32>
    %705 = arith.cmpf oeq, %701, %704 : vector<8x128xf32>
    %cst_103 = arith.constant 2.000000e+00 : f32
    %706 = vector.broadcast %cst_103 : f32 to vector<8x128xf32>
    %707 = arith.cmpf oeq, %701, %706 : vector<8x128xf32>
    %cst_104 = arith.constant 3.000000e+00 : f32
    %708 = vector.broadcast %cst_104 : f32 to vector<8x128xf32>
    %709 = arith.cmpf oeq, %701, %708 : vector<8x128xf32>
    %cst_105 = arith.constant 4.000000e+00 : f32
    %710 = vector.broadcast %cst_105 : f32 to vector<8x128xf32>
    %711 = arith.cmpf oeq, %701, %710 : vector<8x128xf32>
    %cst_106 = arith.constant 0.000000e+00 : f32
    %712 = vector.broadcast %4 : f32 to vector<8x128xf32>
    %713 = vector.broadcast %cst_106 : f32 to vector<8x128xf32>
    %714 = arith.select %711, %712, %713 : vector<8x128xi1>, vector<8x128xf32>
    %715 = vector.broadcast %3 : f32 to vector<8x128xf32>
    %716 = arith.select %709, %715, %714 : vector<8x128xi1>, vector<8x128xf32>
    %717 = vector.broadcast %2 : f32 to vector<8x128xf32>
    %718 = arith.select %707, %717, %716 : vector<8x128xi1>, vector<8x128xf32>
    %719 = vector.broadcast %1 : f32 to vector<8x128xf32>
    %720 = arith.select %705, %719, %718 : vector<8x128xi1>, vector<8x128xf32>
    %721 = vector.broadcast %0 : f32 to vector<8x128xf32>
    %722 = arith.select %703, %721, %720 : vector<8x128xi1>, vector<8x128xf32>
    %723 = arith.mulf %722, %698 : vector<8x128xf32>
    %724 = math.tanh %723 : vector<8x128xf32>
    %cst_107 = arith.constant 0.000000e+00 : f32
    %725 = vector.broadcast %cst_107 : f32 to vector<8x128xf32>
    %726 = arith.maximumf %724, %725 : vector<8x128xf32>
    %c89 = arith.constant 89 : index
    %727 = memref.load %arg4[%c89] : memref<395xf32, #tpu.memory_space<smem>>
    %728 = vector.broadcast %727 : f32 to vector<8x128xf32>
    %729 = arith.mulf %108, %728 : vector<8x128xf32>
    %c90 = arith.constant 90 : index
    %730 = memref.load %arg4[%c90] : memref<395xf32, #tpu.memory_space<smem>>
    %731 = vector.broadcast %730 : f32 to vector<8x128xf32>
    %732 = arith.mulf %133, %731 : vector<8x128xf32>
    %733 = arith.addf %729, %732 : vector<8x128xf32>
    %c91 = arith.constant 91 : index
    %734 = memref.load %arg4[%c91] : memref<395xf32, #tpu.memory_space<smem>>
    %735 = vector.broadcast %734 : f32 to vector<8x128xf32>
    %736 = arith.mulf %158, %735 : vector<8x128xf32>
    %737 = arith.addf %733, %736 : vector<8x128xf32>
    %c92 = arith.constant 92 : index
    %738 = memref.load %arg4[%c92] : memref<395xf32, #tpu.memory_space<smem>>
    %739 = vector.broadcast %738 : f32 to vector<8x128xf32>
    %740 = arith.mulf %183, %739 : vector<8x128xf32>
    %741 = arith.addf %737, %740 : vector<8x128xf32>
    %c93 = arith.constant 93 : index
    %742 = memref.load %arg4[%c93] : memref<395xf32, #tpu.memory_space<smem>>
    %743 = vector.broadcast %742 : f32 to vector<8x128xf32>
    %744 = arith.mulf %208, %743 : vector<8x128xf32>
    %745 = arith.addf %741, %744 : vector<8x128xf32>
    %c94 = arith.constant 94 : index
    %746 = memref.load %arg4[%c94] : memref<395xf32, #tpu.memory_space<smem>>
    %747 = vector.broadcast %746 : f32 to vector<8x128xf32>
    %748 = arith.mulf %233, %747 : vector<8x128xf32>
    %749 = arith.addf %745, %748 : vector<8x128xf32>
    %c95 = arith.constant 95 : index
    %750 = memref.load %arg4[%c95] : memref<395xf32, #tpu.memory_space<smem>>
    %751 = vector.broadcast %750 : f32 to vector<8x128xf32>
    %752 = arith.mulf %258, %751 : vector<8x128xf32>
    %753 = arith.addf %749, %752 : vector<8x128xf32>
    %c96 = arith.constant 96 : index
    %754 = memref.load %arg4[%c96] : memref<395xf32, #tpu.memory_space<smem>>
    %755 = vector.broadcast %754 : f32 to vector<8x128xf32>
    %756 = arith.mulf %283, %755 : vector<8x128xf32>
    %757 = arith.addf %753, %756 : vector<8x128xf32>
    %c189 = arith.constant 189 : index
    %758 = memref.load %arg4[%c189] : memref<395xf32, #tpu.memory_space<smem>>
    %759 = vector.broadcast %758 : f32 to vector<8x128xf32>
    %760 = arith.addf %757, %759 : vector<8x128xf32>
    %cst_108 = arith.constant 0.000000e+00 : f32
    %761 = vector.broadcast %cst_108 : f32 to vector<8x128xf32>
    %762 = arith.subf %761, %760 : vector<8x128xf32>
    %763 = math.exp %762 : vector<8x128xf32>
    %cst_109 = arith.constant 1.000000e+00 : f32
    %764 = vector.broadcast %cst_109 : f32 to vector<8x128xf32>
    %765 = arith.addf %764, %763 : vector<8x128xf32>
    %cst_110 = arith.constant 1.000000e+00 : f32
    %766 = vector.broadcast %cst_110 : f32 to vector<8x128xf32>
    %767 = arith.divf %766, %765 : vector<8x128xf32>
    %768 = arith.mulf %726, %767 : vector<8x128xf32>
    %c205 = arith.constant 205 : index
    %769 = memref.load %arg4[%c205] : memref<395xf32, #tpu.memory_space<smem>>
    %770 = vector.broadcast %769 : f32 to vector<8x128xf32>
    %771 = arith.mulf %768, %770 : vector<8x128xf32>
    %772 = arith.addf %667, %771 : vector<8x128xf32>
    %c221 = arith.constant 221 : index
    %773 = memref.load %arg4[%c221] : memref<395xf32, #tpu.memory_space<smem>>
    %774 = vector.broadcast %773 : f32 to vector<8x128xf32>
    %775 = arith.mulf %768, %774 : vector<8x128xf32>
    %776 = arith.addf %671, %775 : vector<8x128xf32>
    %c237 = arith.constant 237 : index
    %777 = memref.load %arg4[%c237] : memref<395xf32, #tpu.memory_space<smem>>
    %778 = vector.broadcast %777 : f32 to vector<8x128xf32>
    %779 = arith.mulf %768, %778 : vector<8x128xf32>
    %780 = arith.addf %675, %779 : vector<8x128xf32>
    %c253 = arith.constant 253 : index
    %781 = memref.load %arg4[%c253] : memref<395xf32, #tpu.memory_space<smem>>
    %782 = vector.broadcast %781 : f32 to vector<8x128xf32>
    %783 = arith.mulf %768, %782 : vector<8x128xf32>
    %784 = arith.addf %679, %783 : vector<8x128xf32>
    %c269 = arith.constant 269 : index
    %785 = memref.load %arg4[%c269] : memref<395xf32, #tpu.memory_space<smem>>
    %786 = vector.broadcast %785 : f32 to vector<8x128xf32>
    %787 = arith.mulf %768, %786 : vector<8x128xf32>
    %788 = arith.addf %683, %787 : vector<8x128xf32>
    %c285 = arith.constant 285 : index
    %789 = memref.load %arg4[%c285] : memref<395xf32, #tpu.memory_space<smem>>
    %790 = vector.broadcast %789 : f32 to vector<8x128xf32>
    %791 = arith.mulf %768, %790 : vector<8x128xf32>
    %792 = arith.addf %687, %791 : vector<8x128xf32>
    %c301 = arith.constant 301 : index
    %793 = memref.load %arg4[%c301] : memref<395xf32, #tpu.memory_space<smem>>
    %794 = vector.broadcast %793 : f32 to vector<8x128xf32>
    %795 = arith.mulf %768, %794 : vector<8x128xf32>
    %796 = arith.addf %691, %795 : vector<8x128xf32>
    %c317 = arith.constant 317 : index
    %797 = memref.load %arg4[%c317] : memref<395xf32, #tpu.memory_space<smem>>
    %798 = vector.broadcast %797 : f32 to vector<8x128xf32>
    %799 = arith.mulf %768, %798 : vector<8x128xf32>
    %800 = arith.addf %695, %799 : vector<8x128xf32>
    %c5_111 = arith.constant 5 : index
    %801 = arith.index_cast %6 : i32 to index
    %c0_112 = arith.constant 0 : index
    %802 = vector.load %arg1[%c5_111, %801, %c0_112] : memref<16x8x128xf32, #tpu.memory_space<vmem>>, vector<1x8x128xf32>
    %803 = vector.shape_cast %802 : vector<1x8x128xf32> to vector<8x128xf32>
    %c5_113 = arith.constant 5 : index
    %804 = arith.index_cast %6 : i32 to index
    %c0_114 = arith.constant 0 : index
    %805 = vector.load %arg2[%c5_113, %804, %c0_114] : memref<16x8x128xf32, #tpu.memory_space<vmem>>, vector<1x8x128xf32>
    %806 = vector.shape_cast %805 : vector<1x8x128xf32> to vector<8x128xf32>
    %cst_115 = arith.constant 0.000000e+00 : f32
    %807 = vector.broadcast %cst_115 : f32 to vector<8x128xf32>
    %808 = arith.cmpf oeq, %806, %807 : vector<8x128xf32>
    %cst_116 = arith.constant 1.000000e+00 : f32
    %809 = vector.broadcast %cst_116 : f32 to vector<8x128xf32>
    %810 = arith.cmpf oeq, %806, %809 : vector<8x128xf32>
    %cst_117 = arith.constant 2.000000e+00 : f32
    %811 = vector.broadcast %cst_117 : f32 to vector<8x128xf32>
    %812 = arith.cmpf oeq, %806, %811 : vector<8x128xf32>
    %cst_118 = arith.constant 3.000000e+00 : f32
    %813 = vector.broadcast %cst_118 : f32 to vector<8x128xf32>
    %814 = arith.cmpf oeq, %806, %813 : vector<8x128xf32>
    %cst_119 = arith.constant 4.000000e+00 : f32
    %815 = vector.broadcast %cst_119 : f32 to vector<8x128xf32>
    %816 = arith.cmpf oeq, %806, %815 : vector<8x128xf32>
    %cst_120 = arith.constant 0.000000e+00 : f32
    %817 = vector.broadcast %4 : f32 to vector<8x128xf32>
    %818 = vector.broadcast %cst_120 : f32 to vector<8x128xf32>
    %819 = arith.select %816, %817, %818 : vector<8x128xi1>, vector<8x128xf32>
    %820 = vector.broadcast %3 : f32 to vector<8x128xf32>
    %821 = arith.select %814, %820, %819 : vector<8x128xi1>, vector<8x128xf32>
    %822 = vector.broadcast %2 : f32 to vector<8x128xf32>
    %823 = arith.select %812, %822, %821 : vector<8x128xi1>, vector<8x128xf32>
    %824 = vector.broadcast %1 : f32 to vector<8x128xf32>
    %825 = arith.select %810, %824, %823 : vector<8x128xi1>, vector<8x128xf32>
    %826 = vector.broadcast %0 : f32 to vector<8x128xf32>
    %827 = arith.select %808, %826, %825 : vector<8x128xi1>, vector<8x128xf32>
    %828 = arith.mulf %827, %803 : vector<8x128xf32>
    %829 = math.tanh %828 : vector<8x128xf32>
    %cst_121 = arith.constant 0.000000e+00 : f32
    %830 = vector.broadcast %cst_121 : f32 to vector<8x128xf32>
    %831 = arith.maximumf %829, %830 : vector<8x128xf32>
    %c97 = arith.constant 97 : index
    %832 = memref.load %arg4[%c97] : memref<395xf32, #tpu.memory_space<smem>>
    %833 = vector.broadcast %832 : f32 to vector<8x128xf32>
    %834 = arith.mulf %108, %833 : vector<8x128xf32>
    %c98 = arith.constant 98 : index
    %835 = memref.load %arg4[%c98] : memref<395xf32, #tpu.memory_space<smem>>
    %836 = vector.broadcast %835 : f32 to vector<8x128xf32>
    %837 = arith.mulf %133, %836 : vector<8x128xf32>
    %838 = arith.addf %834, %837 : vector<8x128xf32>
    %c99 = arith.constant 99 : index
    %839 = memref.load %arg4[%c99] : memref<395xf32, #tpu.memory_space<smem>>
    %840 = vector.broadcast %839 : f32 to vector<8x128xf32>
    %841 = arith.mulf %158, %840 : vector<8x128xf32>
    %842 = arith.addf %838, %841 : vector<8x128xf32>
    %c100 = arith.constant 100 : index
    %843 = memref.load %arg4[%c100] : memref<395xf32, #tpu.memory_space<smem>>
    %844 = vector.broadcast %843 : f32 to vector<8x128xf32>
    %845 = arith.mulf %183, %844 : vector<8x128xf32>
    %846 = arith.addf %842, %845 : vector<8x128xf32>
    %c101 = arith.constant 101 : index
    %847 = memref.load %arg4[%c101] : memref<395xf32, #tpu.memory_space<smem>>
    %848 = vector.broadcast %847 : f32 to vector<8x128xf32>
    %849 = arith.mulf %208, %848 : vector<8x128xf32>
    %850 = arith.addf %846, %849 : vector<8x128xf32>
    %c102 = arith.constant 102 : index
    %851 = memref.load %arg4[%c102] : memref<395xf32, #tpu.memory_space<smem>>
    %852 = vector.broadcast %851 : f32 to vector<8x128xf32>
    %853 = arith.mulf %233, %852 : vector<8x128xf32>
    %854 = arith.addf %850, %853 : vector<8x128xf32>
    %c103 = arith.constant 103 : index
    %855 = memref.load %arg4[%c103] : memref<395xf32, #tpu.memory_space<smem>>
    %856 = vector.broadcast %855 : f32 to vector<8x128xf32>
    %857 = arith.mulf %258, %856 : vector<8x128xf32>
    %858 = arith.addf %854, %857 : vector<8x128xf32>
    %c104 = arith.constant 104 : index
    %859 = memref.load %arg4[%c104] : memref<395xf32, #tpu.memory_space<smem>>
    %860 = vector.broadcast %859 : f32 to vector<8x128xf32>
    %861 = arith.mulf %283, %860 : vector<8x128xf32>
    %862 = arith.addf %858, %861 : vector<8x128xf32>
    %c190 = arith.constant 190 : index
    %863 = memref.load %arg4[%c190] : memref<395xf32, #tpu.memory_space<smem>>
    %864 = vector.broadcast %863 : f32 to vector<8x128xf32>
    %865 = arith.addf %862, %864 : vector<8x128xf32>
    %cst_122 = arith.constant 0.000000e+00 : f32
    %866 = vector.broadcast %cst_122 : f32 to vector<8x128xf32>
    %867 = arith.subf %866, %865 : vector<8x128xf32>
    %868 = math.exp %867 : vector<8x128xf32>
    %cst_123 = arith.constant 1.000000e+00 : f32
    %869 = vector.broadcast %cst_123 : f32 to vector<8x128xf32>
    %870 = arith.addf %869, %868 : vector<8x128xf32>
    %cst_124 = arith.constant 1.000000e+00 : f32
    %871 = vector.broadcast %cst_124 : f32 to vector<8x128xf32>
    %872 = arith.divf %871, %870 : vector<8x128xf32>
    %873 = arith.mulf %831, %872 : vector<8x128xf32>
    %c206 = arith.constant 206 : index
    %874 = memref.load %arg4[%c206] : memref<395xf32, #tpu.memory_space<smem>>
    %875 = vector.broadcast %874 : f32 to vector<8x128xf32>
    %876 = arith.mulf %873, %875 : vector<8x128xf32>
    %877 = arith.addf %772, %876 : vector<8x128xf32>
    %c222 = arith.constant 222 : index
    %878 = memref.load %arg4[%c222] : memref<395xf32, #tpu.memory_space<smem>>
    %879 = vector.broadcast %878 : f32 to vector<8x128xf32>
    %880 = arith.mulf %873, %879 : vector<8x128xf32>
    %881 = arith.addf %776, %880 : vector<8x128xf32>
    %c238 = arith.constant 238 : index
    %882 = memref.load %arg4[%c238] : memref<395xf32, #tpu.memory_space<smem>>
    %883 = vector.broadcast %882 : f32 to vector<8x128xf32>
    %884 = arith.mulf %873, %883 : vector<8x128xf32>
    %885 = arith.addf %780, %884 : vector<8x128xf32>
    %c254 = arith.constant 254 : index
    %886 = memref.load %arg4[%c254] : memref<395xf32, #tpu.memory_space<smem>>
    %887 = vector.broadcast %886 : f32 to vector<8x128xf32>
    %888 = arith.mulf %873, %887 : vector<8x128xf32>
    %889 = arith.addf %784, %888 : vector<8x128xf32>
    %c270 = arith.constant 270 : index
    %890 = memref.load %arg4[%c270] : memref<395xf32, #tpu.memory_space<smem>>
    %891 = vector.broadcast %890 : f32 to vector<8x128xf32>
    %892 = arith.mulf %873, %891 : vector<8x128xf32>
    %893 = arith.addf %788, %892 : vector<8x128xf32>
    %c286 = arith.constant 286 : index
    %894 = memref.load %arg4[%c286] : memref<395xf32, #tpu.memory_space<smem>>
    %895 = vector.broadcast %894 : f32 to vector<8x128xf32>
    %896 = arith.mulf %873, %895 : vector<8x128xf32>
    %897 = arith.addf %792, %896 : vector<8x128xf32>
    %c302 = arith.constant 302 : index
    %898 = memref.load %arg4[%c302] : memref<395xf32, #tpu.memory_space<smem>>
    %899 = vector.broadcast %898 : f32 to vector<8x128xf32>
    %900 = arith.mulf %873, %899 : vector<8x128xf32>
    %901 = arith.addf %796, %900 : vector<8x128xf32>
    %c318 = arith.constant 318 : index
    %902 = memref.load %arg4[%c318] : memref<395xf32, #tpu.memory_space<smem>>
    %903 = vector.broadcast %902 : f32 to vector<8x128xf32>
    %904 = arith.mulf %873, %903 : vector<8x128xf32>
    %905 = arith.addf %800, %904 : vector<8x128xf32>
    %c6_125 = arith.constant 6 : index
    %906 = arith.index_cast %6 : i32 to index
    %c0_126 = arith.constant 0 : index
    %907 = vector.load %arg1[%c6_125, %906, %c0_126] : memref<16x8x128xf32, #tpu.memory_space<vmem>>, vector<1x8x128xf32>
    %908 = vector.shape_cast %907 : vector<1x8x128xf32> to vector<8x128xf32>
    %c6_127 = arith.constant 6 : index
    %909 = arith.index_cast %6 : i32 to index
    %c0_128 = arith.constant 0 : index
    %910 = vector.load %arg2[%c6_127, %909, %c0_128] : memref<16x8x128xf32, #tpu.memory_space<vmem>>, vector<1x8x128xf32>
    %911 = vector.shape_cast %910 : vector<1x8x128xf32> to vector<8x128xf32>
    %cst_129 = arith.constant 0.000000e+00 : f32
    %912 = vector.broadcast %cst_129 : f32 to vector<8x128xf32>
    %913 = arith.cmpf oeq, %911, %912 : vector<8x128xf32>
    %cst_130 = arith.constant 1.000000e+00 : f32
    %914 = vector.broadcast %cst_130 : f32 to vector<8x128xf32>
    %915 = arith.cmpf oeq, %911, %914 : vector<8x128xf32>
    %cst_131 = arith.constant 2.000000e+00 : f32
    %916 = vector.broadcast %cst_131 : f32 to vector<8x128xf32>
    %917 = arith.cmpf oeq, %911, %916 : vector<8x128xf32>
    %cst_132 = arith.constant 3.000000e+00 : f32
    %918 = vector.broadcast %cst_132 : f32 to vector<8x128xf32>
    %919 = arith.cmpf oeq, %911, %918 : vector<8x128xf32>
    %cst_133 = arith.constant 4.000000e+00 : f32
    %920 = vector.broadcast %cst_133 : f32 to vector<8x128xf32>
    %921 = arith.cmpf oeq, %911, %920 : vector<8x128xf32>
    %cst_134 = arith.constant 0.000000e+00 : f32
    %922 = vector.broadcast %4 : f32 to vector<8x128xf32>
    %923 = vector.broadcast %cst_134 : f32 to vector<8x128xf32>
    %924 = arith.select %921, %922, %923 : vector<8x128xi1>, vector<8x128xf32>
    %925 = vector.broadcast %3 : f32 to vector<8x128xf32>
    %926 = arith.select %919, %925, %924 : vector<8x128xi1>, vector<8x128xf32>
    %927 = vector.broadcast %2 : f32 to vector<8x128xf32>
    %928 = arith.select %917, %927, %926 : vector<8x128xi1>, vector<8x128xf32>
    %929 = vector.broadcast %1 : f32 to vector<8x128xf32>
    %930 = arith.select %915, %929, %928 : vector<8x128xi1>, vector<8x128xf32>
    %931 = vector.broadcast %0 : f32 to vector<8x128xf32>
    %932 = arith.select %913, %931, %930 : vector<8x128xi1>, vector<8x128xf32>
    %933 = arith.mulf %932, %908 : vector<8x128xf32>
    %934 = math.tanh %933 : vector<8x128xf32>
    %cst_135 = arith.constant 0.000000e+00 : f32
    %935 = vector.broadcast %cst_135 : f32 to vector<8x128xf32>
    %936 = arith.maximumf %934, %935 : vector<8x128xf32>
    %c105 = arith.constant 105 : index
    %937 = memref.load %arg4[%c105] : memref<395xf32, #tpu.memory_space<smem>>
    %938 = vector.broadcast %937 : f32 to vector<8x128xf32>
    %939 = arith.mulf %108, %938 : vector<8x128xf32>
    %c106 = arith.constant 106 : index
    %940 = memref.load %arg4[%c106] : memref<395xf32, #tpu.memory_space<smem>>
    %941 = vector.broadcast %940 : f32 to vector<8x128xf32>
    %942 = arith.mulf %133, %941 : vector<8x128xf32>
    %943 = arith.addf %939, %942 : vector<8x128xf32>
    %c107 = arith.constant 107 : index
    %944 = memref.load %arg4[%c107] : memref<395xf32, #tpu.memory_space<smem>>
    %945 = vector.broadcast %944 : f32 to vector<8x128xf32>
    %946 = arith.mulf %158, %945 : vector<8x128xf32>
    %947 = arith.addf %943, %946 : vector<8x128xf32>
    %c108 = arith.constant 108 : index
    %948 = memref.load %arg4[%c108] : memref<395xf32, #tpu.memory_space<smem>>
    %949 = vector.broadcast %948 : f32 to vector<8x128xf32>
    %950 = arith.mulf %183, %949 : vector<8x128xf32>
    %951 = arith.addf %947, %950 : vector<8x128xf32>
    %c109 = arith.constant 109 : index
    %952 = memref.load %arg4[%c109] : memref<395xf32, #tpu.memory_space<smem>>
    %953 = vector.broadcast %952 : f32 to vector<8x128xf32>
    %954 = arith.mulf %208, %953 : vector<8x128xf32>
    %955 = arith.addf %951, %954 : vector<8x128xf32>
    %c110 = arith.constant 110 : index
    %956 = memref.load %arg4[%c110] : memref<395xf32, #tpu.memory_space<smem>>
    %957 = vector.broadcast %956 : f32 to vector<8x128xf32>
    %958 = arith.mulf %233, %957 : vector<8x128xf32>
    %959 = arith.addf %955, %958 : vector<8x128xf32>
    %c111 = arith.constant 111 : index
    %960 = memref.load %arg4[%c111] : memref<395xf32, #tpu.memory_space<smem>>
    %961 = vector.broadcast %960 : f32 to vector<8x128xf32>
    %962 = arith.mulf %258, %961 : vector<8x128xf32>
    %963 = arith.addf %959, %962 : vector<8x128xf32>
    %c112 = arith.constant 112 : index
    %964 = memref.load %arg4[%c112] : memref<395xf32, #tpu.memory_space<smem>>
    %965 = vector.broadcast %964 : f32 to vector<8x128xf32>
    %966 = arith.mulf %283, %965 : vector<8x128xf32>
    %967 = arith.addf %963, %966 : vector<8x128xf32>
    %c191 = arith.constant 191 : index
    %968 = memref.load %arg4[%c191] : memref<395xf32, #tpu.memory_space<smem>>
    %969 = vector.broadcast %968 : f32 to vector<8x128xf32>
    %970 = arith.addf %967, %969 : vector<8x128xf32>
    %cst_136 = arith.constant 0.000000e+00 : f32
    %971 = vector.broadcast %cst_136 : f32 to vector<8x128xf32>
    %972 = arith.subf %971, %970 : vector<8x128xf32>
    %973 = math.exp %972 : vector<8x128xf32>
    %cst_137 = arith.constant 1.000000e+00 : f32
    %974 = vector.broadcast %cst_137 : f32 to vector<8x128xf32>
    %975 = arith.addf %974, %973 : vector<8x128xf32>
    %cst_138 = arith.constant 1.000000e+00 : f32
    %976 = vector.broadcast %cst_138 : f32 to vector<8x128xf32>
    %977 = arith.divf %976, %975 : vector<8x128xf32>
    %978 = arith.mulf %936, %977 : vector<8x128xf32>
    %c207 = arith.constant 207 : index
    %979 = memref.load %arg4[%c207] : memref<395xf32, #tpu.memory_space<smem>>
    %980 = vector.broadcast %979 : f32 to vector<8x128xf32>
    %981 = arith.mulf %978, %980 : vector<8x128xf32>
    %982 = arith.addf %877, %981 : vector<8x128xf32>
    %c223 = arith.constant 223 : index
    %983 = memref.load %arg4[%c223] : memref<395xf32, #tpu.memory_space<smem>>
    %984 = vector.broadcast %983 : f32 to vector<8x128xf32>
    %985 = arith.mulf %978, %984 : vector<8x128xf32>
    %986 = arith.addf %881, %985 : vector<8x128xf32>
    %c239 = arith.constant 239 : index
    %987 = memref.load %arg4[%c239] : memref<395xf32, #tpu.memory_space<smem>>
    %988 = vector.broadcast %987 : f32 to vector<8x128xf32>
    %989 = arith.mulf %978, %988 : vector<8x128xf32>
    %990 = arith.addf %885, %989 : vector<8x128xf32>
    %c255 = arith.constant 255 : index
    %991 = memref.load %arg4[%c255] : memref<395xf32, #tpu.memory_space<smem>>
    %992 = vector.broadcast %991 : f32 to vector<8x128xf32>
    %993 = arith.mulf %978, %992 : vector<8x128xf32>
    %994 = arith.addf %889, %993 : vector<8x128xf32>
    %c271 = arith.constant 271 : index
    %995 = memref.load %arg4[%c271] : memref<395xf32, #tpu.memory_space<smem>>
    %996 = vector.broadcast %995 : f32 to vector<8x128xf32>
    %997 = arith.mulf %978, %996 : vector<8x128xf32>
    %998 = arith.addf %893, %997 : vector<8x128xf32>
    %c287 = arith.constant 287 : index
    %999 = memref.load %arg4[%c287] : memref<395xf32, #tpu.memory_space<smem>>
    %1000 = vector.broadcast %999 : f32 to vector<8x128xf32>
    %1001 = arith.mulf %978, %1000 : vector<8x128xf32>
    %1002 = arith.addf %897, %1001 : vector<8x128xf32>
    %c303 = arith.constant 303 : index
    %1003 = memref.load %arg4[%c303] : memref<395xf32, #tpu.memory_space<smem>>
    %1004 = vector.broadcast %1003 : f32 to vector<8x128xf32>
    %1005 = arith.mulf %978, %1004 : vector<8x128xf32>
    %1006 = arith.addf %901, %1005 : vector<8x128xf32>
    %c319 = arith.constant 319 : index
    %1007 = memref.load %arg4[%c319] : memref<395xf32, #tpu.memory_space<smem>>
    %1008 = vector.broadcast %1007 : f32 to vector<8x128xf32>
    %1009 = arith.mulf %978, %1008 : vector<8x128xf32>
    %1010 = arith.addf %905, %1009 : vector<8x128xf32>
    %c7_139 = arith.constant 7 : index
    %1011 = arith.index_cast %6 : i32 to index
    %c0_140 = arith.constant 0 : index
    %1012 = vector.load %arg1[%c7_139, %1011, %c0_140] : memref<16x8x128xf32, #tpu.memory_space<vmem>>, vector<1x8x128xf32>
    %1013 = vector.shape_cast %1012 : vector<1x8x128xf32> to vector<8x128xf32>
    %c7_141 = arith.constant 7 : index
    %1014 = arith.index_cast %6 : i32 to index
    %c0_142 = arith.constant 0 : index
    %1015 = vector.load %arg2[%c7_141, %1014, %c0_142] : memref<16x8x128xf32, #tpu.memory_space<vmem>>, vector<1x8x128xf32>
    %1016 = vector.shape_cast %1015 : vector<1x8x128xf32> to vector<8x128xf32>
    %cst_143 = arith.constant 0.000000e+00 : f32
    %1017 = vector.broadcast %cst_143 : f32 to vector<8x128xf32>
    %1018 = arith.cmpf oeq, %1016, %1017 : vector<8x128xf32>
    %cst_144 = arith.constant 1.000000e+00 : f32
    %1019 = vector.broadcast %cst_144 : f32 to vector<8x128xf32>
    %1020 = arith.cmpf oeq, %1016, %1019 : vector<8x128xf32>
    %cst_145 = arith.constant 2.000000e+00 : f32
    %1021 = vector.broadcast %cst_145 : f32 to vector<8x128xf32>
    %1022 = arith.cmpf oeq, %1016, %1021 : vector<8x128xf32>
    %cst_146 = arith.constant 3.000000e+00 : f32
    %1023 = vector.broadcast %cst_146 : f32 to vector<8x128xf32>
    %1024 = arith.cmpf oeq, %1016, %1023 : vector<8x128xf32>
    %cst_147 = arith.constant 4.000000e+00 : f32
    %1025 = vector.broadcast %cst_147 : f32 to vector<8x128xf32>
    %1026 = arith.cmpf oeq, %1016, %1025 : vector<8x128xf32>
    %cst_148 = arith.constant 0.000000e+00 : f32
    %1027 = vector.broadcast %4 : f32 to vector<8x128xf32>
    %1028 = vector.broadcast %cst_148 : f32 to vector<8x128xf32>
    %1029 = arith.select %1026, %1027, %1028 : vector<8x128xi1>, vector<8x128xf32>
    %1030 = vector.broadcast %3 : f32 to vector<8x128xf32>
    %1031 = arith.select %1024, %1030, %1029 : vector<8x128xi1>, vector<8x128xf32>
    %1032 = vector.broadcast %2 : f32 to vector<8x128xf32>
    %1033 = arith.select %1022, %1032, %1031 : vector<8x128xi1>, vector<8x128xf32>
    %1034 = vector.broadcast %1 : f32 to vector<8x128xf32>
    %1035 = arith.select %1020, %1034, %1033 : vector<8x128xi1>, vector<8x128xf32>
    %1036 = vector.broadcast %0 : f32 to vector<8x128xf32>
    %1037 = arith.select %1018, %1036, %1035 : vector<8x128xi1>, vector<8x128xf32>
    %1038 = arith.mulf %1037, %1013 : vector<8x128xf32>
    %1039 = math.tanh %1038 : vector<8x128xf32>
    %cst_149 = arith.constant 0.000000e+00 : f32
    %1040 = vector.broadcast %cst_149 : f32 to vector<8x128xf32>
    %1041 = arith.maximumf %1039, %1040 : vector<8x128xf32>
    %c113 = arith.constant 113 : index
    %1042 = memref.load %arg4[%c113] : memref<395xf32, #tpu.memory_space<smem>>
    %1043 = vector.broadcast %1042 : f32 to vector<8x128xf32>
    %1044 = arith.mulf %108, %1043 : vector<8x128xf32>
    %c114 = arith.constant 114 : index
    %1045 = memref.load %arg4[%c114] : memref<395xf32, #tpu.memory_space<smem>>
    %1046 = vector.broadcast %1045 : f32 to vector<8x128xf32>
    %1047 = arith.mulf %133, %1046 : vector<8x128xf32>
    %1048 = arith.addf %1044, %1047 : vector<8x128xf32>
    %c115 = arith.constant 115 : index
    %1049 = memref.load %arg4[%c115] : memref<395xf32, #tpu.memory_space<smem>>
    %1050 = vector.broadcast %1049 : f32 to vector<8x128xf32>
    %1051 = arith.mulf %158, %1050 : vector<8x128xf32>
    %1052 = arith.addf %1048, %1051 : vector<8x128xf32>
    %c116 = arith.constant 116 : index
    %1053 = memref.load %arg4[%c116] : memref<395xf32, #tpu.memory_space<smem>>
    %1054 = vector.broadcast %1053 : f32 to vector<8x128xf32>
    %1055 = arith.mulf %183, %1054 : vector<8x128xf32>
    %1056 = arith.addf %1052, %1055 : vector<8x128xf32>
    %c117 = arith.constant 117 : index
    %1057 = memref.load %arg4[%c117] : memref<395xf32, #tpu.memory_space<smem>>
    %1058 = vector.broadcast %1057 : f32 to vector<8x128xf32>
    %1059 = arith.mulf %208, %1058 : vector<8x128xf32>
    %1060 = arith.addf %1056, %1059 : vector<8x128xf32>
    %c118 = arith.constant 118 : index
    %1061 = memref.load %arg4[%c118] : memref<395xf32, #tpu.memory_space<smem>>
    %1062 = vector.broadcast %1061 : f32 to vector<8x128xf32>
    %1063 = arith.mulf %233, %1062 : vector<8x128xf32>
    %1064 = arith.addf %1060, %1063 : vector<8x128xf32>
    %c119 = arith.constant 119 : index
    %1065 = memref.load %arg4[%c119] : memref<395xf32, #tpu.memory_space<smem>>
    %1066 = vector.broadcast %1065 : f32 to vector<8x128xf32>
    %1067 = arith.mulf %258, %1066 : vector<8x128xf32>
    %1068 = arith.addf %1064, %1067 : vector<8x128xf32>
    %c120 = arith.constant 120 : index
    %1069 = memref.load %arg4[%c120] : memref<395xf32, #tpu.memory_space<smem>>
    %1070 = vector.broadcast %1069 : f32 to vector<8x128xf32>
    %1071 = arith.mulf %283, %1070 : vector<8x128xf32>
    %1072 = arith.addf %1068, %1071 : vector<8x128xf32>
    %c192 = arith.constant 192 : index
    %1073 = memref.load %arg4[%c192] : memref<395xf32, #tpu.memory_space<smem>>
    %1074 = vector.broadcast %1073 : f32 to vector<8x128xf32>
    %1075 = arith.addf %1072, %1074 : vector<8x128xf32>
    %cst_150 = arith.constant 0.000000e+00 : f32
    %1076 = vector.broadcast %cst_150 : f32 to vector<8x128xf32>
    %1077 = arith.subf %1076, %1075 : vector<8x128xf32>
    %1078 = math.exp %1077 : vector<8x128xf32>
    %cst_151 = arith.constant 1.000000e+00 : f32
    %1079 = vector.broadcast %cst_151 : f32 to vector<8x128xf32>
    %1080 = arith.addf %1079, %1078 : vector<8x128xf32>
    %cst_152 = arith.constant 1.000000e+00 : f32
    %1081 = vector.broadcast %cst_152 : f32 to vector<8x128xf32>
    %1082 = arith.divf %1081, %1080 : vector<8x128xf32>
    %1083 = arith.mulf %1041, %1082 : vector<8x128xf32>
    %c208 = arith.constant 208 : index
    %1084 = memref.load %arg4[%c208] : memref<395xf32, #tpu.memory_space<smem>>
    %1085 = vector.broadcast %1084 : f32 to vector<8x128xf32>
    %1086 = arith.mulf %1083, %1085 : vector<8x128xf32>
    %1087 = arith.addf %982, %1086 : vector<8x128xf32>
    %c224 = arith.constant 224 : index
    %1088 = memref.load %arg4[%c224] : memref<395xf32, #tpu.memory_space<smem>>
    %1089 = vector.broadcast %1088 : f32 to vector<8x128xf32>
    %1090 = arith.mulf %1083, %1089 : vector<8x128xf32>
    %1091 = arith.addf %986, %1090 : vector<8x128xf32>
    %c240 = arith.constant 240 : index
    %1092 = memref.load %arg4[%c240] : memref<395xf32, #tpu.memory_space<smem>>
    %1093 = vector.broadcast %1092 : f32 to vector<8x128xf32>
    %1094 = arith.mulf %1083, %1093 : vector<8x128xf32>
    %1095 = arith.addf %990, %1094 : vector<8x128xf32>
    %c256 = arith.constant 256 : index
    %1096 = memref.load %arg4[%c256] : memref<395xf32, #tpu.memory_space<smem>>
    %1097 = vector.broadcast %1096 : f32 to vector<8x128xf32>
    %1098 = arith.mulf %1083, %1097 : vector<8x128xf32>
    %1099 = arith.addf %994, %1098 : vector<8x128xf32>
    %c272 = arith.constant 272 : index
    %1100 = memref.load %arg4[%c272] : memref<395xf32, #tpu.memory_space<smem>>
    %1101 = vector.broadcast %1100 : f32 to vector<8x128xf32>
    %1102 = arith.mulf %1083, %1101 : vector<8x128xf32>
    %1103 = arith.addf %998, %1102 : vector<8x128xf32>
    %c288 = arith.constant 288 : index
    %1104 = memref.load %arg4[%c288] : memref<395xf32, #tpu.memory_space<smem>>
    %1105 = vector.broadcast %1104 : f32 to vector<8x128xf32>
    %1106 = arith.mulf %1083, %1105 : vector<8x128xf32>
    %1107 = arith.addf %1002, %1106 : vector<8x128xf32>
    %c304 = arith.constant 304 : index
    %1108 = memref.load %arg4[%c304] : memref<395xf32, #tpu.memory_space<smem>>
    %1109 = vector.broadcast %1108 : f32 to vector<8x128xf32>
    %1110 = arith.mulf %1083, %1109 : vector<8x128xf32>
    %1111 = arith.addf %1006, %1110 : vector<8x128xf32>
    %c320 = arith.constant 320 : index
    %1112 = memref.load %arg4[%c320] : memref<395xf32, #tpu.memory_space<smem>>
    %1113 = vector.broadcast %1112 : f32 to vector<8x128xf32>
    %1114 = arith.mulf %1083, %1113 : vector<8x128xf32>
    %1115 = arith.addf %1010, %1114 : vector<8x128xf32>
    %c8_153 = arith.constant 8 : index
    %1116 = arith.index_cast %6 : i32 to index
    %c0_154 = arith.constant 0 : index
    %1117 = vector.load %arg1[%c8_153, %1116, %c0_154] : memref<16x8x128xf32, #tpu.memory_space<vmem>>, vector<1x8x128xf32>
    %1118 = vector.shape_cast %1117 : vector<1x8x128xf32> to vector<8x128xf32>
    %c8_155 = arith.constant 8 : index
    %1119 = arith.index_cast %6 : i32 to index
    %c0_156 = arith.constant 0 : index
    %1120 = vector.load %arg2[%c8_155, %1119, %c0_156] : memref<16x8x128xf32, #tpu.memory_space<vmem>>, vector<1x8x128xf32>
    %1121 = vector.shape_cast %1120 : vector<1x8x128xf32> to vector<8x128xf32>
    %cst_157 = arith.constant 0.000000e+00 : f32
    %1122 = vector.broadcast %cst_157 : f32 to vector<8x128xf32>
    %1123 = arith.cmpf oeq, %1121, %1122 : vector<8x128xf32>
    %cst_158 = arith.constant 1.000000e+00 : f32
    %1124 = vector.broadcast %cst_158 : f32 to vector<8x128xf32>
    %1125 = arith.cmpf oeq, %1121, %1124 : vector<8x128xf32>
    %cst_159 = arith.constant 2.000000e+00 : f32
    %1126 = vector.broadcast %cst_159 : f32 to vector<8x128xf32>
    %1127 = arith.cmpf oeq, %1121, %1126 : vector<8x128xf32>
    %cst_160 = arith.constant 3.000000e+00 : f32
    %1128 = vector.broadcast %cst_160 : f32 to vector<8x128xf32>
    %1129 = arith.cmpf oeq, %1121, %1128 : vector<8x128xf32>
    %cst_161 = arith.constant 4.000000e+00 : f32
    %1130 = vector.broadcast %cst_161 : f32 to vector<8x128xf32>
    %1131 = arith.cmpf oeq, %1121, %1130 : vector<8x128xf32>
    %cst_162 = arith.constant 0.000000e+00 : f32
    %1132 = vector.broadcast %4 : f32 to vector<8x128xf32>
    %1133 = vector.broadcast %cst_162 : f32 to vector<8x128xf32>
    %1134 = arith.select %1131, %1132, %1133 : vector<8x128xi1>, vector<8x128xf32>
    %1135 = vector.broadcast %3 : f32 to vector<8x128xf32>
    %1136 = arith.select %1129, %1135, %1134 : vector<8x128xi1>, vector<8x128xf32>
    %1137 = vector.broadcast %2 : f32 to vector<8x128xf32>
    %1138 = arith.select %1127, %1137, %1136 : vector<8x128xi1>, vector<8x128xf32>
    %1139 = vector.broadcast %1 : f32 to vector<8x128xf32>
    %1140 = arith.select %1125, %1139, %1138 : vector<8x128xi1>, vector<8x128xf32>
    %1141 = vector.broadcast %0 : f32 to vector<8x128xf32>
    %1142 = arith.select %1123, %1141, %1140 : vector<8x128xi1>, vector<8x128xf32>
    %1143 = arith.mulf %1142, %1118 : vector<8x128xf32>
    %1144 = math.tanh %1143 : vector<8x128xf32>
    %cst_163 = arith.constant 0.000000e+00 : f32
    %1145 = vector.broadcast %cst_163 : f32 to vector<8x128xf32>
    %1146 = arith.maximumf %1144, %1145 : vector<8x128xf32>
    %c121 = arith.constant 121 : index
    %1147 = memref.load %arg4[%c121] : memref<395xf32, #tpu.memory_space<smem>>
    %1148 = vector.broadcast %1147 : f32 to vector<8x128xf32>
    %1149 = arith.mulf %108, %1148 : vector<8x128xf32>
    %c122 = arith.constant 122 : index
    %1150 = memref.load %arg4[%c122] : memref<395xf32, #tpu.memory_space<smem>>
    %1151 = vector.broadcast %1150 : f32 to vector<8x128xf32>
    %1152 = arith.mulf %133, %1151 : vector<8x128xf32>
    %1153 = arith.addf %1149, %1152 : vector<8x128xf32>
    %c123 = arith.constant 123 : index
    %1154 = memref.load %arg4[%c123] : memref<395xf32, #tpu.memory_space<smem>>
    %1155 = vector.broadcast %1154 : f32 to vector<8x128xf32>
    %1156 = arith.mulf %158, %1155 : vector<8x128xf32>
    %1157 = arith.addf %1153, %1156 : vector<8x128xf32>
    %c124 = arith.constant 124 : index
    %1158 = memref.load %arg4[%c124] : memref<395xf32, #tpu.memory_space<smem>>
    %1159 = vector.broadcast %1158 : f32 to vector<8x128xf32>
    %1160 = arith.mulf %183, %1159 : vector<8x128xf32>
    %1161 = arith.addf %1157, %1160 : vector<8x128xf32>
    %c125 = arith.constant 125 : index
    %1162 = memref.load %arg4[%c125] : memref<395xf32, #tpu.memory_space<smem>>
    %1163 = vector.broadcast %1162 : f32 to vector<8x128xf32>
    %1164 = arith.mulf %208, %1163 : vector<8x128xf32>
    %1165 = arith.addf %1161, %1164 : vector<8x128xf32>
    %c126 = arith.constant 126 : index
    %1166 = memref.load %arg4[%c126] : memref<395xf32, #tpu.memory_space<smem>>
    %1167 = vector.broadcast %1166 : f32 to vector<8x128xf32>
    %1168 = arith.mulf %233, %1167 : vector<8x128xf32>
    %1169 = arith.addf %1165, %1168 : vector<8x128xf32>
    %c127 = arith.constant 127 : index
    %1170 = memref.load %arg4[%c127] : memref<395xf32, #tpu.memory_space<smem>>
    %1171 = vector.broadcast %1170 : f32 to vector<8x128xf32>
    %1172 = arith.mulf %258, %1171 : vector<8x128xf32>
    %1173 = arith.addf %1169, %1172 : vector<8x128xf32>
    %c128 = arith.constant 128 : index
    %1174 = memref.load %arg4[%c128] : memref<395xf32, #tpu.memory_space<smem>>
    %1175 = vector.broadcast %1174 : f32 to vector<8x128xf32>
    %1176 = arith.mulf %283, %1175 : vector<8x128xf32>
    %1177 = arith.addf %1173, %1176 : vector<8x128xf32>
    %c193 = arith.constant 193 : index
    %1178 = memref.load %arg4[%c193] : memref<395xf32, #tpu.memory_space<smem>>
    %1179 = vector.broadcast %1178 : f32 to vector<8x128xf32>
    %1180 = arith.addf %1177, %1179 : vector<8x128xf32>
    %cst_164 = arith.constant 0.000000e+00 : f32
    %1181 = vector.broadcast %cst_164 : f32 to vector<8x128xf32>
    %1182 = arith.subf %1181, %1180 : vector<8x128xf32>
    %1183 = math.exp %1182 : vector<8x128xf32>
    %cst_165 = arith.constant 1.000000e+00 : f32
    %1184 = vector.broadcast %cst_165 : f32 to vector<8x128xf32>
    %1185 = arith.addf %1184, %1183 : vector<8x128xf32>
    %cst_166 = arith.constant 1.000000e+00 : f32
    %1186 = vector.broadcast %cst_166 : f32 to vector<8x128xf32>
    %1187 = arith.divf %1186, %1185 : vector<8x128xf32>
    %1188 = arith.mulf %1146, %1187 : vector<8x128xf32>
    %c209 = arith.constant 209 : index
    %1189 = memref.load %arg4[%c209] : memref<395xf32, #tpu.memory_space<smem>>
    %1190 = vector.broadcast %1189 : f32 to vector<8x128xf32>
    %1191 = arith.mulf %1188, %1190 : vector<8x128xf32>
    %1192 = arith.addf %1087, %1191 : vector<8x128xf32>
    %c225 = arith.constant 225 : index
    %1193 = memref.load %arg4[%c225] : memref<395xf32, #tpu.memory_space<smem>>
    %1194 = vector.broadcast %1193 : f32 to vector<8x128xf32>
    %1195 = arith.mulf %1188, %1194 : vector<8x128xf32>
    %1196 = arith.addf %1091, %1195 : vector<8x128xf32>
    %c241 = arith.constant 241 : index
    %1197 = memref.load %arg4[%c241] : memref<395xf32, #tpu.memory_space<smem>>
    %1198 = vector.broadcast %1197 : f32 to vector<8x128xf32>
    %1199 = arith.mulf %1188, %1198 : vector<8x128xf32>
    %1200 = arith.addf %1095, %1199 : vector<8x128xf32>
    %c257 = arith.constant 257 : index
    %1201 = memref.load %arg4[%c257] : memref<395xf32, #tpu.memory_space<smem>>
    %1202 = vector.broadcast %1201 : f32 to vector<8x128xf32>
    %1203 = arith.mulf %1188, %1202 : vector<8x128xf32>
    %1204 = arith.addf %1099, %1203 : vector<8x128xf32>
    %c273 = arith.constant 273 : index
    %1205 = memref.load %arg4[%c273] : memref<395xf32, #tpu.memory_space<smem>>
    %1206 = vector.broadcast %1205 : f32 to vector<8x128xf32>
    %1207 = arith.mulf %1188, %1206 : vector<8x128xf32>
    %1208 = arith.addf %1103, %1207 : vector<8x128xf32>
    %c289 = arith.constant 289 : index
    %1209 = memref.load %arg4[%c289] : memref<395xf32, #tpu.memory_space<smem>>
    %1210 = vector.broadcast %1209 : f32 to vector<8x128xf32>
    %1211 = arith.mulf %1188, %1210 : vector<8x128xf32>
    %1212 = arith.addf %1107, %1211 : vector<8x128xf32>
    %c305 = arith.constant 305 : index
    %1213 = memref.load %arg4[%c305] : memref<395xf32, #tpu.memory_space<smem>>
    %1214 = vector.broadcast %1213 : f32 to vector<8x128xf32>
    %1215 = arith.mulf %1188, %1214 : vector<8x128xf32>
    %1216 = arith.addf %1111, %1215 : vector<8x128xf32>
    %c321 = arith.constant 321 : index
    %1217 = memref.load %arg4[%c321] : memref<395xf32, #tpu.memory_space<smem>>
    %1218 = vector.broadcast %1217 : f32 to vector<8x128xf32>
    %1219 = arith.mulf %1188, %1218 : vector<8x128xf32>
    %1220 = arith.addf %1115, %1219 : vector<8x128xf32>
    %c9_167 = arith.constant 9 : index
    %1221 = arith.index_cast %6 : i32 to index
    %c0_168 = arith.constant 0 : index
    %1222 = vector.load %arg1[%c9_167, %1221, %c0_168] : memref<16x8x128xf32, #tpu.memory_space<vmem>>, vector<1x8x128xf32>
    %1223 = vector.shape_cast %1222 : vector<1x8x128xf32> to vector<8x128xf32>
    %c9_169 = arith.constant 9 : index
    %1224 = arith.index_cast %6 : i32 to index
    %c0_170 = arith.constant 0 : index
    %1225 = vector.load %arg2[%c9_169, %1224, %c0_170] : memref<16x8x128xf32, #tpu.memory_space<vmem>>, vector<1x8x128xf32>
    %1226 = vector.shape_cast %1225 : vector<1x8x128xf32> to vector<8x128xf32>
    %cst_171 = arith.constant 0.000000e+00 : f32
    %1227 = vector.broadcast %cst_171 : f32 to vector<8x128xf32>
    %1228 = arith.cmpf oeq, %1226, %1227 : vector<8x128xf32>
    %cst_172 = arith.constant 1.000000e+00 : f32
    %1229 = vector.broadcast %cst_172 : f32 to vector<8x128xf32>
    %1230 = arith.cmpf oeq, %1226, %1229 : vector<8x128xf32>
    %cst_173 = arith.constant 2.000000e+00 : f32
    %1231 = vector.broadcast %cst_173 : f32 to vector<8x128xf32>
    %1232 = arith.cmpf oeq, %1226, %1231 : vector<8x128xf32>
    %cst_174 = arith.constant 3.000000e+00 : f32
    %1233 = vector.broadcast %cst_174 : f32 to vector<8x128xf32>
    %1234 = arith.cmpf oeq, %1226, %1233 : vector<8x128xf32>
    %cst_175 = arith.constant 4.000000e+00 : f32
    %1235 = vector.broadcast %cst_175 : f32 to vector<8x128xf32>
    %1236 = arith.cmpf oeq, %1226, %1235 : vector<8x128xf32>
    %cst_176 = arith.constant 0.000000e+00 : f32
    %1237 = vector.broadcast %4 : f32 to vector<8x128xf32>
    %1238 = vector.broadcast %cst_176 : f32 to vector<8x128xf32>
    %1239 = arith.select %1236, %1237, %1238 : vector<8x128xi1>, vector<8x128xf32>
    %1240 = vector.broadcast %3 : f32 to vector<8x128xf32>
    %1241 = arith.select %1234, %1240, %1239 : vector<8x128xi1>, vector<8x128xf32>
    %1242 = vector.broadcast %2 : f32 to vector<8x128xf32>
    %1243 = arith.select %1232, %1242, %1241 : vector<8x128xi1>, vector<8x128xf32>
    %1244 = vector.broadcast %1 : f32 to vector<8x128xf32>
    %1245 = arith.select %1230, %1244, %1243 : vector<8x128xi1>, vector<8x128xf32>
    %1246 = vector.broadcast %0 : f32 to vector<8x128xf32>
    %1247 = arith.select %1228, %1246, %1245 : vector<8x128xi1>, vector<8x128xf32>
    %1248 = arith.mulf %1247, %1223 : vector<8x128xf32>
    %1249 = math.tanh %1248 : vector<8x128xf32>
    %cst_177 = arith.constant 0.000000e+00 : f32
    %1250 = vector.broadcast %cst_177 : f32 to vector<8x128xf32>
    %1251 = arith.maximumf %1249, %1250 : vector<8x128xf32>
    %c129 = arith.constant 129 : index
    %1252 = memref.load %arg4[%c129] : memref<395xf32, #tpu.memory_space<smem>>
    %1253 = vector.broadcast %1252 : f32 to vector<8x128xf32>
    %1254 = arith.mulf %108, %1253 : vector<8x128xf32>
    %c130 = arith.constant 130 : index
    %1255 = memref.load %arg4[%c130] : memref<395xf32, #tpu.memory_space<smem>>
    %1256 = vector.broadcast %1255 : f32 to vector<8x128xf32>
    %1257 = arith.mulf %133, %1256 : vector<8x128xf32>
    %1258 = arith.addf %1254, %1257 : vector<8x128xf32>
    %c131 = arith.constant 131 : index
    %1259 = memref.load %arg4[%c131] : memref<395xf32, #tpu.memory_space<smem>>
    %1260 = vector.broadcast %1259 : f32 to vector<8x128xf32>
    %1261 = arith.mulf %158, %1260 : vector<8x128xf32>
    %1262 = arith.addf %1258, %1261 : vector<8x128xf32>
    %c132 = arith.constant 132 : index
    %1263 = memref.load %arg4[%c132] : memref<395xf32, #tpu.memory_space<smem>>
    %1264 = vector.broadcast %1263 : f32 to vector<8x128xf32>
    %1265 = arith.mulf %183, %1264 : vector<8x128xf32>
    %1266 = arith.addf %1262, %1265 : vector<8x128xf32>
    %c133 = arith.constant 133 : index
    %1267 = memref.load %arg4[%c133] : memref<395xf32, #tpu.memory_space<smem>>
    %1268 = vector.broadcast %1267 : f32 to vector<8x128xf32>
    %1269 = arith.mulf %208, %1268 : vector<8x128xf32>
    %1270 = arith.addf %1266, %1269 : vector<8x128xf32>
    %c134 = arith.constant 134 : index
    %1271 = memref.load %arg4[%c134] : memref<395xf32, #tpu.memory_space<smem>>
    %1272 = vector.broadcast %1271 : f32 to vector<8x128xf32>
    %1273 = arith.mulf %233, %1272 : vector<8x128xf32>
    %1274 = arith.addf %1270, %1273 : vector<8x128xf32>
    %c135 = arith.constant 135 : index
    %1275 = memref.load %arg4[%c135] : memref<395xf32, #tpu.memory_space<smem>>
    %1276 = vector.broadcast %1275 : f32 to vector<8x128xf32>
    %1277 = arith.mulf %258, %1276 : vector<8x128xf32>
    %1278 = arith.addf %1274, %1277 : vector<8x128xf32>
    %c136 = arith.constant 136 : index
    %1279 = memref.load %arg4[%c136] : memref<395xf32, #tpu.memory_space<smem>>
    %1280 = vector.broadcast %1279 : f32 to vector<8x128xf32>
    %1281 = arith.mulf %283, %1280 : vector<8x128xf32>
    %1282 = arith.addf %1278, %1281 : vector<8x128xf32>
    %c194 = arith.constant 194 : index
    %1283 = memref.load %arg4[%c194] : memref<395xf32, #tpu.memory_space<smem>>
    %1284 = vector.broadcast %1283 : f32 to vector<8x128xf32>
    %1285 = arith.addf %1282, %1284 : vector<8x128xf32>
    %cst_178 = arith.constant 0.000000e+00 : f32
    %1286 = vector.broadcast %cst_178 : f32 to vector<8x128xf32>
    %1287 = arith.subf %1286, %1285 : vector<8x128xf32>
    %1288 = math.exp %1287 : vector<8x128xf32>
    %cst_179 = arith.constant 1.000000e+00 : f32
    %1289 = vector.broadcast %cst_179 : f32 to vector<8x128xf32>
    %1290 = arith.addf %1289, %1288 : vector<8x128xf32>
    %cst_180 = arith.constant 1.000000e+00 : f32
    %1291 = vector.broadcast %cst_180 : f32 to vector<8x128xf32>
    %1292 = arith.divf %1291, %1290 : vector<8x128xf32>
    %1293 = arith.mulf %1251, %1292 : vector<8x128xf32>
    %c210 = arith.constant 210 : index
    %1294 = memref.load %arg4[%c210] : memref<395xf32, #tpu.memory_space<smem>>
    %1295 = vector.broadcast %1294 : f32 to vector<8x128xf32>
    %1296 = arith.mulf %1293, %1295 : vector<8x128xf32>
    %1297 = arith.addf %1192, %1296 : vector<8x128xf32>
    %c226 = arith.constant 226 : index
    %1298 = memref.load %arg4[%c226] : memref<395xf32, #tpu.memory_space<smem>>
    %1299 = vector.broadcast %1298 : f32 to vector<8x128xf32>
    %1300 = arith.mulf %1293, %1299 : vector<8x128xf32>
    %1301 = arith.addf %1196, %1300 : vector<8x128xf32>
    %c242 = arith.constant 242 : index
    %1302 = memref.load %arg4[%c242] : memref<395xf32, #tpu.memory_space<smem>>
    %1303 = vector.broadcast %1302 : f32 to vector<8x128xf32>
    %1304 = arith.mulf %1293, %1303 : vector<8x128xf32>
    %1305 = arith.addf %1200, %1304 : vector<8x128xf32>
    %c258 = arith.constant 258 : index
    %1306 = memref.load %arg4[%c258] : memref<395xf32, #tpu.memory_space<smem>>
    %1307 = vector.broadcast %1306 : f32 to vector<8x128xf32>
    %1308 = arith.mulf %1293, %1307 : vector<8x128xf32>
    %1309 = arith.addf %1204, %1308 : vector<8x128xf32>
    %c274 = arith.constant 274 : index
    %1310 = memref.load %arg4[%c274] : memref<395xf32, #tpu.memory_space<smem>>
    %1311 = vector.broadcast %1310 : f32 to vector<8x128xf32>
    %1312 = arith.mulf %1293, %1311 : vector<8x128xf32>
    %1313 = arith.addf %1208, %1312 : vector<8x128xf32>
    %c290 = arith.constant 290 : index
    %1314 = memref.load %arg4[%c290] : memref<395xf32, #tpu.memory_space<smem>>
    %1315 = vector.broadcast %1314 : f32 to vector<8x128xf32>
    %1316 = arith.mulf %1293, %1315 : vector<8x128xf32>
    %1317 = arith.addf %1212, %1316 : vector<8x128xf32>
    %c306 = arith.constant 306 : index
    %1318 = memref.load %arg4[%c306] : memref<395xf32, #tpu.memory_space<smem>>
    %1319 = vector.broadcast %1318 : f32 to vector<8x128xf32>
    %1320 = arith.mulf %1293, %1319 : vector<8x128xf32>
    %1321 = arith.addf %1216, %1320 : vector<8x128xf32>
    %c322 = arith.constant 322 : index
    %1322 = memref.load %arg4[%c322] : memref<395xf32, #tpu.memory_space<smem>>
    %1323 = vector.broadcast %1322 : f32 to vector<8x128xf32>
    %1324 = arith.mulf %1293, %1323 : vector<8x128xf32>
    %1325 = arith.addf %1220, %1324 : vector<8x128xf32>
    %c10_181 = arith.constant 10 : index
    %1326 = arith.index_cast %6 : i32 to index
    %c0_182 = arith.constant 0 : index
    %1327 = vector.load %arg1[%c10_181, %1326, %c0_182] : memref<16x8x128xf32, #tpu.memory_space<vmem>>, vector<1x8x128xf32>
    %1328 = vector.shape_cast %1327 : vector<1x8x128xf32> to vector<8x128xf32>
    %c10_183 = arith.constant 10 : index
    %1329 = arith.index_cast %6 : i32 to index
    %c0_184 = arith.constant 0 : index
    %1330 = vector.load %arg2[%c10_183, %1329, %c0_184] : memref<16x8x128xf32, #tpu.memory_space<vmem>>, vector<1x8x128xf32>
    %1331 = vector.shape_cast %1330 : vector<1x8x128xf32> to vector<8x128xf32>
    %cst_185 = arith.constant 0.000000e+00 : f32
    %1332 = vector.broadcast %cst_185 : f32 to vector<8x128xf32>
    %1333 = arith.cmpf oeq, %1331, %1332 : vector<8x128xf32>
    %cst_186 = arith.constant 1.000000e+00 : f32
    %1334 = vector.broadcast %cst_186 : f32 to vector<8x128xf32>
    %1335 = arith.cmpf oeq, %1331, %1334 : vector<8x128xf32>
    %cst_187 = arith.constant 2.000000e+00 : f32
    %1336 = vector.broadcast %cst_187 : f32 to vector<8x128xf32>
    %1337 = arith.cmpf oeq, %1331, %1336 : vector<8x128xf32>
    %cst_188 = arith.constant 3.000000e+00 : f32
    %1338 = vector.broadcast %cst_188 : f32 to vector<8x128xf32>
    %1339 = arith.cmpf oeq, %1331, %1338 : vector<8x128xf32>
    %cst_189 = arith.constant 4.000000e+00 : f32
    %1340 = vector.broadcast %cst_189 : f32 to vector<8x128xf32>
    %1341 = arith.cmpf oeq, %1331, %1340 : vector<8x128xf32>
    %cst_190 = arith.constant 0.000000e+00 : f32
    %1342 = vector.broadcast %4 : f32 to vector<8x128xf32>
    %1343 = vector.broadcast %cst_190 : f32 to vector<8x128xf32>
    %1344 = arith.select %1341, %1342, %1343 : vector<8x128xi1>, vector<8x128xf32>
    %1345 = vector.broadcast %3 : f32 to vector<8x128xf32>
    %1346 = arith.select %1339, %1345, %1344 : vector<8x128xi1>, vector<8x128xf32>
    %1347 = vector.broadcast %2 : f32 to vector<8x128xf32>
    %1348 = arith.select %1337, %1347, %1346 : vector<8x128xi1>, vector<8x128xf32>
    %1349 = vector.broadcast %1 : f32 to vector<8x128xf32>
    %1350 = arith.select %1335, %1349, %1348 : vector<8x128xi1>, vector<8x128xf32>
    %1351 = vector.broadcast %0 : f32 to vector<8x128xf32>
    %1352 = arith.select %1333, %1351, %1350 : vector<8x128xi1>, vector<8x128xf32>
    %1353 = arith.mulf %1352, %1328 : vector<8x128xf32>
    %1354 = math.tanh %1353 : vector<8x128xf32>
    %cst_191 = arith.constant 0.000000e+00 : f32
    %1355 = vector.broadcast %cst_191 : f32 to vector<8x128xf32>
    %1356 = arith.maximumf %1354, %1355 : vector<8x128xf32>
    %c137 = arith.constant 137 : index
    %1357 = memref.load %arg4[%c137] : memref<395xf32, #tpu.memory_space<smem>>
    %1358 = vector.broadcast %1357 : f32 to vector<8x128xf32>
    %1359 = arith.mulf %108, %1358 : vector<8x128xf32>
    %c138 = arith.constant 138 : index
    %1360 = memref.load %arg4[%c138] : memref<395xf32, #tpu.memory_space<smem>>
    %1361 = vector.broadcast %1360 : f32 to vector<8x128xf32>
    %1362 = arith.mulf %133, %1361 : vector<8x128xf32>
    %1363 = arith.addf %1359, %1362 : vector<8x128xf32>
    %c139 = arith.constant 139 : index
    %1364 = memref.load %arg4[%c139] : memref<395xf32, #tpu.memory_space<smem>>
    %1365 = vector.broadcast %1364 : f32 to vector<8x128xf32>
    %1366 = arith.mulf %158, %1365 : vector<8x128xf32>
    %1367 = arith.addf %1363, %1366 : vector<8x128xf32>
    %c140 = arith.constant 140 : index
    %1368 = memref.load %arg4[%c140] : memref<395xf32, #tpu.memory_space<smem>>
    %1369 = vector.broadcast %1368 : f32 to vector<8x128xf32>
    %1370 = arith.mulf %183, %1369 : vector<8x128xf32>
    %1371 = arith.addf %1367, %1370 : vector<8x128xf32>
    %c141 = arith.constant 141 : index
    %1372 = memref.load %arg4[%c141] : memref<395xf32, #tpu.memory_space<smem>>
    %1373 = vector.broadcast %1372 : f32 to vector<8x128xf32>
    %1374 = arith.mulf %208, %1373 : vector<8x128xf32>
    %1375 = arith.addf %1371, %1374 : vector<8x128xf32>
    %c142 = arith.constant 142 : index
    %1376 = memref.load %arg4[%c142] : memref<395xf32, #tpu.memory_space<smem>>
    %1377 = vector.broadcast %1376 : f32 to vector<8x128xf32>
    %1378 = arith.mulf %233, %1377 : vector<8x128xf32>
    %1379 = arith.addf %1375, %1378 : vector<8x128xf32>
    %c143 = arith.constant 143 : index
    %1380 = memref.load %arg4[%c143] : memref<395xf32, #tpu.memory_space<smem>>
    %1381 = vector.broadcast %1380 : f32 to vector<8x128xf32>
    %1382 = arith.mulf %258, %1381 : vector<8x128xf32>
    %1383 = arith.addf %1379, %1382 : vector<8x128xf32>
    %c144 = arith.constant 144 : index
    %1384 = memref.load %arg4[%c144] : memref<395xf32, #tpu.memory_space<smem>>
    %1385 = vector.broadcast %1384 : f32 to vector<8x128xf32>
    %1386 = arith.mulf %283, %1385 : vector<8x128xf32>
    %1387 = arith.addf %1383, %1386 : vector<8x128xf32>
    %c195 = arith.constant 195 : index
    %1388 = memref.load %arg4[%c195] : memref<395xf32, #tpu.memory_space<smem>>
    %1389 = vector.broadcast %1388 : f32 to vector<8x128xf32>
    %1390 = arith.addf %1387, %1389 : vector<8x128xf32>
    %cst_192 = arith.constant 0.000000e+00 : f32
    %1391 = vector.broadcast %cst_192 : f32 to vector<8x128xf32>
    %1392 = arith.subf %1391, %1390 : vector<8x128xf32>
    %1393 = math.exp %1392 : vector<8x128xf32>
    %cst_193 = arith.constant 1.000000e+00 : f32
    %1394 = vector.broadcast %cst_193 : f32 to vector<8x128xf32>
    %1395 = arith.addf %1394, %1393 : vector<8x128xf32>
    %cst_194 = arith.constant 1.000000e+00 : f32
    %1396 = vector.broadcast %cst_194 : f32 to vector<8x128xf32>
    %1397 = arith.divf %1396, %1395 : vector<8x128xf32>
    %1398 = arith.mulf %1356, %1397 : vector<8x128xf32>
    %c211 = arith.constant 211 : index
    %1399 = memref.load %arg4[%c211] : memref<395xf32, #tpu.memory_space<smem>>
    %1400 = vector.broadcast %1399 : f32 to vector<8x128xf32>
    %1401 = arith.mulf %1398, %1400 : vector<8x128xf32>
    %1402 = arith.addf %1297, %1401 : vector<8x128xf32>
    %c227 = arith.constant 227 : index
    %1403 = memref.load %arg4[%c227] : memref<395xf32, #tpu.memory_space<smem>>
    %1404 = vector.broadcast %1403 : f32 to vector<8x128xf32>
    %1405 = arith.mulf %1398, %1404 : vector<8x128xf32>
    %1406 = arith.addf %1301, %1405 : vector<8x128xf32>
    %c243 = arith.constant 243 : index
    %1407 = memref.load %arg4[%c243] : memref<395xf32, #tpu.memory_space<smem>>
    %1408 = vector.broadcast %1407 : f32 to vector<8x128xf32>
    %1409 = arith.mulf %1398, %1408 : vector<8x128xf32>
    %1410 = arith.addf %1305, %1409 : vector<8x128xf32>
    %c259 = arith.constant 259 : index
    %1411 = memref.load %arg4[%c259] : memref<395xf32, #tpu.memory_space<smem>>
    %1412 = vector.broadcast %1411 : f32 to vector<8x128xf32>
    %1413 = arith.mulf %1398, %1412 : vector<8x128xf32>
    %1414 = arith.addf %1309, %1413 : vector<8x128xf32>
    %c275 = arith.constant 275 : index
    %1415 = memref.load %arg4[%c275] : memref<395xf32, #tpu.memory_space<smem>>
    %1416 = vector.broadcast %1415 : f32 to vector<8x128xf32>
    %1417 = arith.mulf %1398, %1416 : vector<8x128xf32>
    %1418 = arith.addf %1313, %1417 : vector<8x128xf32>
    %c291 = arith.constant 291 : index
    %1419 = memref.load %arg4[%c291] : memref<395xf32, #tpu.memory_space<smem>>
    %1420 = vector.broadcast %1419 : f32 to vector<8x128xf32>
    %1421 = arith.mulf %1398, %1420 : vector<8x128xf32>
    %1422 = arith.addf %1317, %1421 : vector<8x128xf32>
    %c307 = arith.constant 307 : index
    %1423 = memref.load %arg4[%c307] : memref<395xf32, #tpu.memory_space<smem>>
    %1424 = vector.broadcast %1423 : f32 to vector<8x128xf32>
    %1425 = arith.mulf %1398, %1424 : vector<8x128xf32>
    %1426 = arith.addf %1321, %1425 : vector<8x128xf32>
    %c323 = arith.constant 323 : index
    %1427 = memref.load %arg4[%c323] : memref<395xf32, #tpu.memory_space<smem>>
    %1428 = vector.broadcast %1427 : f32 to vector<8x128xf32>
    %1429 = arith.mulf %1398, %1428 : vector<8x128xf32>
    %1430 = arith.addf %1325, %1429 : vector<8x128xf32>
    %c11_195 = arith.constant 11 : index
    %1431 = arith.index_cast %6 : i32 to index
    %c0_196 = arith.constant 0 : index
    %1432 = vector.load %arg1[%c11_195, %1431, %c0_196] : memref<16x8x128xf32, #tpu.memory_space<vmem>>, vector<1x8x128xf32>
    %1433 = vector.shape_cast %1432 : vector<1x8x128xf32> to vector<8x128xf32>
    %c11_197 = arith.constant 11 : index
    %1434 = arith.index_cast %6 : i32 to index
    %c0_198 = arith.constant 0 : index
    %1435 = vector.load %arg2[%c11_197, %1434, %c0_198] : memref<16x8x128xf32, #tpu.memory_space<vmem>>, vector<1x8x128xf32>
    %1436 = vector.shape_cast %1435 : vector<1x8x128xf32> to vector<8x128xf32>
    %cst_199 = arith.constant 0.000000e+00 : f32
    %1437 = vector.broadcast %cst_199 : f32 to vector<8x128xf32>
    %1438 = arith.cmpf oeq, %1436, %1437 : vector<8x128xf32>
    %cst_200 = arith.constant 1.000000e+00 : f32
    %1439 = vector.broadcast %cst_200 : f32 to vector<8x128xf32>
    %1440 = arith.cmpf oeq, %1436, %1439 : vector<8x128xf32>
    %cst_201 = arith.constant 2.000000e+00 : f32
    %1441 = vector.broadcast %cst_201 : f32 to vector<8x128xf32>
    %1442 = arith.cmpf oeq, %1436, %1441 : vector<8x128xf32>
    %cst_202 = arith.constant 3.000000e+00 : f32
    %1443 = vector.broadcast %cst_202 : f32 to vector<8x128xf32>
    %1444 = arith.cmpf oeq, %1436, %1443 : vector<8x128xf32>
    %cst_203 = arith.constant 4.000000e+00 : f32
    %1445 = vector.broadcast %cst_203 : f32 to vector<8x128xf32>
    %1446 = arith.cmpf oeq, %1436, %1445 : vector<8x128xf32>
    %cst_204 = arith.constant 0.000000e+00 : f32
    %1447 = vector.broadcast %4 : f32 to vector<8x128xf32>
    %1448 = vector.broadcast %cst_204 : f32 to vector<8x128xf32>
    %1449 = arith.select %1446, %1447, %1448 : vector<8x128xi1>, vector<8x128xf32>
    %1450 = vector.broadcast %3 : f32 to vector<8x128xf32>
    %1451 = arith.select %1444, %1450, %1449 : vector<8x128xi1>, vector<8x128xf32>
    %1452 = vector.broadcast %2 : f32 to vector<8x128xf32>
    %1453 = arith.select %1442, %1452, %1451 : vector<8x128xi1>, vector<8x128xf32>
    %1454 = vector.broadcast %1 : f32 to vector<8x128xf32>
    %1455 = arith.select %1440, %1454, %1453 : vector<8x128xi1>, vector<8x128xf32>
    %1456 = vector.broadcast %0 : f32 to vector<8x128xf32>
    %1457 = arith.select %1438, %1456, %1455 : vector<8x128xi1>, vector<8x128xf32>
    %1458 = arith.mulf %1457, %1433 : vector<8x128xf32>
    %1459 = math.tanh %1458 : vector<8x128xf32>
    %cst_205 = arith.constant 0.000000e+00 : f32
    %1460 = vector.broadcast %cst_205 : f32 to vector<8x128xf32>
    %1461 = arith.maximumf %1459, %1460 : vector<8x128xf32>
    %c145 = arith.constant 145 : index
    %1462 = memref.load %arg4[%c145] : memref<395xf32, #tpu.memory_space<smem>>
    %1463 = vector.broadcast %1462 : f32 to vector<8x128xf32>
    %1464 = arith.mulf %108, %1463 : vector<8x128xf32>
    %c146 = arith.constant 146 : index
    %1465 = memref.load %arg4[%c146] : memref<395xf32, #tpu.memory_space<smem>>
    %1466 = vector.broadcast %1465 : f32 to vector<8x128xf32>
    %1467 = arith.mulf %133, %1466 : vector<8x128xf32>
    %1468 = arith.addf %1464, %1467 : vector<8x128xf32>
    %c147 = arith.constant 147 : index
    %1469 = memref.load %arg4[%c147] : memref<395xf32, #tpu.memory_space<smem>>
    %1470 = vector.broadcast %1469 : f32 to vector<8x128xf32>
    %1471 = arith.mulf %158, %1470 : vector<8x128xf32>
    %1472 = arith.addf %1468, %1471 : vector<8x128xf32>
    %c148 = arith.constant 148 : index
    %1473 = memref.load %arg4[%c148] : memref<395xf32, #tpu.memory_space<smem>>
    %1474 = vector.broadcast %1473 : f32 to vector<8x128xf32>
    %1475 = arith.mulf %183, %1474 : vector<8x128xf32>
    %1476 = arith.addf %1472, %1475 : vector<8x128xf32>
    %c149 = arith.constant 149 : index
    %1477 = memref.load %arg4[%c149] : memref<395xf32, #tpu.memory_space<smem>>
    %1478 = vector.broadcast %1477 : f32 to vector<8x128xf32>
    %1479 = arith.mulf %208, %1478 : vector<8x128xf32>
    %1480 = arith.addf %1476, %1479 : vector<8x128xf32>
    %c150 = arith.constant 150 : index
    %1481 = memref.load %arg4[%c150] : memref<395xf32, #tpu.memory_space<smem>>
    %1482 = vector.broadcast %1481 : f32 to vector<8x128xf32>
    %1483 = arith.mulf %233, %1482 : vector<8x128xf32>
    %1484 = arith.addf %1480, %1483 : vector<8x128xf32>
    %c151 = arith.constant 151 : index
    %1485 = memref.load %arg4[%c151] : memref<395xf32, #tpu.memory_space<smem>>
    %1486 = vector.broadcast %1485 : f32 to vector<8x128xf32>
    %1487 = arith.mulf %258, %1486 : vector<8x128xf32>
    %1488 = arith.addf %1484, %1487 : vector<8x128xf32>
    %c152 = arith.constant 152 : index
    %1489 = memref.load %arg4[%c152] : memref<395xf32, #tpu.memory_space<smem>>
    %1490 = vector.broadcast %1489 : f32 to vector<8x128xf32>
    %1491 = arith.mulf %283, %1490 : vector<8x128xf32>
    %1492 = arith.addf %1488, %1491 : vector<8x128xf32>
    %c196 = arith.constant 196 : index
    %1493 = memref.load %arg4[%c196] : memref<395xf32, #tpu.memory_space<smem>>
    %1494 = vector.broadcast %1493 : f32 to vector<8x128xf32>
    %1495 = arith.addf %1492, %1494 : vector<8x128xf32>
    %cst_206 = arith.constant 0.000000e+00 : f32
    %1496 = vector.broadcast %cst_206 : f32 to vector<8x128xf32>
    %1497 = arith.subf %1496, %1495 : vector<8x128xf32>
    %1498 = math.exp %1497 : vector<8x128xf32>
    %cst_207 = arith.constant 1.000000e+00 : f32
    %1499 = vector.broadcast %cst_207 : f32 to vector<8x128xf32>
    %1500 = arith.addf %1499, %1498 : vector<8x128xf32>
    %cst_208 = arith.constant 1.000000e+00 : f32
    %1501 = vector.broadcast %cst_208 : f32 to vector<8x128xf32>
    %1502 = arith.divf %1501, %1500 : vector<8x128xf32>
    %1503 = arith.mulf %1461, %1502 : vector<8x128xf32>
    %c212 = arith.constant 212 : index
    %1504 = memref.load %arg4[%c212] : memref<395xf32, #tpu.memory_space<smem>>
    %1505 = vector.broadcast %1504 : f32 to vector<8x128xf32>
    %1506 = arith.mulf %1503, %1505 : vector<8x128xf32>
    %1507 = arith.addf %1402, %1506 : vector<8x128xf32>
    %c228 = arith.constant 228 : index
    %1508 = memref.load %arg4[%c228] : memref<395xf32, #tpu.memory_space<smem>>
    %1509 = vector.broadcast %1508 : f32 to vector<8x128xf32>
    %1510 = arith.mulf %1503, %1509 : vector<8x128xf32>
    %1511 = arith.addf %1406, %1510 : vector<8x128xf32>
    %c244 = arith.constant 244 : index
    %1512 = memref.load %arg4[%c244] : memref<395xf32, #tpu.memory_space<smem>>
    %1513 = vector.broadcast %1512 : f32 to vector<8x128xf32>
    %1514 = arith.mulf %1503, %1513 : vector<8x128xf32>
    %1515 = arith.addf %1410, %1514 : vector<8x128xf32>
    %c260 = arith.constant 260 : index
    %1516 = memref.load %arg4[%c260] : memref<395xf32, #tpu.memory_space<smem>>
    %1517 = vector.broadcast %1516 : f32 to vector<8x128xf32>
    %1518 = arith.mulf %1503, %1517 : vector<8x128xf32>
    %1519 = arith.addf %1414, %1518 : vector<8x128xf32>
    %c276 = arith.constant 276 : index
    %1520 = memref.load %arg4[%c276] : memref<395xf32, #tpu.memory_space<smem>>
    %1521 = vector.broadcast %1520 : f32 to vector<8x128xf32>
    %1522 = arith.mulf %1503, %1521 : vector<8x128xf32>
    %1523 = arith.addf %1418, %1522 : vector<8x128xf32>
    %c292 = arith.constant 292 : index
    %1524 = memref.load %arg4[%c292] : memref<395xf32, #tpu.memory_space<smem>>
    %1525 = vector.broadcast %1524 : f32 to vector<8x128xf32>
    %1526 = arith.mulf %1503, %1525 : vector<8x128xf32>
    %1527 = arith.addf %1422, %1526 : vector<8x128xf32>
    %c308 = arith.constant 308 : index
    %1528 = memref.load %arg4[%c308] : memref<395xf32, #tpu.memory_space<smem>>
    %1529 = vector.broadcast %1528 : f32 to vector<8x128xf32>
    %1530 = arith.mulf %1503, %1529 : vector<8x128xf32>
    %1531 = arith.addf %1426, %1530 : vector<8x128xf32>
    %c324 = arith.constant 324 : index
    %1532 = memref.load %arg4[%c324] : memref<395xf32, #tpu.memory_space<smem>>
    %1533 = vector.broadcast %1532 : f32 to vector<8x128xf32>
    %1534 = arith.mulf %1503, %1533 : vector<8x128xf32>
    %1535 = arith.addf %1430, %1534 : vector<8x128xf32>
    %c12_209 = arith.constant 12 : index
    %1536 = arith.index_cast %6 : i32 to index
    %c0_210 = arith.constant 0 : index
    %1537 = vector.load %arg1[%c12_209, %1536, %c0_210] : memref<16x8x128xf32, #tpu.memory_space<vmem>>, vector<1x8x128xf32>
    %1538 = vector.shape_cast %1537 : vector<1x8x128xf32> to vector<8x128xf32>
    %c12_211 = arith.constant 12 : index
    %1539 = arith.index_cast %6 : i32 to index
    %c0_212 = arith.constant 0 : index
    %1540 = vector.load %arg2[%c12_211, %1539, %c0_212] : memref<16x8x128xf32, #tpu.memory_space<vmem>>, vector<1x8x128xf32>
    %1541 = vector.shape_cast %1540 : vector<1x8x128xf32> to vector<8x128xf32>
    %cst_213 = arith.constant 0.000000e+00 : f32
    %1542 = vector.broadcast %cst_213 : f32 to vector<8x128xf32>
    %1543 = arith.cmpf oeq, %1541, %1542 : vector<8x128xf32>
    %cst_214 = arith.constant 1.000000e+00 : f32
    %1544 = vector.broadcast %cst_214 : f32 to vector<8x128xf32>
    %1545 = arith.cmpf oeq, %1541, %1544 : vector<8x128xf32>
    %cst_215 = arith.constant 2.000000e+00 : f32
    %1546 = vector.broadcast %cst_215 : f32 to vector<8x128xf32>
    %1547 = arith.cmpf oeq, %1541, %1546 : vector<8x128xf32>
    %cst_216 = arith.constant 3.000000e+00 : f32
    %1548 = vector.broadcast %cst_216 : f32 to vector<8x128xf32>
    %1549 = arith.cmpf oeq, %1541, %1548 : vector<8x128xf32>
    %cst_217 = arith.constant 4.000000e+00 : f32
    %1550 = vector.broadcast %cst_217 : f32 to vector<8x128xf32>
    %1551 = arith.cmpf oeq, %1541, %1550 : vector<8x128xf32>
    %cst_218 = arith.constant 0.000000e+00 : f32
    %1552 = vector.broadcast %4 : f32 to vector<8x128xf32>
    %1553 = vector.broadcast %cst_218 : f32 to vector<8x128xf32>
    %1554 = arith.select %1551, %1552, %1553 : vector<8x128xi1>, vector<8x128xf32>
    %1555 = vector.broadcast %3 : f32 to vector<8x128xf32>
    %1556 = arith.select %1549, %1555, %1554 : vector<8x128xi1>, vector<8x128xf32>
    %1557 = vector.broadcast %2 : f32 to vector<8x128xf32>
    %1558 = arith.select %1547, %1557, %1556 : vector<8x128xi1>, vector<8x128xf32>
    %1559 = vector.broadcast %1 : f32 to vector<8x128xf32>
    %1560 = arith.select %1545, %1559, %1558 : vector<8x128xi1>, vector<8x128xf32>
    %1561 = vector.broadcast %0 : f32 to vector<8x128xf32>
    %1562 = arith.select %1543, %1561, %1560 : vector<8x128xi1>, vector<8x128xf32>
    %1563 = arith.mulf %1562, %1538 : vector<8x128xf32>
    %1564 = math.tanh %1563 : vector<8x128xf32>
    %cst_219 = arith.constant 0.000000e+00 : f32
    %1565 = vector.broadcast %cst_219 : f32 to vector<8x128xf32>
    %1566 = arith.maximumf %1564, %1565 : vector<8x128xf32>
    %c153 = arith.constant 153 : index
    %1567 = memref.load %arg4[%c153] : memref<395xf32, #tpu.memory_space<smem>>
    %1568 = vector.broadcast %1567 : f32 to vector<8x128xf32>
    %1569 = arith.mulf %108, %1568 : vector<8x128xf32>
    %c154 = arith.constant 154 : index
    %1570 = memref.load %arg4[%c154] : memref<395xf32, #tpu.memory_space<smem>>
    %1571 = vector.broadcast %1570 : f32 to vector<8x128xf32>
    %1572 = arith.mulf %133, %1571 : vector<8x128xf32>
    %1573 = arith.addf %1569, %1572 : vector<8x128xf32>
    %c155 = arith.constant 155 : index
    %1574 = memref.load %arg4[%c155] : memref<395xf32, #tpu.memory_space<smem>>
    %1575 = vector.broadcast %1574 : f32 to vector<8x128xf32>
    %1576 = arith.mulf %158, %1575 : vector<8x128xf32>
    %1577 = arith.addf %1573, %1576 : vector<8x128xf32>
    %c156 = arith.constant 156 : index
    %1578 = memref.load %arg4[%c156] : memref<395xf32, #tpu.memory_space<smem>>
    %1579 = vector.broadcast %1578 : f32 to vector<8x128xf32>
    %1580 = arith.mulf %183, %1579 : vector<8x128xf32>
    %1581 = arith.addf %1577, %1580 : vector<8x128xf32>
    %c157 = arith.constant 157 : index
    %1582 = memref.load %arg4[%c157] : memref<395xf32, #tpu.memory_space<smem>>
    %1583 = vector.broadcast %1582 : f32 to vector<8x128xf32>
    %1584 = arith.mulf %208, %1583 : vector<8x128xf32>
    %1585 = arith.addf %1581, %1584 : vector<8x128xf32>
    %c158 = arith.constant 158 : index
    %1586 = memref.load %arg4[%c158] : memref<395xf32, #tpu.memory_space<smem>>
    %1587 = vector.broadcast %1586 : f32 to vector<8x128xf32>
    %1588 = arith.mulf %233, %1587 : vector<8x128xf32>
    %1589 = arith.addf %1585, %1588 : vector<8x128xf32>
    %c159 = arith.constant 159 : index
    %1590 = memref.load %arg4[%c159] : memref<395xf32, #tpu.memory_space<smem>>
    %1591 = vector.broadcast %1590 : f32 to vector<8x128xf32>
    %1592 = arith.mulf %258, %1591 : vector<8x128xf32>
    %1593 = arith.addf %1589, %1592 : vector<8x128xf32>
    %c160 = arith.constant 160 : index
    %1594 = memref.load %arg4[%c160] : memref<395xf32, #tpu.memory_space<smem>>
    %1595 = vector.broadcast %1594 : f32 to vector<8x128xf32>
    %1596 = arith.mulf %283, %1595 : vector<8x128xf32>
    %1597 = arith.addf %1593, %1596 : vector<8x128xf32>
    %c197 = arith.constant 197 : index
    %1598 = memref.load %arg4[%c197] : memref<395xf32, #tpu.memory_space<smem>>
    %1599 = vector.broadcast %1598 : f32 to vector<8x128xf32>
    %1600 = arith.addf %1597, %1599 : vector<8x128xf32>
    %cst_220 = arith.constant 0.000000e+00 : f32
    %1601 = vector.broadcast %cst_220 : f32 to vector<8x128xf32>
    %1602 = arith.subf %1601, %1600 : vector<8x128xf32>
    %1603 = math.exp %1602 : vector<8x128xf32>
    %cst_221 = arith.constant 1.000000e+00 : f32
    %1604 = vector.broadcast %cst_221 : f32 to vector<8x128xf32>
    %1605 = arith.addf %1604, %1603 : vector<8x128xf32>
    %cst_222 = arith.constant 1.000000e+00 : f32
    %1606 = vector.broadcast %cst_222 : f32 to vector<8x128xf32>
    %1607 = arith.divf %1606, %1605 : vector<8x128xf32>
    %1608 = arith.mulf %1566, %1607 : vector<8x128xf32>
    %c213 = arith.constant 213 : index
    %1609 = memref.load %arg4[%c213] : memref<395xf32, #tpu.memory_space<smem>>
    %1610 = vector.broadcast %1609 : f32 to vector<8x128xf32>
    %1611 = arith.mulf %1608, %1610 : vector<8x128xf32>
    %1612 = arith.addf %1507, %1611 : vector<8x128xf32>
    %c229 = arith.constant 229 : index
    %1613 = memref.load %arg4[%c229] : memref<395xf32, #tpu.memory_space<smem>>
    %1614 = vector.broadcast %1613 : f32 to vector<8x128xf32>
    %1615 = arith.mulf %1608, %1614 : vector<8x128xf32>
    %1616 = arith.addf %1511, %1615 : vector<8x128xf32>
    %c245 = arith.constant 245 : index
    %1617 = memref.load %arg4[%c245] : memref<395xf32, #tpu.memory_space<smem>>
    %1618 = vector.broadcast %1617 : f32 to vector<8x128xf32>
    %1619 = arith.mulf %1608, %1618 : vector<8x128xf32>
    %1620 = arith.addf %1515, %1619 : vector<8x128xf32>
    %c261 = arith.constant 261 : index
    %1621 = memref.load %arg4[%c261] : memref<395xf32, #tpu.memory_space<smem>>
    %1622 = vector.broadcast %1621 : f32 to vector<8x128xf32>
    %1623 = arith.mulf %1608, %1622 : vector<8x128xf32>
    %1624 = arith.addf %1519, %1623 : vector<8x128xf32>
    %c277 = arith.constant 277 : index
    %1625 = memref.load %arg4[%c277] : memref<395xf32, #tpu.memory_space<smem>>
    %1626 = vector.broadcast %1625 : f32 to vector<8x128xf32>
    %1627 = arith.mulf %1608, %1626 : vector<8x128xf32>
    %1628 = arith.addf %1523, %1627 : vector<8x128xf32>
    %c293 = arith.constant 293 : index
    %1629 = memref.load %arg4[%c293] : memref<395xf32, #tpu.memory_space<smem>>
    %1630 = vector.broadcast %1629 : f32 to vector<8x128xf32>
    %1631 = arith.mulf %1608, %1630 : vector<8x128xf32>
    %1632 = arith.addf %1527, %1631 : vector<8x128xf32>
    %c309 = arith.constant 309 : index
    %1633 = memref.load %arg4[%c309] : memref<395xf32, #tpu.memory_space<smem>>
    %1634 = vector.broadcast %1633 : f32 to vector<8x128xf32>
    %1635 = arith.mulf %1608, %1634 : vector<8x128xf32>
    %1636 = arith.addf %1531, %1635 : vector<8x128xf32>
    %c325 = arith.constant 325 : index
    %1637 = memref.load %arg4[%c325] : memref<395xf32, #tpu.memory_space<smem>>
    %1638 = vector.broadcast %1637 : f32 to vector<8x128xf32>
    %1639 = arith.mulf %1608, %1638 : vector<8x128xf32>
    %1640 = arith.addf %1535, %1639 : vector<8x128xf32>
    %c13_223 = arith.constant 13 : index
    %1641 = arith.index_cast %6 : i32 to index
    %c0_224 = arith.constant 0 : index
    %1642 = vector.load %arg1[%c13_223, %1641, %c0_224] : memref<16x8x128xf32, #tpu.memory_space<vmem>>, vector<1x8x128xf32>
    %1643 = vector.shape_cast %1642 : vector<1x8x128xf32> to vector<8x128xf32>
    %c13_225 = arith.constant 13 : index
    %1644 = arith.index_cast %6 : i32 to index
    %c0_226 = arith.constant 0 : index
    %1645 = vector.load %arg2[%c13_225, %1644, %c0_226] : memref<16x8x128xf32, #tpu.memory_space<vmem>>, vector<1x8x128xf32>
    %1646 = vector.shape_cast %1645 : vector<1x8x128xf32> to vector<8x128xf32>
    %cst_227 = arith.constant 0.000000e+00 : f32
    %1647 = vector.broadcast %cst_227 : f32 to vector<8x128xf32>
    %1648 = arith.cmpf oeq, %1646, %1647 : vector<8x128xf32>
    %cst_228 = arith.constant 1.000000e+00 : f32
    %1649 = vector.broadcast %cst_228 : f32 to vector<8x128xf32>
    %1650 = arith.cmpf oeq, %1646, %1649 : vector<8x128xf32>
    %cst_229 = arith.constant 2.000000e+00 : f32
    %1651 = vector.broadcast %cst_229 : f32 to vector<8x128xf32>
    %1652 = arith.cmpf oeq, %1646, %1651 : vector<8x128xf32>
    %cst_230 = arith.constant 3.000000e+00 : f32
    %1653 = vector.broadcast %cst_230 : f32 to vector<8x128xf32>
    %1654 = arith.cmpf oeq, %1646, %1653 : vector<8x128xf32>
    %cst_231 = arith.constant 4.000000e+00 : f32
    %1655 = vector.broadcast %cst_231 : f32 to vector<8x128xf32>
    %1656 = arith.cmpf oeq, %1646, %1655 : vector<8x128xf32>
    %cst_232 = arith.constant 0.000000e+00 : f32
    %1657 = vector.broadcast %4 : f32 to vector<8x128xf32>
    %1658 = vector.broadcast %cst_232 : f32 to vector<8x128xf32>
    %1659 = arith.select %1656, %1657, %1658 : vector<8x128xi1>, vector<8x128xf32>
    %1660 = vector.broadcast %3 : f32 to vector<8x128xf32>
    %1661 = arith.select %1654, %1660, %1659 : vector<8x128xi1>, vector<8x128xf32>
    %1662 = vector.broadcast %2 : f32 to vector<8x128xf32>
    %1663 = arith.select %1652, %1662, %1661 : vector<8x128xi1>, vector<8x128xf32>
    %1664 = vector.broadcast %1 : f32 to vector<8x128xf32>
    %1665 = arith.select %1650, %1664, %1663 : vector<8x128xi1>, vector<8x128xf32>
    %1666 = vector.broadcast %0 : f32 to vector<8x128xf32>
    %1667 = arith.select %1648, %1666, %1665 : vector<8x128xi1>, vector<8x128xf32>
    %1668 = arith.mulf %1667, %1643 : vector<8x128xf32>
    %1669 = math.tanh %1668 : vector<8x128xf32>
    %cst_233 = arith.constant 0.000000e+00 : f32
    %1670 = vector.broadcast %cst_233 : f32 to vector<8x128xf32>
    %1671 = arith.maximumf %1669, %1670 : vector<8x128xf32>
    %c161 = arith.constant 161 : index
    %1672 = memref.load %arg4[%c161] : memref<395xf32, #tpu.memory_space<smem>>
    %1673 = vector.broadcast %1672 : f32 to vector<8x128xf32>
    %1674 = arith.mulf %108, %1673 : vector<8x128xf32>
    %c162 = arith.constant 162 : index
    %1675 = memref.load %arg4[%c162] : memref<395xf32, #tpu.memory_space<smem>>
    %1676 = vector.broadcast %1675 : f32 to vector<8x128xf32>
    %1677 = arith.mulf %133, %1676 : vector<8x128xf32>
    %1678 = arith.addf %1674, %1677 : vector<8x128xf32>
    %c163 = arith.constant 163 : index
    %1679 = memref.load %arg4[%c163] : memref<395xf32, #tpu.memory_space<smem>>
    %1680 = vector.broadcast %1679 : f32 to vector<8x128xf32>
    %1681 = arith.mulf %158, %1680 : vector<8x128xf32>
    %1682 = arith.addf %1678, %1681 : vector<8x128xf32>
    %c164 = arith.constant 164 : index
    %1683 = memref.load %arg4[%c164] : memref<395xf32, #tpu.memory_space<smem>>
    %1684 = vector.broadcast %1683 : f32 to vector<8x128xf32>
    %1685 = arith.mulf %183, %1684 : vector<8x128xf32>
    %1686 = arith.addf %1682, %1685 : vector<8x128xf32>
    %c165 = arith.constant 165 : index
    %1687 = memref.load %arg4[%c165] : memref<395xf32, #tpu.memory_space<smem>>
    %1688 = vector.broadcast %1687 : f32 to vector<8x128xf32>
    %1689 = arith.mulf %208, %1688 : vector<8x128xf32>
    %1690 = arith.addf %1686, %1689 : vector<8x128xf32>
    %c166 = arith.constant 166 : index
    %1691 = memref.load %arg4[%c166] : memref<395xf32, #tpu.memory_space<smem>>
    %1692 = vector.broadcast %1691 : f32 to vector<8x128xf32>
    %1693 = arith.mulf %233, %1692 : vector<8x128xf32>
    %1694 = arith.addf %1690, %1693 : vector<8x128xf32>
    %c167 = arith.constant 167 : index
    %1695 = memref.load %arg4[%c167] : memref<395xf32, #tpu.memory_space<smem>>
    %1696 = vector.broadcast %1695 : f32 to vector<8x128xf32>
    %1697 = arith.mulf %258, %1696 : vector<8x128xf32>
    %1698 = arith.addf %1694, %1697 : vector<8x128xf32>
    %c168 = arith.constant 168 : index
    %1699 = memref.load %arg4[%c168] : memref<395xf32, #tpu.memory_space<smem>>
    %1700 = vector.broadcast %1699 : f32 to vector<8x128xf32>
    %1701 = arith.mulf %283, %1700 : vector<8x128xf32>
    %1702 = arith.addf %1698, %1701 : vector<8x128xf32>
    %c198 = arith.constant 198 : index
    %1703 = memref.load %arg4[%c198] : memref<395xf32, #tpu.memory_space<smem>>
    %1704 = vector.broadcast %1703 : f32 to vector<8x128xf32>
    %1705 = arith.addf %1702, %1704 : vector<8x128xf32>
    %cst_234 = arith.constant 0.000000e+00 : f32
    %1706 = vector.broadcast %cst_234 : f32 to vector<8x128xf32>
    %1707 = arith.subf %1706, %1705 : vector<8x128xf32>
    %1708 = math.exp %1707 : vector<8x128xf32>
    %cst_235 = arith.constant 1.000000e+00 : f32
    %1709 = vector.broadcast %cst_235 : f32 to vector<8x128xf32>
    %1710 = arith.addf %1709, %1708 : vector<8x128xf32>
    %cst_236 = arith.constant 1.000000e+00 : f32
    %1711 = vector.broadcast %cst_236 : f32 to vector<8x128xf32>
    %1712 = arith.divf %1711, %1710 : vector<8x128xf32>
    %1713 = arith.mulf %1671, %1712 : vector<8x128xf32>
    %c214 = arith.constant 214 : index
    %1714 = memref.load %arg4[%c214] : memref<395xf32, #tpu.memory_space<smem>>
    %1715 = vector.broadcast %1714 : f32 to vector<8x128xf32>
    %1716 = arith.mulf %1713, %1715 : vector<8x128xf32>
    %1717 = arith.addf %1612, %1716 : vector<8x128xf32>
    %c230 = arith.constant 230 : index
    %1718 = memref.load %arg4[%c230] : memref<395xf32, #tpu.memory_space<smem>>
    %1719 = vector.broadcast %1718 : f32 to vector<8x128xf32>
    %1720 = arith.mulf %1713, %1719 : vector<8x128xf32>
    %1721 = arith.addf %1616, %1720 : vector<8x128xf32>
    %c246 = arith.constant 246 : index
    %1722 = memref.load %arg4[%c246] : memref<395xf32, #tpu.memory_space<smem>>
    %1723 = vector.broadcast %1722 : f32 to vector<8x128xf32>
    %1724 = arith.mulf %1713, %1723 : vector<8x128xf32>
    %1725 = arith.addf %1620, %1724 : vector<8x128xf32>
    %c262 = arith.constant 262 : index
    %1726 = memref.load %arg4[%c262] : memref<395xf32, #tpu.memory_space<smem>>
    %1727 = vector.broadcast %1726 : f32 to vector<8x128xf32>
    %1728 = arith.mulf %1713, %1727 : vector<8x128xf32>
    %1729 = arith.addf %1624, %1728 : vector<8x128xf32>
    %c278 = arith.constant 278 : index
    %1730 = memref.load %arg4[%c278] : memref<395xf32, #tpu.memory_space<smem>>
    %1731 = vector.broadcast %1730 : f32 to vector<8x128xf32>
    %1732 = arith.mulf %1713, %1731 : vector<8x128xf32>
    %1733 = arith.addf %1628, %1732 : vector<8x128xf32>
    %c294 = arith.constant 294 : index
    %1734 = memref.load %arg4[%c294] : memref<395xf32, #tpu.memory_space<smem>>
    %1735 = vector.broadcast %1734 : f32 to vector<8x128xf32>
    %1736 = arith.mulf %1713, %1735 : vector<8x128xf32>
    %1737 = arith.addf %1632, %1736 : vector<8x128xf32>
    %c310 = arith.constant 310 : index
    %1738 = memref.load %arg4[%c310] : memref<395xf32, #tpu.memory_space<smem>>
    %1739 = vector.broadcast %1738 : f32 to vector<8x128xf32>
    %1740 = arith.mulf %1713, %1739 : vector<8x128xf32>
    %1741 = arith.addf %1636, %1740 : vector<8x128xf32>
    %c326 = arith.constant 326 : index
    %1742 = memref.load %arg4[%c326] : memref<395xf32, #tpu.memory_space<smem>>
    %1743 = vector.broadcast %1742 : f32 to vector<8x128xf32>
    %1744 = arith.mulf %1713, %1743 : vector<8x128xf32>
    %1745 = arith.addf %1640, %1744 : vector<8x128xf32>
    %c14_237 = arith.constant 14 : index
    %1746 = arith.index_cast %6 : i32 to index
    %c0_238 = arith.constant 0 : index
    %1747 = vector.load %arg1[%c14_237, %1746, %c0_238] : memref<16x8x128xf32, #tpu.memory_space<vmem>>, vector<1x8x128xf32>
    %1748 = vector.shape_cast %1747 : vector<1x8x128xf32> to vector<8x128xf32>
    %c14_239 = arith.constant 14 : index
    %1749 = arith.index_cast %6 : i32 to index
    %c0_240 = arith.constant 0 : index
    %1750 = vector.load %arg2[%c14_239, %1749, %c0_240] : memref<16x8x128xf32, #tpu.memory_space<vmem>>, vector<1x8x128xf32>
    %1751 = vector.shape_cast %1750 : vector<1x8x128xf32> to vector<8x128xf32>
    %cst_241 = arith.constant 0.000000e+00 : f32
    %1752 = vector.broadcast %cst_241 : f32 to vector<8x128xf32>
    %1753 = arith.cmpf oeq, %1751, %1752 : vector<8x128xf32>
    %cst_242 = arith.constant 1.000000e+00 : f32
    %1754 = vector.broadcast %cst_242 : f32 to vector<8x128xf32>
    %1755 = arith.cmpf oeq, %1751, %1754 : vector<8x128xf32>
    %cst_243 = arith.constant 2.000000e+00 : f32
    %1756 = vector.broadcast %cst_243 : f32 to vector<8x128xf32>
    %1757 = arith.cmpf oeq, %1751, %1756 : vector<8x128xf32>
    %cst_244 = arith.constant 3.000000e+00 : f32
    %1758 = vector.broadcast %cst_244 : f32 to vector<8x128xf32>
    %1759 = arith.cmpf oeq, %1751, %1758 : vector<8x128xf32>
    %cst_245 = arith.constant 4.000000e+00 : f32
    %1760 = vector.broadcast %cst_245 : f32 to vector<8x128xf32>
    %1761 = arith.cmpf oeq, %1751, %1760 : vector<8x128xf32>
    %cst_246 = arith.constant 0.000000e+00 : f32
    %1762 = vector.broadcast %4 : f32 to vector<8x128xf32>
    %1763 = vector.broadcast %cst_246 : f32 to vector<8x128xf32>
    %1764 = arith.select %1761, %1762, %1763 : vector<8x128xi1>, vector<8x128xf32>
    %1765 = vector.broadcast %3 : f32 to vector<8x128xf32>
    %1766 = arith.select %1759, %1765, %1764 : vector<8x128xi1>, vector<8x128xf32>
    %1767 = vector.broadcast %2 : f32 to vector<8x128xf32>
    %1768 = arith.select %1757, %1767, %1766 : vector<8x128xi1>, vector<8x128xf32>
    %1769 = vector.broadcast %1 : f32 to vector<8x128xf32>
    %1770 = arith.select %1755, %1769, %1768 : vector<8x128xi1>, vector<8x128xf32>
    %1771 = vector.broadcast %0 : f32 to vector<8x128xf32>
    %1772 = arith.select %1753, %1771, %1770 : vector<8x128xi1>, vector<8x128xf32>
    %1773 = arith.mulf %1772, %1748 : vector<8x128xf32>
    %1774 = math.tanh %1773 : vector<8x128xf32>
    %cst_247 = arith.constant 0.000000e+00 : f32
    %1775 = vector.broadcast %cst_247 : f32 to vector<8x128xf32>
    %1776 = arith.maximumf %1774, %1775 : vector<8x128xf32>
    %c169 = arith.constant 169 : index
    %1777 = memref.load %arg4[%c169] : memref<395xf32, #tpu.memory_space<smem>>
    %1778 = vector.broadcast %1777 : f32 to vector<8x128xf32>
    %1779 = arith.mulf %108, %1778 : vector<8x128xf32>
    %c170 = arith.constant 170 : index
    %1780 = memref.load %arg4[%c170] : memref<395xf32, #tpu.memory_space<smem>>
    %1781 = vector.broadcast %1780 : f32 to vector<8x128xf32>
    %1782 = arith.mulf %133, %1781 : vector<8x128xf32>
    %1783 = arith.addf %1779, %1782 : vector<8x128xf32>
    %c171 = arith.constant 171 : index
    %1784 = memref.load %arg4[%c171] : memref<395xf32, #tpu.memory_space<smem>>
    %1785 = vector.broadcast %1784 : f32 to vector<8x128xf32>
    %1786 = arith.mulf %158, %1785 : vector<8x128xf32>
    %1787 = arith.addf %1783, %1786 : vector<8x128xf32>
    %c172 = arith.constant 172 : index
    %1788 = memref.load %arg4[%c172] : memref<395xf32, #tpu.memory_space<smem>>
    %1789 = vector.broadcast %1788 : f32 to vector<8x128xf32>
    %1790 = arith.mulf %183, %1789 : vector<8x128xf32>
    %1791 = arith.addf %1787, %1790 : vector<8x128xf32>
    %c173 = arith.constant 173 : index
    %1792 = memref.load %arg4[%c173] : memref<395xf32, #tpu.memory_space<smem>>
    %1793 = vector.broadcast %1792 : f32 to vector<8x128xf32>
    %1794 = arith.mulf %208, %1793 : vector<8x128xf32>
    %1795 = arith.addf %1791, %1794 : vector<8x128xf32>
    %c174 = arith.constant 174 : index
    %1796 = memref.load %arg4[%c174] : memref<395xf32, #tpu.memory_space<smem>>
    %1797 = vector.broadcast %1796 : f32 to vector<8x128xf32>
    %1798 = arith.mulf %233, %1797 : vector<8x128xf32>
    %1799 = arith.addf %1795, %1798 : vector<8x128xf32>
    %c175 = arith.constant 175 : index
    %1800 = memref.load %arg4[%c175] : memref<395xf32, #tpu.memory_space<smem>>
    %1801 = vector.broadcast %1800 : f32 to vector<8x128xf32>
    %1802 = arith.mulf %258, %1801 : vector<8x128xf32>
    %1803 = arith.addf %1799, %1802 : vector<8x128xf32>
    %c176 = arith.constant 176 : index
    %1804 = memref.load %arg4[%c176] : memref<395xf32, #tpu.memory_space<smem>>
    %1805 = vector.broadcast %1804 : f32 to vector<8x128xf32>
    %1806 = arith.mulf %283, %1805 : vector<8x128xf32>
    %1807 = arith.addf %1803, %1806 : vector<8x128xf32>
    %c199 = arith.constant 199 : index
    %1808 = memref.load %arg4[%c199] : memref<395xf32, #tpu.memory_space<smem>>
    %1809 = vector.broadcast %1808 : f32 to vector<8x128xf32>
    %1810 = arith.addf %1807, %1809 : vector<8x128xf32>
    %cst_248 = arith.constant 0.000000e+00 : f32
    %1811 = vector.broadcast %cst_248 : f32 to vector<8x128xf32>
    %1812 = arith.subf %1811, %1810 : vector<8x128xf32>
    %1813 = math.exp %1812 : vector<8x128xf32>
    %cst_249 = arith.constant 1.000000e+00 : f32
    %1814 = vector.broadcast %cst_249 : f32 to vector<8x128xf32>
    %1815 = arith.addf %1814, %1813 : vector<8x128xf32>
    %cst_250 = arith.constant 1.000000e+00 : f32
    %1816 = vector.broadcast %cst_250 : f32 to vector<8x128xf32>
    %1817 = arith.divf %1816, %1815 : vector<8x128xf32>
    %1818 = arith.mulf %1776, %1817 : vector<8x128xf32>
    %c215 = arith.constant 215 : index
    %1819 = memref.load %arg4[%c215] : memref<395xf32, #tpu.memory_space<smem>>
    %1820 = vector.broadcast %1819 : f32 to vector<8x128xf32>
    %1821 = arith.mulf %1818, %1820 : vector<8x128xf32>
    %1822 = arith.addf %1717, %1821 : vector<8x128xf32>
    %c231 = arith.constant 231 : index
    %1823 = memref.load %arg4[%c231] : memref<395xf32, #tpu.memory_space<smem>>
    %1824 = vector.broadcast %1823 : f32 to vector<8x128xf32>
    %1825 = arith.mulf %1818, %1824 : vector<8x128xf32>
    %1826 = arith.addf %1721, %1825 : vector<8x128xf32>
    %c247 = arith.constant 247 : index
    %1827 = memref.load %arg4[%c247] : memref<395xf32, #tpu.memory_space<smem>>
    %1828 = vector.broadcast %1827 : f32 to vector<8x128xf32>
    %1829 = arith.mulf %1818, %1828 : vector<8x128xf32>
    %1830 = arith.addf %1725, %1829 : vector<8x128xf32>
    %c263 = arith.constant 263 : index
    %1831 = memref.load %arg4[%c263] : memref<395xf32, #tpu.memory_space<smem>>
    %1832 = vector.broadcast %1831 : f32 to vector<8x128xf32>
    %1833 = arith.mulf %1818, %1832 : vector<8x128xf32>
    %1834 = arith.addf %1729, %1833 : vector<8x128xf32>
    %c279 = arith.constant 279 : index
    %1835 = memref.load %arg4[%c279] : memref<395xf32, #tpu.memory_space<smem>>
    %1836 = vector.broadcast %1835 : f32 to vector<8x128xf32>
    %1837 = arith.mulf %1818, %1836 : vector<8x128xf32>
    %1838 = arith.addf %1733, %1837 : vector<8x128xf32>
    %c295 = arith.constant 295 : index
    %1839 = memref.load %arg4[%c295] : memref<395xf32, #tpu.memory_space<smem>>
    %1840 = vector.broadcast %1839 : f32 to vector<8x128xf32>
    %1841 = arith.mulf %1818, %1840 : vector<8x128xf32>
    %1842 = arith.addf %1737, %1841 : vector<8x128xf32>
    %c311 = arith.constant 311 : index
    %1843 = memref.load %arg4[%c311] : memref<395xf32, #tpu.memory_space<smem>>
    %1844 = vector.broadcast %1843 : f32 to vector<8x128xf32>
    %1845 = arith.mulf %1818, %1844 : vector<8x128xf32>
    %1846 = arith.addf %1741, %1845 : vector<8x128xf32>
    %c327 = arith.constant 327 : index
    %1847 = memref.load %arg4[%c327] : memref<395xf32, #tpu.memory_space<smem>>
    %1848 = vector.broadcast %1847 : f32 to vector<8x128xf32>
    %1849 = arith.mulf %1818, %1848 : vector<8x128xf32>
    %1850 = arith.addf %1745, %1849 : vector<8x128xf32>
    %c15_251 = arith.constant 15 : index
    %1851 = arith.index_cast %6 : i32 to index
    %c0_252 = arith.constant 0 : index
    %1852 = vector.load %arg1[%c15_251, %1851, %c0_252] : memref<16x8x128xf32, #tpu.memory_space<vmem>>, vector<1x8x128xf32>
    %1853 = vector.shape_cast %1852 : vector<1x8x128xf32> to vector<8x128xf32>
    %c15_253 = arith.constant 15 : index
    %1854 = arith.index_cast %6 : i32 to index
    %c0_254 = arith.constant 0 : index
    %1855 = vector.load %arg2[%c15_253, %1854, %c0_254] : memref<16x8x128xf32, #tpu.memory_space<vmem>>, vector<1x8x128xf32>
    %1856 = vector.shape_cast %1855 : vector<1x8x128xf32> to vector<8x128xf32>
    %cst_255 = arith.constant 0.000000e+00 : f32
    %1857 = vector.broadcast %cst_255 : f32 to vector<8x128xf32>
    %1858 = arith.cmpf oeq, %1856, %1857 : vector<8x128xf32>
    %cst_256 = arith.constant 1.000000e+00 : f32
    %1859 = vector.broadcast %cst_256 : f32 to vector<8x128xf32>
    %1860 = arith.cmpf oeq, %1856, %1859 : vector<8x128xf32>
    %cst_257 = arith.constant 2.000000e+00 : f32
    %1861 = vector.broadcast %cst_257 : f32 to vector<8x128xf32>
    %1862 = arith.cmpf oeq, %1856, %1861 : vector<8x128xf32>
    %cst_258 = arith.constant 3.000000e+00 : f32
    %1863 = vector.broadcast %cst_258 : f32 to vector<8x128xf32>
    %1864 = arith.cmpf oeq, %1856, %1863 : vector<8x128xf32>
    %cst_259 = arith.constant 4.000000e+00 : f32
    %1865 = vector.broadcast %cst_259 : f32 to vector<8x128xf32>
    %1866 = arith.cmpf oeq, %1856, %1865 : vector<8x128xf32>
    %cst_260 = arith.constant 0.000000e+00 : f32
    %1867 = vector.broadcast %4 : f32 to vector<8x128xf32>
    %1868 = vector.broadcast %cst_260 : f32 to vector<8x128xf32>
    %1869 = arith.select %1866, %1867, %1868 : vector<8x128xi1>, vector<8x128xf32>
    %1870 = vector.broadcast %3 : f32 to vector<8x128xf32>
    %1871 = arith.select %1864, %1870, %1869 : vector<8x128xi1>, vector<8x128xf32>
    %1872 = vector.broadcast %2 : f32 to vector<8x128xf32>
    %1873 = arith.select %1862, %1872, %1871 : vector<8x128xi1>, vector<8x128xf32>
    %1874 = vector.broadcast %1 : f32 to vector<8x128xf32>
    %1875 = arith.select %1860, %1874, %1873 : vector<8x128xi1>, vector<8x128xf32>
    %1876 = vector.broadcast %0 : f32 to vector<8x128xf32>
    %1877 = arith.select %1858, %1876, %1875 : vector<8x128xi1>, vector<8x128xf32>
    %1878 = arith.mulf %1877, %1853 : vector<8x128xf32>
    %1879 = math.tanh %1878 : vector<8x128xf32>
    %cst_261 = arith.constant 0.000000e+00 : f32
    %1880 = vector.broadcast %cst_261 : f32 to vector<8x128xf32>
    %1881 = arith.maximumf %1879, %1880 : vector<8x128xf32>
    %c177 = arith.constant 177 : index
    %1882 = memref.load %arg4[%c177] : memref<395xf32, #tpu.memory_space<smem>>
    %1883 = vector.broadcast %1882 : f32 to vector<8x128xf32>
    %1884 = arith.mulf %108, %1883 : vector<8x128xf32>
    %c178 = arith.constant 178 : index
    %1885 = memref.load %arg4[%c178] : memref<395xf32, #tpu.memory_space<smem>>
    %1886 = vector.broadcast %1885 : f32 to vector<8x128xf32>
    %1887 = arith.mulf %133, %1886 : vector<8x128xf32>
    %1888 = arith.addf %1884, %1887 : vector<8x128xf32>
    %c179 = arith.constant 179 : index
    %1889 = memref.load %arg4[%c179] : memref<395xf32, #tpu.memory_space<smem>>
    %1890 = vector.broadcast %1889 : f32 to vector<8x128xf32>
    %1891 = arith.mulf %158, %1890 : vector<8x128xf32>
    %1892 = arith.addf %1888, %1891 : vector<8x128xf32>
    %c180 = arith.constant 180 : index
    %1893 = memref.load %arg4[%c180] : memref<395xf32, #tpu.memory_space<smem>>
    %1894 = vector.broadcast %1893 : f32 to vector<8x128xf32>
    %1895 = arith.mulf %183, %1894 : vector<8x128xf32>
    %1896 = arith.addf %1892, %1895 : vector<8x128xf32>
    %c181 = arith.constant 181 : index
    %1897 = memref.load %arg4[%c181] : memref<395xf32, #tpu.memory_space<smem>>
    %1898 = vector.broadcast %1897 : f32 to vector<8x128xf32>
    %1899 = arith.mulf %208, %1898 : vector<8x128xf32>
    %1900 = arith.addf %1896, %1899 : vector<8x128xf32>
    %c182 = arith.constant 182 : index
    %1901 = memref.load %arg4[%c182] : memref<395xf32, #tpu.memory_space<smem>>
    %1902 = vector.broadcast %1901 : f32 to vector<8x128xf32>
    %1903 = arith.mulf %233, %1902 : vector<8x128xf32>
    %1904 = arith.addf %1900, %1903 : vector<8x128xf32>
    %c183 = arith.constant 183 : index
    %1905 = memref.load %arg4[%c183] : memref<395xf32, #tpu.memory_space<smem>>
    %1906 = vector.broadcast %1905 : f32 to vector<8x128xf32>
    %1907 = arith.mulf %258, %1906 : vector<8x128xf32>
    %1908 = arith.addf %1904, %1907 : vector<8x128xf32>
    %c184 = arith.constant 184 : index
    %1909 = memref.load %arg4[%c184] : memref<395xf32, #tpu.memory_space<smem>>
    %1910 = vector.broadcast %1909 : f32 to vector<8x128xf32>
    %1911 = arith.mulf %283, %1910 : vector<8x128xf32>
    %1912 = arith.addf %1908, %1911 : vector<8x128xf32>
    %c200 = arith.constant 200 : index
    %1913 = memref.load %arg4[%c200] : memref<395xf32, #tpu.memory_space<smem>>
    %1914 = vector.broadcast %1913 : f32 to vector<8x128xf32>
    %1915 = arith.addf %1912, %1914 : vector<8x128xf32>
    %cst_262 = arith.constant 0.000000e+00 : f32
    %1916 = vector.broadcast %cst_262 : f32 to vector<8x128xf32>
    %1917 = arith.subf %1916, %1915 : vector<8x128xf32>
    %1918 = math.exp %1917 : vector<8x128xf32>
    %cst_263 = arith.constant 1.000000e+00 : f32
    %1919 = vector.broadcast %cst_263 : f32 to vector<8x128xf32>
    %1920 = arith.addf %1919, %1918 : vector<8x128xf32>
    %cst_264 = arith.constant 1.000000e+00 : f32
    %1921 = vector.broadcast %cst_264 : f32 to vector<8x128xf32>
    %1922 = arith.divf %1921, %1920 : vector<8x128xf32>
    %1923 = arith.mulf %1881, %1922 : vector<8x128xf32>
    %c216 = arith.constant 216 : index
    %1924 = memref.load %arg4[%c216] : memref<395xf32, #tpu.memory_space<smem>>
    %1925 = vector.broadcast %1924 : f32 to vector<8x128xf32>
    %1926 = arith.mulf %1923, %1925 : vector<8x128xf32>
    %1927 = arith.addf %1822, %1926 : vector<8x128xf32>
    %c232 = arith.constant 232 : index
    %1928 = memref.load %arg4[%c232] : memref<395xf32, #tpu.memory_space<smem>>
    %1929 = vector.broadcast %1928 : f32 to vector<8x128xf32>
    %1930 = arith.mulf %1923, %1929 : vector<8x128xf32>
    %1931 = arith.addf %1826, %1930 : vector<8x128xf32>
    %c248 = arith.constant 248 : index
    %1932 = memref.load %arg4[%c248] : memref<395xf32, #tpu.memory_space<smem>>
    %1933 = vector.broadcast %1932 : f32 to vector<8x128xf32>
    %1934 = arith.mulf %1923, %1933 : vector<8x128xf32>
    %1935 = arith.addf %1830, %1934 : vector<8x128xf32>
    %c264 = arith.constant 264 : index
    %1936 = memref.load %arg4[%c264] : memref<395xf32, #tpu.memory_space<smem>>
    %1937 = vector.broadcast %1936 : f32 to vector<8x128xf32>
    %1938 = arith.mulf %1923, %1937 : vector<8x128xf32>
    %1939 = arith.addf %1834, %1938 : vector<8x128xf32>
    %c280 = arith.constant 280 : index
    %1940 = memref.load %arg4[%c280] : memref<395xf32, #tpu.memory_space<smem>>
    %1941 = vector.broadcast %1940 : f32 to vector<8x128xf32>
    %1942 = arith.mulf %1923, %1941 : vector<8x128xf32>
    %1943 = arith.addf %1838, %1942 : vector<8x128xf32>
    %c296 = arith.constant 296 : index
    %1944 = memref.load %arg4[%c296] : memref<395xf32, #tpu.memory_space<smem>>
    %1945 = vector.broadcast %1944 : f32 to vector<8x128xf32>
    %1946 = arith.mulf %1923, %1945 : vector<8x128xf32>
    %1947 = arith.addf %1842, %1946 : vector<8x128xf32>
    %c312 = arith.constant 312 : index
    %1948 = memref.load %arg4[%c312] : memref<395xf32, #tpu.memory_space<smem>>
    %1949 = vector.broadcast %1948 : f32 to vector<8x128xf32>
    %1950 = arith.mulf %1923, %1949 : vector<8x128xf32>
    %1951 = arith.addf %1846, %1950 : vector<8x128xf32>
    %c328 = arith.constant 328 : index
    %1952 = memref.load %arg4[%c328] : memref<395xf32, #tpu.memory_space<smem>>
    %1953 = vector.broadcast %1952 : f32 to vector<8x128xf32>
    %1954 = arith.mulf %1923, %1953 : vector<8x128xf32>
    %1955 = arith.addf %1850, %1954 : vector<8x128xf32>
    %c329 = arith.constant 329 : index
    %1956 = memref.load %arg4[%c329] : memref<395xf32, #tpu.memory_space<smem>>
    %1957 = vector.broadcast %1956 : f32 to vector<8x128xf32>
    %1958 = arith.addf %1927, %1957 : vector<8x128xf32>
    %1959 = math.tanh %1958 : vector<8x128xf32>
    %c330 = arith.constant 330 : index
    %1960 = memref.load %arg4[%c330] : memref<395xf32, #tpu.memory_space<smem>>
    %1961 = vector.broadcast %1960 : f32 to vector<8x128xf32>
    %1962 = arith.addf %1931, %1961 : vector<8x128xf32>
    %1963 = math.tanh %1962 : vector<8x128xf32>
    %c331 = arith.constant 331 : index
    %1964 = memref.load %arg4[%c331] : memref<395xf32, #tpu.memory_space<smem>>
    %1965 = vector.broadcast %1964 : f32 to vector<8x128xf32>
    %1966 = arith.addf %1935, %1965 : vector<8x128xf32>
    %1967 = math.tanh %1966 : vector<8x128xf32>
    %c332 = arith.constant 332 : index
    %1968 = memref.load %arg4[%c332] : memref<395xf32, #tpu.memory_space<smem>>
    %1969 = vector.broadcast %1968 : f32 to vector<8x128xf32>
    %1970 = arith.addf %1939, %1969 : vector<8x128xf32>
    %1971 = math.tanh %1970 : vector<8x128xf32>
    %c333 = arith.constant 333 : index
    %1972 = memref.load %arg4[%c333] : memref<395xf32, #tpu.memory_space<smem>>
    %1973 = vector.broadcast %1972 : f32 to vector<8x128xf32>
    %1974 = arith.addf %1943, %1973 : vector<8x128xf32>
    %1975 = math.tanh %1974 : vector<8x128xf32>
    %c334 = arith.constant 334 : index
    %1976 = memref.load %arg4[%c334] : memref<395xf32, #tpu.memory_space<smem>>
    %1977 = vector.broadcast %1976 : f32 to vector<8x128xf32>
    %1978 = arith.addf %1947, %1977 : vector<8x128xf32>
    %1979 = math.tanh %1978 : vector<8x128xf32>
    %c335 = arith.constant 335 : index
    %1980 = memref.load %arg4[%c335] : memref<395xf32, #tpu.memory_space<smem>>
    %1981 = vector.broadcast %1980 : f32 to vector<8x128xf32>
    %1982 = arith.addf %1951, %1981 : vector<8x128xf32>
    %1983 = math.tanh %1982 : vector<8x128xf32>
    %c336 = arith.constant 336 : index
    %1984 = memref.load %arg4[%c336] : memref<395xf32, #tpu.memory_space<smem>>
    %1985 = vector.broadcast %1984 : f32 to vector<8x128xf32>
    %1986 = arith.addf %1955, %1985 : vector<8x128xf32>
    %1987 = math.tanh %1986 : vector<8x128xf32>
    %c337 = arith.constant 337 : index
    %1988 = memref.load %arg4[%c337] : memref<395xf32, #tpu.memory_space<smem>>
    %1989 = vector.broadcast %1988 : f32 to vector<8x128xf32>
    %1990 = arith.mulf %1959, %1989 : vector<8x128xf32>
    %c338 = arith.constant 338 : index
    %1991 = memref.load %arg4[%c338] : memref<395xf32, #tpu.memory_space<smem>>
    %1992 = vector.broadcast %1991 : f32 to vector<8x128xf32>
    %1993 = arith.mulf %1963, %1992 : vector<8x128xf32>
    %1994 = arith.addf %1990, %1993 : vector<8x128xf32>
    %c339 = arith.constant 339 : index
    %1995 = memref.load %arg4[%c339] : memref<395xf32, #tpu.memory_space<smem>>
    %1996 = vector.broadcast %1995 : f32 to vector<8x128xf32>
    %1997 = arith.mulf %1967, %1996 : vector<8x128xf32>
    %1998 = arith.addf %1994, %1997 : vector<8x128xf32>
    %c340 = arith.constant 340 : index
    %1999 = memref.load %arg4[%c340] : memref<395xf32, #tpu.memory_space<smem>>
    %2000 = vector.broadcast %1999 : f32 to vector<8x128xf32>
    %2001 = arith.mulf %1971, %2000 : vector<8x128xf32>
    %2002 = arith.addf %1998, %2001 : vector<8x128xf32>
    %c341 = arith.constant 341 : index
    %2003 = memref.load %arg4[%c341] : memref<395xf32, #tpu.memory_space<smem>>
    %2004 = vector.broadcast %2003 : f32 to vector<8x128xf32>
    %2005 = arith.mulf %1975, %2004 : vector<8x128xf32>
    %2006 = arith.addf %2002, %2005 : vector<8x128xf32>
    %c342 = arith.constant 342 : index
    %2007 = memref.load %arg4[%c342] : memref<395xf32, #tpu.memory_space<smem>>
    %2008 = vector.broadcast %2007 : f32 to vector<8x128xf32>
    %2009 = arith.mulf %1979, %2008 : vector<8x128xf32>
    %2010 = arith.addf %2006, %2009 : vector<8x128xf32>
    %c343 = arith.constant 343 : index
    %2011 = memref.load %arg4[%c343] : memref<395xf32, #tpu.memory_space<smem>>
    %2012 = vector.broadcast %2011 : f32 to vector<8x128xf32>
    %2013 = arith.mulf %1983, %2012 : vector<8x128xf32>
    %2014 = arith.addf %2010, %2013 : vector<8x128xf32>
    %c344 = arith.constant 344 : index
    %2015 = memref.load %arg4[%c344] : memref<395xf32, #tpu.memory_space<smem>>
    %2016 = vector.broadcast %2015 : f32 to vector<8x128xf32>
    %2017 = arith.mulf %1987, %2016 : vector<8x128xf32>
    %2018 = arith.addf %2014, %2017 : vector<8x128xf32>
    %c369 = arith.constant 369 : index
    %2019 = memref.load %arg4[%c369] : memref<395xf32, #tpu.memory_space<smem>>
    %2020 = vector.broadcast %2019 : f32 to vector<8x128xf32>
    %2021 = arith.addf %2018, %2020 : vector<8x128xf32>
    %2022 = math.tanh %2021 : vector<8x128xf32>
    %c345 = arith.constant 345 : index
    %2023 = memref.load %arg4[%c345] : memref<395xf32, #tpu.memory_space<smem>>
    %2024 = vector.broadcast %2023 : f32 to vector<8x128xf32>
    %2025 = arith.mulf %1959, %2024 : vector<8x128xf32>
    %c346 = arith.constant 346 : index
    %2026 = memref.load %arg4[%c346] : memref<395xf32, #tpu.memory_space<smem>>
    %2027 = vector.broadcast %2026 : f32 to vector<8x128xf32>
    %2028 = arith.mulf %1963, %2027 : vector<8x128xf32>
    %2029 = arith.addf %2025, %2028 : vector<8x128xf32>
    %c347 = arith.constant 347 : index
    %2030 = memref.load %arg4[%c347] : memref<395xf32, #tpu.memory_space<smem>>
    %2031 = vector.broadcast %2030 : f32 to vector<8x128xf32>
    %2032 = arith.mulf %1967, %2031 : vector<8x128xf32>
    %2033 = arith.addf %2029, %2032 : vector<8x128xf32>
    %c348 = arith.constant 348 : index
    %2034 = memref.load %arg4[%c348] : memref<395xf32, #tpu.memory_space<smem>>
    %2035 = vector.broadcast %2034 : f32 to vector<8x128xf32>
    %2036 = arith.mulf %1971, %2035 : vector<8x128xf32>
    %2037 = arith.addf %2033, %2036 : vector<8x128xf32>
    %c349 = arith.constant 349 : index
    %2038 = memref.load %arg4[%c349] : memref<395xf32, #tpu.memory_space<smem>>
    %2039 = vector.broadcast %2038 : f32 to vector<8x128xf32>
    %2040 = arith.mulf %1975, %2039 : vector<8x128xf32>
    %2041 = arith.addf %2037, %2040 : vector<8x128xf32>
    %c350 = arith.constant 350 : index
    %2042 = memref.load %arg4[%c350] : memref<395xf32, #tpu.memory_space<smem>>
    %2043 = vector.broadcast %2042 : f32 to vector<8x128xf32>
    %2044 = arith.mulf %1979, %2043 : vector<8x128xf32>
    %2045 = arith.addf %2041, %2044 : vector<8x128xf32>
    %c351 = arith.constant 351 : index
    %2046 = memref.load %arg4[%c351] : memref<395xf32, #tpu.memory_space<smem>>
    %2047 = vector.broadcast %2046 : f32 to vector<8x128xf32>
    %2048 = arith.mulf %1983, %2047 : vector<8x128xf32>
    %2049 = arith.addf %2045, %2048 : vector<8x128xf32>
    %c352 = arith.constant 352 : index
    %2050 = memref.load %arg4[%c352] : memref<395xf32, #tpu.memory_space<smem>>
    %2051 = vector.broadcast %2050 : f32 to vector<8x128xf32>
    %2052 = arith.mulf %1987, %2051 : vector<8x128xf32>
    %2053 = arith.addf %2049, %2052 : vector<8x128xf32>
    %c370 = arith.constant 370 : index
    %2054 = memref.load %arg4[%c370] : memref<395xf32, #tpu.memory_space<smem>>
    %2055 = vector.broadcast %2054 : f32 to vector<8x128xf32>
    %2056 = arith.addf %2053, %2055 : vector<8x128xf32>
    %2057 = math.tanh %2056 : vector<8x128xf32>
    %c353 = arith.constant 353 : index
    %2058 = memref.load %arg4[%c353] : memref<395xf32, #tpu.memory_space<smem>>
    %2059 = vector.broadcast %2058 : f32 to vector<8x128xf32>
    %2060 = arith.mulf %1959, %2059 : vector<8x128xf32>
    %c354 = arith.constant 354 : index
    %2061 = memref.load %arg4[%c354] : memref<395xf32, #tpu.memory_space<smem>>
    %2062 = vector.broadcast %2061 : f32 to vector<8x128xf32>
    %2063 = arith.mulf %1963, %2062 : vector<8x128xf32>
    %2064 = arith.addf %2060, %2063 : vector<8x128xf32>
    %c355 = arith.constant 355 : index
    %2065 = memref.load %arg4[%c355] : memref<395xf32, #tpu.memory_space<smem>>
    %2066 = vector.broadcast %2065 : f32 to vector<8x128xf32>
    %2067 = arith.mulf %1967, %2066 : vector<8x128xf32>
    %2068 = arith.addf %2064, %2067 : vector<8x128xf32>
    %c356 = arith.constant 356 : index
    %2069 = memref.load %arg4[%c356] : memref<395xf32, #tpu.memory_space<smem>>
    %2070 = vector.broadcast %2069 : f32 to vector<8x128xf32>
    %2071 = arith.mulf %1971, %2070 : vector<8x128xf32>
    %2072 = arith.addf %2068, %2071 : vector<8x128xf32>
    %c357 = arith.constant 357 : index
    %2073 = memref.load %arg4[%c357] : memref<395xf32, #tpu.memory_space<smem>>
    %2074 = vector.broadcast %2073 : f32 to vector<8x128xf32>
    %2075 = arith.mulf %1975, %2074 : vector<8x128xf32>
    %2076 = arith.addf %2072, %2075 : vector<8x128xf32>
    %c358 = arith.constant 358 : index
    %2077 = memref.load %arg4[%c358] : memref<395xf32, #tpu.memory_space<smem>>
    %2078 = vector.broadcast %2077 : f32 to vector<8x128xf32>
    %2079 = arith.mulf %1979, %2078 : vector<8x128xf32>
    %2080 = arith.addf %2076, %2079 : vector<8x128xf32>
    %c359 = arith.constant 359 : index
    %2081 = memref.load %arg4[%c359] : memref<395xf32, #tpu.memory_space<smem>>
    %2082 = vector.broadcast %2081 : f32 to vector<8x128xf32>
    %2083 = arith.mulf %1983, %2082 : vector<8x128xf32>
    %2084 = arith.addf %2080, %2083 : vector<8x128xf32>
    %c360 = arith.constant 360 : index
    %2085 = memref.load %arg4[%c360] : memref<395xf32, #tpu.memory_space<smem>>
    %2086 = vector.broadcast %2085 : f32 to vector<8x128xf32>
    %2087 = arith.mulf %1987, %2086 : vector<8x128xf32>
    %2088 = arith.addf %2084, %2087 : vector<8x128xf32>
    %c371 = arith.constant 371 : index
    %2089 = memref.load %arg4[%c371] : memref<395xf32, #tpu.memory_space<smem>>
    %2090 = vector.broadcast %2089 : f32 to vector<8x128xf32>
    %2091 = arith.addf %2088, %2090 : vector<8x128xf32>
    %2092 = math.tanh %2091 : vector<8x128xf32>
    %c361 = arith.constant 361 : index
    %2093 = memref.load %arg4[%c361] : memref<395xf32, #tpu.memory_space<smem>>
    %2094 = vector.broadcast %2093 : f32 to vector<8x128xf32>
    %2095 = arith.mulf %1959, %2094 : vector<8x128xf32>
    %c362 = arith.constant 362 : index
    %2096 = memref.load %arg4[%c362] : memref<395xf32, #tpu.memory_space<smem>>
    %2097 = vector.broadcast %2096 : f32 to vector<8x128xf32>
    %2098 = arith.mulf %1963, %2097 : vector<8x128xf32>
    %2099 = arith.addf %2095, %2098 : vector<8x128xf32>
    %c363 = arith.constant 363 : index
    %2100 = memref.load %arg4[%c363] : memref<395xf32, #tpu.memory_space<smem>>
    %2101 = vector.broadcast %2100 : f32 to vector<8x128xf32>
    %2102 = arith.mulf %1967, %2101 : vector<8x128xf32>
    %2103 = arith.addf %2099, %2102 : vector<8x128xf32>
    %c364 = arith.constant 364 : index
    %2104 = memref.load %arg4[%c364] : memref<395xf32, #tpu.memory_space<smem>>
    %2105 = vector.broadcast %2104 : f32 to vector<8x128xf32>
    %2106 = arith.mulf %1971, %2105 : vector<8x128xf32>
    %2107 = arith.addf %2103, %2106 : vector<8x128xf32>
    %c365 = arith.constant 365 : index
    %2108 = memref.load %arg4[%c365] : memref<395xf32, #tpu.memory_space<smem>>
    %2109 = vector.broadcast %2108 : f32 to vector<8x128xf32>
    %2110 = arith.mulf %1975, %2109 : vector<8x128xf32>
    %2111 = arith.addf %2107, %2110 : vector<8x128xf32>
    %c366 = arith.constant 366 : index
    %2112 = memref.load %arg4[%c366] : memref<395xf32, #tpu.memory_space<smem>>
    %2113 = vector.broadcast %2112 : f32 to vector<8x128xf32>
    %2114 = arith.mulf %1979, %2113 : vector<8x128xf32>
    %2115 = arith.addf %2111, %2114 : vector<8x128xf32>
    %c367 = arith.constant 367 : index
    %2116 = memref.load %arg4[%c367] : memref<395xf32, #tpu.memory_space<smem>>
    %2117 = vector.broadcast %2116 : f32 to vector<8x128xf32>
    %2118 = arith.mulf %1983, %2117 : vector<8x128xf32>
    %2119 = arith.addf %2115, %2118 : vector<8x128xf32>
    %c368 = arith.constant 368 : index
    %2120 = memref.load %arg4[%c368] : memref<395xf32, #tpu.memory_space<smem>>
    %2121 = vector.broadcast %2120 : f32 to vector<8x128xf32>
    %2122 = arith.mulf %1987, %2121 : vector<8x128xf32>
    %2123 = arith.addf %2119, %2122 : vector<8x128xf32>
    %c372 = arith.constant 372 : index
    %2124 = memref.load %arg4[%c372] : memref<395xf32, #tpu.memory_space<smem>>
    %2125 = vector.broadcast %2124 : f32 to vector<8x128xf32>
    %2126 = arith.addf %2123, %2125 : vector<8x128xf32>
    %2127 = math.tanh %2126 : vector<8x128xf32>
    %c373 = arith.constant 373 : index
    %2128 = memref.load %arg4[%c373] : memref<395xf32, #tpu.memory_space<smem>>
    %2129 = vector.broadcast %2128 : f32 to vector<8x128xf32>
    %2130 = arith.mulf %2022, %2129 : vector<8x128xf32>
    %c374 = arith.constant 374 : index
    %2131 = memref.load %arg4[%c374] : memref<395xf32, #tpu.memory_space<smem>>
    %2132 = vector.broadcast %2131 : f32 to vector<8x128xf32>
    %2133 = arith.mulf %2057, %2132 : vector<8x128xf32>
    %2134 = arith.addf %2130, %2133 : vector<8x128xf32>
    %c375 = arith.constant 375 : index
    %2135 = memref.load %arg4[%c375] : memref<395xf32, #tpu.memory_space<smem>>
    %2136 = vector.broadcast %2135 : f32 to vector<8x128xf32>
    %2137 = arith.mulf %2092, %2136 : vector<8x128xf32>
    %2138 = arith.addf %2134, %2137 : vector<8x128xf32>
    %c376 = arith.constant 376 : index
    %2139 = memref.load %arg4[%c376] : memref<395xf32, #tpu.memory_space<smem>>
    %2140 = vector.broadcast %2139 : f32 to vector<8x128xf32>
    %2141 = arith.mulf %2127, %2140 : vector<8x128xf32>
    %2142 = arith.addf %2138, %2141 : vector<8x128xf32>
    %c377 = arith.constant 377 : index
    %2143 = memref.load %arg4[%c377] : memref<395xf32, #tpu.memory_space<smem>>
    %2144 = vector.broadcast %2143 : f32 to vector<8x128xf32>
    %2145 = arith.addf %2142, %2144 : vector<8x128xf32>
    %2146 = math.tanh %2145 : vector<8x128xf32>
    %c378 = arith.constant 378 : index
    %2147 = memref.load %arg4[%c378] : memref<395xf32, #tpu.memory_space<smem>>
    %2148 = vector.broadcast %2147 : f32 to vector<8x128xf32>
    %2149 = arith.mulf %2146, %2148 : vector<8x128xf32>
    %c379 = arith.constant 379 : index
    %2150 = memref.load %arg4[%c379] : memref<395xf32, #tpu.memory_space<smem>>
    %2151 = vector.broadcast %2150 : f32 to vector<8x128xf32>
    %2152 = arith.mulf %15, %2151 : vector<8x128xf32>
    %2153 = arith.addf %2149, %2152 : vector<8x128xf32>
    %c386 = arith.constant 386 : index
    %2154 = memref.load %arg4[%c386] : memref<395xf32, #tpu.memory_space<smem>>
    %2155 = vector.broadcast %2154 : f32 to vector<8x128xf32>
    %2156 = arith.addf %2153, %2155 : vector<8x128xf32>
    %2157 = math.tanh %2156 : vector<8x128xf32>
    %c380 = arith.constant 380 : index
    %2158 = memref.load %arg4[%c380] : memref<395xf32, #tpu.memory_space<smem>>
    %2159 = vector.broadcast %2158 : f32 to vector<8x128xf32>
    %2160 = arith.mulf %2146, %2159 : vector<8x128xf32>
    %c381 = arith.constant 381 : index
    %2161 = memref.load %arg4[%c381] : memref<395xf32, #tpu.memory_space<smem>>
    %2162 = vector.broadcast %2161 : f32 to vector<8x128xf32>
    %2163 = arith.mulf %15, %2162 : vector<8x128xf32>
    %2164 = arith.addf %2160, %2163 : vector<8x128xf32>
    %c387 = arith.constant 387 : index
    %2165 = memref.load %arg4[%c387] : memref<395xf32, #tpu.memory_space<smem>>
    %2166 = vector.broadcast %2165 : f32 to vector<8x128xf32>
    %2167 = arith.addf %2164, %2166 : vector<8x128xf32>
    %2168 = math.tanh %2167 : vector<8x128xf32>
    %c382 = arith.constant 382 : index
    %2169 = memref.load %arg4[%c382] : memref<395xf32, #tpu.memory_space<smem>>
    %2170 = vector.broadcast %2169 : f32 to vector<8x128xf32>
    %2171 = arith.mulf %2146, %2170 : vector<8x128xf32>
    %c383 = arith.constant 383 : index
    %2172 = memref.load %arg4[%c383] : memref<395xf32, #tpu.memory_space<smem>>
    %2173 = vector.broadcast %2172 : f32 to vector<8x128xf32>
    %2174 = arith.mulf %15, %2173 : vector<8x128xf32>
    %2175 = arith.addf %2171, %2174 : vector<8x128xf32>
    %c388 = arith.constant 388 : index
    %2176 = memref.load %arg4[%c388] : memref<395xf32, #tpu.memory_space<smem>>
    %2177 = vector.broadcast %2176 : f32 to vector<8x128xf32>
    %2178 = arith.addf %2175, %2177 : vector<8x128xf32>
    %2179 = math.tanh %2178 : vector<8x128xf32>
    %c384 = arith.constant 384 : index
    %2180 = memref.load %arg4[%c384] : memref<395xf32, #tpu.memory_space<smem>>
    %2181 = vector.broadcast %2180 : f32 to vector<8x128xf32>
    %2182 = arith.mulf %2146, %2181 : vector<8x128xf32>
    %c385 = arith.constant 385 : index
    %2183 = memref.load %arg4[%c385] : memref<395xf32, #tpu.memory_space<smem>>
    %2184 = vector.broadcast %2183 : f32 to vector<8x128xf32>
    %2185 = arith.mulf %15, %2184 : vector<8x128xf32>
    %2186 = arith.addf %2182, %2185 : vector<8x128xf32>
    %c389 = arith.constant 389 : index
    %2187 = memref.load %arg4[%c389] : memref<395xf32, #tpu.memory_space<smem>>
    %2188 = vector.broadcast %2187 : f32 to vector<8x128xf32>
    %2189 = arith.addf %2186, %2188 : vector<8x128xf32>
    %2190 = math.tanh %2189 : vector<8x128xf32>
    %c390 = arith.constant 390 : index
    %2191 = memref.load %arg4[%c390] : memref<395xf32, #tpu.memory_space<smem>>
    %2192 = vector.broadcast %2191 : f32 to vector<8x128xf32>
    %2193 = arith.mulf %2157, %2192 : vector<8x128xf32>
    %c391 = arith.constant 391 : index
    %2194 = memref.load %arg4[%c391] : memref<395xf32, #tpu.memory_space<smem>>
    %2195 = vector.broadcast %2194 : f32 to vector<8x128xf32>
    %2196 = arith.mulf %2168, %2195 : vector<8x128xf32>
    %2197 = arith.addf %2193, %2196 : vector<8x128xf32>
    %c392 = arith.constant 392 : index
    %2198 = memref.load %arg4[%c392] : memref<395xf32, #tpu.memory_space<smem>>
    %2199 = vector.broadcast %2198 : f32 to vector<8x128xf32>
    %2200 = arith.mulf %2179, %2199 : vector<8x128xf32>
    %2201 = arith.addf %2197, %2200 : vector<8x128xf32>
    %c393 = arith.constant 393 : index
    %2202 = memref.load %arg4[%c393] : memref<395xf32, #tpu.memory_space<smem>>
    %2203 = vector.broadcast %2202 : f32 to vector<8x128xf32>
    %2204 = arith.mulf %2190, %2203 : vector<8x128xf32>
    %2205 = arith.addf %2201, %2204 : vector<8x128xf32>
    %c394 = arith.constant 394 : index
    %2206 = memref.load %arg4[%c394] : memref<395xf32, #tpu.memory_space<smem>>
    %2207 = vector.broadcast %2206 : f32 to vector<8x128xf32>
    %2208 = arith.addf %2205, %2207 : vector<8x128xf32>
    %2209 = arith.index_cast %6 : i32 to index
    %c0_265 = arith.constant 0 : index
    %2210 = vector.load %arg5[%2209, %c0_265] : memref<8x128xf32, #tpu.memory_space<vmem>>, vector<8x128xf32>
    tpu.vector_store %arg5[%2209, %c0_265], %2208 {strides = array<i32>} : memref<8x128xf32, #tpu.memory_space<vmem>>, vector<8x128xf32>,
    %c1_i32 = arith.constant 1 : i32
    return
  }
  func.func @transform_0(%arg0: i32) -> (i32, i32, i32) {
    %c0_i32 = arith.constant 0 : i32
    %c0_i32_0 = arith.constant 0 : i32
    %c0_i32_1 = arith.constant 0 : i32
    return %c0_i32, %arg0, %c0_i32_0 : i32, i32, i32
  }
  func.func @transform_1(%arg0: i32) -> (i32, i32, i32) {
    %c0_i32 = arith.constant 0 : i32
    %c0_i32_0 = arith.constant 0 : i32
    %c0_i32_1 = arith.constant 0 : i32
    return %c0_i32, %arg0, %c0_i32_0 : i32, i32, i32
  }
  func.func @transform_2(%arg0: i32) -> (i32, i32, i32) {
    %c0_i32 = arith.constant 0 : i32
    %c0_i32_0 = arith.constant 0 : i32
    %c0_i32_1 = arith.constant 0 : i32
    return %c0_i32, %arg0, %c0_i32_0 : i32, i32, i32
  }
  func.func @transform_3(%arg0: i32) -> i32 {
    %c0_i32 = arith.constant 0 : i32
    %c0_i32_0 = arith.constant 0 : i32
    return %c0_i32 : i32
  }
  func.func @transform_4(%arg0: i32) -> (i32, i32) {
    %c0_i32 = arith.constant 0 : i32
    %c0_i32_0 = arith.constant 0 : i32
    return %arg0, %c0_i32 : i32, i32
  }
}

</mosaic_0001>

<bundles_post_ra>
// kernel: cloud_impact_nn_to_ghi.1
= control target key start
LH: loop header
LB: loop body
LE: loop exit
PB: predicated region body
PF: predicated region fallthrough
CT: control target
= control target key end

     0   :  { %s4839_s0 = inlined_call_operand.vmem [shape: f32[16,8,128], index: 0, kind: input, shape index: {}]   ;;  %s4840_s1 = inlined_call_operand.vmem [shape: f32[16,8,128], index: 1, kind: input, shape index: {}]   ;;  %s4841_s2 = inlined_call_operand.vmem [shape: f32[3,8,128], index: 2, kind: input, shape index: {}]   ;;  %s4842_s3 = inlined_call_operand.vmem [shape: f32[395], index: 3, kind: input, shape index: {}]   ;;  %s4843_s4 = inlined_call_operand.vmem [shape: f32[8,128], index: 4, kind: output, shape index: {}]  }
   0x1   :  { %4891 = sst [smem:[#allocation32_spill]] %s4839_s0 }
   0x2   :  { %4892 = sst [smem:[#allocation33_spill]] %s4840_s1 }
   0x3   :  { %4893 = sst [smem:[#allocation34_spill]] %s4841_s2 }
   0x4   :  { %4894 = sst [smem:[#allocation35_spill]] %s4843_s4 }
   0x5   :  { %9 = vsyncpa [#allocation3], 0  ;;  %s22_s17 = sshll.u32 %s4842_s3, 4  ;;  %s23_s17 = int_to_ptr.vmem [resolvable:$true] %s22_s17 }
   0x6   :  { %s2642_s18 = scalar_lea.vmem %s23_s17, 64  ;;  %p2647_p1 = scmp.lt.s32.totalorder %s23_s17, %s23_s17 }
   0x7   :  { %p2643_p0 = scmp.ne.s32.totalorder %s23_s17, %s2642_s18  ;;  %p2648_p2 = scmp.lt.s32.totalorder %s2642_s18, %s2642_s18 }
   0x9   :  { %p2649_p3 = por %p2648_p2, %p2647_p1 }
   0xb   :  { %p2650_p4 = pnand %p2649_p3, %p2643_p0 }
   0xd   :  { %2653 = shalt.err (!%p2650_p4)
}
   0xe   :  { %s2656_s19 = smov [#allocation2]  }
   0xf   :  { %25 = dma.vmem_to_smem %s23_s17, 64, %s2656_s19, [#allocation3]  }
  0x10   :  { %2654 = dma.done.wait [#allocation3], 64  }
  0x11   :  { %2655 = vsyncadd [#allocation3], 4294967232 }
  0x12   :  { %29 = sfence }
  0x13   :  { %s2043_s20 = sld [smem:[#allocation2 + $0x5]]  ;;  %s2044_s21 = sld [smem:[#allocation2 + $0x6]]  ;;  %v35_v0 = vld [vmem:[%s4841_s2] sm:$0xff]  ;;  %v2041_v1 = vld [vmem:[%s4841_s2 + $0x8] sm:$0xff] }
  0x14   :  { %s2685_s22 = sld [smem:[#allocation2 + $0xd]]  ;;  %s2046_s23 = sld [smem:[#allocation2 + $0x7]] }
  0x15   :  { %s2047_s24 = sld [smem:[#allocation2 + $0x8]]  ;;  %s2687_s3 = sld [smem:[#allocation2 + $0xe]] }
  0x16   :  { %s2049_s25 = sld [smem:[#allocation2 + $0x9]]  ;;  %s2050_s28 = sld [smem:[#allocation2 + $0xa]] }
  0x17   :  { %s2692_s29 = sld [smem:[#allocation2 + $0xf]]  ;;  %s2052_s6 = sld [smem:[#allocation2 + $0xb]] }
  0x18   :  { %s2053_s7 = sld [smem:[#allocation2 + $0xc]]  ;;  %s2054_s8 = sld [smem:[#allocation2 + $0x10]] }
  0x19   :  { %v43_v2 = vstv %s2043_s20  ;;  %v46_v4 = vstv %s2044_s21  ;;  %s2700_s9 = sld [smem:[#allocation2 + $0x11]]  ;;  %s2702_s10 = sld [smem:[#allocation2 + $0x12]] }
  0x1a   :  { %v44_v3 = vmul.f32 %v43_v2, %v35_v0  ;;  %v47_v5 = vmul.f32 %v2041_v1, %v46_v4  ;;  %v59_v6 = vstv %s2046_s23  ;;  %v50_v8 = vstv %s2685_s22  ;;  %s2704_s11 = sld [smem:[#allocation2 + $0x13]]  ;;  %s2706_s12 = sld [smem:[#allocation2 + $0x14]] }
  0x1b   :  { %v62_v7 = vstv %s2047_s24  ;;  %v60_v9 = vmul.f32 %v59_v6, %v35_v0  ;;  %v66_v13 = vstv %s2687_s3  ;;  %s2708_s13 = sld [smem:[#allocation2 + $0x31]]  ;;  %s2710_s14 = sld [smem:[#allocation2 + $0x15]] }
  0x1c   :  { %v63_v10 = vmul.f32 %v2041_v1, %v62_v7  ;;  %v75_v11 = vstv %s2049_s25  ;;  %v48_v12 = vadd.f32 %v47_v5, %v44_v3  ;;  %v78_v15 = vstv %s2050_s28  ;;  %s2712_s15 = sld [smem:[#allocation2 + $0x16]]  ;;  %s2714_s16 = sld [smem:[#allocation2 + $0x17]] }
  0x1d   :  { %v76_v14 = vmul.f32 %v75_v11, %v35_v0  ;;  %v79_v17 = vmul.f32 %v2041_v1, %v78_v15  ;;  %v91_v18 = vstv %s2052_s6  ;;  %v82_v21 = vstv %s2692_s29  ;;  %s2716_s17 = sld [smem:[#allocation2 + $0x18]]  ;;  %s2718_s18 = sld [smem:[#allocation2 + $0x32]] }
  0x1e   :  { %v64_v16 = vadd.f32 %v63_v10, %v60_v9  ;;  %v94_v19 = vstv %s2053_s7  ;;  %v51_v20 = vadd.f32 %v50_v8, %v48_v12  ;;  %v92_v22 = vmul.f32 %v91_v18, %v35_v0  ;;  %s2720_s19 = sld [smem:[#allocation2 + $0x19]]  ;;  %s2722_s20 = sld [smem:[#allocation2 + $0x1a]] }
  0x1f   :  { %v95_v23 = vmul.f32 %v2041_v1, %v94_v19  ;;  %v80_v25 = vadd.f32 %v79_v17, %v76_v14  ;;  %v98_v26 = vstv %s2054_s8  ;;  %s2724_s21 = sld [smem:[#allocation2 + $0x1b]]  ;;  %s2726_s22 = sld [smem:[#allocation2 + $0x1c]]  ;;  %v107_v45 = vstv %s2700_s9 }
  0x20   :  { %v67_v24 = vadd.f32 %v66_v13, %v64_v16  ;;  %v52_v27 = vsub.f32 0.0, %v51_v20  ;;  %s2728_s23 = sld [smem:[#allocation2 + $0x33]]  ;;  %s2730_s24 = sld [smem:[#allocation2 + $0x1d]]  ;;  %v110_v46 = vstv %s2702_s10  ;;  %v114_v48 = vstv %s2704_s11 }
  0x21   :  { %v96_v28 = vadd.f32 %v95_v23, %v92_v22  ;;  %v83_v30 = vadd.f32 %v82_v21, %v80_v25  ;;  %s2732_s3 = sld [smem:[#allocation2 + $0x1e]]  ;;  %s2734_s25 = sld [smem:[#allocation2 + $0x1f]]  ;;  %v118_v49 = vstv %s2706_s12  ;;  %v122_v50 = vstv %s2708_s13 }
  0x22   :  { %v68_v29 = vsub.f32 0.0, %v67_v24  ;;  %v53_v31 = vmul.f32 1.442695, %v52_v27  ;;  %s2736_s26 = sld [smem:[#allocation2 + $0x20]]  ;;  %s2738_s27 = sld [smem:[#allocation2 + $0x34]]  ;;  %v131_v51 = vstv %s2710_s14  ;;  %v134_v52 = vstv %s2712_s15 }
  0x23   :  { %v99_v32 = vadd.f32 %v98_v26, %v96_v28  ;;  %v84_v34 = vsub.f32 0.0, %v83_v30  ;;  %s2740_s28 = sld [smem:[#allocation2 + $0x21]]  ;;  %s2742_s29 = sld [smem:[#allocation2 + $0x22]]  ;;  %v138_v53 = vstv %s2714_s16  ;;  %v142_v54 = vstv %s2716_s17 }
  0x24   :  { %v69_v33 = vmul.f32 1.442695, %v68_v29  ;;  %2464 = vpow2.f32 %v53_v31  ;;  %s2744_s30 = sld [smem:[#allocation2 + $0x23]]  ;;  %s2746_s5 = sld [smem:[#allocation2 + $0x24]]  ;;  %v146_v55 = vstv %s2718_s18  ;;  %v155_v56 = vstv %s2720_s19 }
  0x25   :  { %v100_v35 = vsub.f32 0.0, %v99_v32  ;;  %v85_v36 = vmul.f32 1.442695, %v84_v34  ;;  %s2748_s6 = sld [smem:[#allocation2 + $0x35]]  ;;  %s2752_s8 = sld [smem:[#allocation2 + $0x26]]  ;;  %v158_v57 = vstv %s2722_s20  ;;  %v162_v58 = vstv %s2724_s21 }
  0x26   :  { %2466 = vpow2.f32 %v69_v33  ;;  %s2750_s7 = sld [smem:[#allocation2 + $0x25]]  ;;  %s2754_s4 = sld [smem:[#allocation2 + $0x27]]  ;;  %v166_v59 = vstv %s2726_s22  ;;  %v170_v60 = vstv %s2728_s23  ;;  %v179_v61 = vstv %s2730_s24 }
  0x27   :  { %v101_v37 = vmul.f32 1.442695, %v100_v35  ;;  %2468 = vpow2.f32 %v85_v36  ;;  %s2756_s2 = sld [smem:[#allocation2 + $0x28]]  ;;  %s2758_s0 = sld [smem:[#allocation2 + $0x36]]  ;;  %v182_v62 = vstv %s2732_s3  ;;  %v186_v63 = vstv %s2734_s25 }
  0x28   :  { %s2760_s1 = sld [smem:[#allocation2 + $0x29]]  ;;  %s2773_s9 = sld [smem:[#allocation2 + $0x2d]]  ;;  %v190_v0 = vstv %s2736_s26  ;;  %v194_v1 = vstv %s2738_s27 }
  0x29   :  { %2470 = vpow2.f32 %v101_v37  ;;  %v203_v2 = vstv %s2740_s28  ;;  %v206_v3 = vstv %s2742_s29  ;;  %s2840_s14 = sld [smem:[#allocation2 + $0x30]]  ;;  %s2847_s15 = sld [smem:[#allocation2 + $0x4]] }
  0x2a   :  { %v210_v4 = vstv %s2744_s30  ;;  %v214_v5 = vstv %s2746_s5  ;;  %s2856_s13 = sld [smem:[#allocation2 + $0x37]]  ;;  %s2860_s16 = sld [smem:[#allocation2 + $0x3]] }
  0x2b   :  { %v218_v6 = vstv %s2748_s6  ;;  %v230_v8 = vstv %s2752_s8  ;;  %s4901_s19 = sld [smem:[#allocation33_spill]]  ;;  %s2877_s20 = sld [smem:[#allocation2 + $0x38]] }
  0x2c   :  { %4895 = sst [smem:[#allocation5_spill]] %s2754_s4  ;;  %s2764_s4 = sld [smem:[#allocation2 + $0x2a]]  ;;  %v227_v7 = vstv %s2750_s7 }
  0x2d   :  { %4896 = sst [smem:[#allocation6_spill]] %s2756_s2  ;;  %s2766_s2 = sld [smem:[#allocation2 + $0x2b]]  ;;  %v242_v11 = vstv %s2758_s0 }
  0x2e   :  { %v2465_v38 = vpop.eup %2464  ;;  %4897 = sst [smem:[#allocation7_spill]] %s2760_s1  ;;  %s2771_s1 = sld [smem:[#allocation2 + $0x2c]]  ;;  %v275_v17 = vstv %s2773_s9 }
  0x2f   :  { %v55_v40 = vadd.f32 1.0, %v2465_v38  ;;  %s4898_s10 = sld [smem:[#allocation5_spill]]  ;;  %s4899_s11 = sld [smem:[#allocation6_spill]] }
  0x30   :  { %v2467_v39 = vpop.eup %2466  ;;  %s4900_s12 = sld [smem:[#allocation7_spill]]  ;;  %s2037_s23 = sld [smem:[#allocation2 + $0x1]] }
  0x31   :  { %v71_v41 = vadd.f32 1.0, %v2467_v39  ;;  %v2469_v42 = vpop.eup %2468  ;;  %2472 = vrcp.f32 %v55_v40  ;;  %s2038_s21 = sld [smem:[#allocation2 + $0x2]]  ;;  %s30_s0 = sld [smem:[#allocation2]] }
  0x32   :  { %v87_v44 = vadd.f32 1.0, %v2469_v42  ;;  %v254_v14 = vstv %s2764_s4  ;;  %s2833_s4 = sld [smem:[#allocation2 + $0x2f]]  ;;  %s4902_s25 = sld [smem:[#allocation32_spill]] }
  0x33   :  { %v2471_v43 = vpop.eup %2470  ;;  %2474 = vrcp.f32 %v71_v41  ;;  %v258_v15 = vstv %s2766_s2  ;;  %s2830_s2 = sld [smem:[#allocation2 + $0x2e]]  ;;  %s2924_s26 = sld [smem:[#allocation2 + $0x39]] }
  0x34   :  { %v103_v47 = vadd.f32 1.0, %v2471_v43  ;;  %2476 = vrcp.f32 %v87_v44  ;;  %v262_v16 = vstv %s2771_s1  ;;  %s2926_s27 = sld [smem:[#allocation2 + $0x3a]]  ;;  %s2935_s30 = sld [smem:[#allocation2 + $0x41]] }
  0x35   :  { %v234_v9 = vstv %s4898_s10  ;;  %v238_v10 = vstv %s4899_s11  ;;  %s2937_s5 = sld [smem:[#allocation2 + $0x42]]  ;;  %s2940_s6 = sld [smem:[#allocation2 + $0x3b]] }
  0x36   :  { %2478 = vrcp.f32 %v103_v47  ;;  %v251_v12 = vstv %s4900_s12  ;;  %s2942_s7 = sld [smem:[#allocation2 + $0x3c]]  ;;  %s2944_s8 = sld [smem:[#allocation2 + $0x3d]] }
  0x37   :  { %s2946_s9 = sld [smem:[#allocation2 + $0x3e]]  ;;  %s2953_s12 = sld [smem:[#allocation2 + $0x3f]] }
  0x38   :  { %s2978_s17 = sld [smem:[#allocation2 + $0x52]]  ;;  %s2984_s18 = sld [smem:[#allocation2 + $0x40]] }
  0x39   :  { %s2997_s1 = sld [smem:[#allocation2 + $0xb9]]  ;;  %s3015_s24 = sld [smem:[#allocation2 + $0x53]] }
  0x3a   :  { %s3006_s22 = sld [smem:[#allocation2 + $0x59]]  ;;  %s3021_s3 = sld [smem:[#allocation2 + $0x46]] }
  0x3b   :  { %v2801_v13 = vpop.eup %2472  ;;  %s3040_s28 = sld [smem:[#allocation2 + $0xd9]]  ;;  %s3045_s29 = sld [smem:[#allocation2 + $0x54]] }
  0x3c   :  { %v108_v19 = vmul.f32 %v2801_v13, %v107_v45  ;;  %v132_v20 = vmul.f32 %v2801_v13, %v131_v51  ;;  %v156_v21 = vmul.f32 %v2801_v13, %v155_v56  ;;  %v180_v22 = vmul.f32 %v2801_v13, %v179_v61  ;;  %s3078_s10 = sld [smem:[#allocation2 + $0x48]]  ;;  %s3295_s11 = sld [smem:[#allocation2 + $0xfb]] }
  0x3d   :  { %v2807_v18 = vpop.eup %2474  ;;  %v204_v28 = vmul.f32 %v2801_v13, %v203_v2  ;;  %v228_v30 = vmul.f32 %v2801_v13, %v227_v7 }
  0x3e   :  { %v111_v23 = vmul.f32 %v2807_v18, %v110_v46  ;;  %v135_v24 = vmul.f32 %v2807_v18, %v134_v52  ;;  %v159_v25 = vmul.f32 %v2807_v18, %v158_v57  ;;  %v183_v26 = vmul.f32 %v2807_v18, %v182_v62  ;;  %v2817_v27 = vpop.eup %2476 }
  0x3f   :  { %v207_v29 = vmul.f32 %v2807_v18, %v206_v3  ;;  %v231_v31 = vmul.f32 %v2807_v18, %v230_v8  ;;  %v115_v34 = vmul.f32 %v2817_v27, %v114_v48  ;;  %v139_v36 = vmul.f32 %v2817_v27, %v138_v53 }
  0x40   :  { %v2823_v32 = vpop.eup %2478  ;;  %v112_v33 = vadd.f32 %v111_v23, %v108_v19  ;;  %v136_v35 = vadd.f32 %v135_v24, %v132_v20  ;;  %v160_v39 = vadd.f32 %v159_v25, %v156_v21  ;;  %v163_v40 = vmul.f32 %v2817_v27, %v162_v58 }
  0x41   :  { %v119_v37 = vmul.f32 %v2823_v32, %v118_v49  ;;  %v143_v38 = vmul.f32 %v2823_v32, %v142_v54  ;;  %v167_v43 = vmul.f32 %v2823_v32, %v166_v59  ;;  %v184_v44 = vadd.f32 %v183_v26, %v180_v22 }
  0x42   :  { %v116_v41 = vadd.f32 %v115_v34, %v112_v33  ;;  %v140_v42 = vadd.f32 %v139_v36, %v136_v35  ;;  %v164_v45 = vadd.f32 %v163_v40, %v160_v39  ;;  %v187_v46 = vmul.f32 %v2817_v27, %v186_v63  ;;  %v2890_v34 = vld [vmem:[%s4901_s19 + $0x8] sm:$0xff]  ;;  %4913 = sst [smem:[#allocation15_spill]] %s3295_s11 }
  0x43   :  { %v191_v47 = vmul.f32 %v2823_v32, %v190_v0  ;;  %v208_v48 = vadd.f32 %v207_v29, %v204_v28  ;;  %v211_v52 = vmul.f32 %v2817_v27, %v210_v4  ;;  %v215_v53 = vmul.f32 %v2823_v32, %v214_v5 }
  0x44   :  { %v120_v49 = vadd.f32 %v119_v37, %v116_v41  ;;  %v144_v51 = vadd.f32 %v143_v38, %v140_v42  ;;  %v168_v54 = vadd.f32 %v167_v43, %v164_v45  ;;  %v188_v56 = vadd.f32 %v187_v46, %v184_v44 }
  0x45   :  { %v232_v57 = vadd.f32 %v231_v31, %v228_v30  ;;  %v235_v58 = vmul.f32 %v2817_v27, %v234_v9  ;;  %v212_v62 = vadd.f32 %v211_v52, %v208_v48  ;;  %v239_v63 = vmul.f32 %v2823_v32, %v238_v10 }
  0x46   :  { %v123_v59 = vadd.f32 %v122_v50, %v120_v49  ;;  %v147_v61 = vadd.f32 %v146_v55, %v144_v51  ;;  %v171_v0 = vadd.f32 %v170_v60, %v168_v54  ;;  %v192_v2 = vadd.f32 %v191_v47, %v188_v56 }
  0x47   :  { %v236_v3 = vadd.f32 %v235_v58, %v232_v57  ;;  %v252_v4 = vmul.f32 %v2801_v13, %v251_v12  ;;  %v216_v8 = vadd.f32 %v215_v53, %v212_v62  ;;  %v255_v50 = vmul.f32 %v2807_v18, %v254_v14 }
  0x48   :  { %v124_v5 = vsub.f32 0.0, %v123_v59  ;;  %v148_v7 = vsub.f32 0.0, %v147_v61  ;;  %v172_v55 = vsub.f32 0.0, %v171_v0  ;;  %v195_v9 = vadd.f32 %v194_v1, %v192_v2  ;;  %v298_v2 = vld [vmem:[%s4902_s25] sm:$0xff] }
  0x49   :  { %v259_v10 = vmul.f32 %v2817_v27, %v258_v15  ;;  %v278_v60 = vstv %s2830_s2  ;;  %v256_v12 = vadd.f32 %v255_v50, %v252_v4  ;;  %v282_v21 = vstv %s2833_s4  ;;  %v2867_v15 = vld [vmem:[%s4901_s19] sm:$0xff]  ;;  %v2931_v4 = vld [vmem:[%s4901_s19 + $0x10] sm:$0xff]  ;;  %s2955_s2 = sld [smem:[#allocation2 + $0x43]]  ;;  %s2960_s4 = sld [smem:[#allocation2 + $0x49]] }
  0x4a   :  { %v125_v19 = vmul.f32 1.442695, %v124_v5  ;;  %v149_v20 = vmul.f32 1.442695, %v148_v7  ;;  %v173_v22 = vmul.f32 1.442695, %v172_v55  ;;  %v219_v14 = vadd.f32 %v218_v6, %v216_v8 }
  0x4b   :  { %v196_v23 = vsub.f32 0.0, %v195_v9  ;;  %v240_v1 = vadd.f32 %v239_v63, %v236_v3  ;;  %v260_v24 = vadd.f32 %v259_v10, %v256_v12  ;;  %v263_v25 = vmul.f32 %v2823_v32, %v262_v16  ;;  %v2112_v9 = vld [vmem:[%s4902_s25 + $0x8] sm:$0xff] }
  0x4c   :  { %2480 = vpow2.f32 %v125_v19  ;;  %v276_v26 = vmul.f32 %v2801_v13, %v275_v17  ;;  %v279_v28 = vmul.f32 %v2807_v18, %v278_v60  ;;  %v286_v6 = vstv %s2840_s14  ;;  %s2962_s14 = sld [smem:[#allocation2 + $0x4a]] }
  0x4d   :  { %2482 = vpow2.f32 %v149_v20  ;;  %v283_v29 = vmul.f32 %v2817_v27, %v282_v21  ;;  %vm304_vm0 = vcmp.eq.f32.partialorder %v2867_v15, 4.0  ;;  %v220_v30 = vsub.f32 0.0, %v219_v14 }
  0x4e   :  { %v243_v31 = vadd.f32 %v242_v11, %v240_v1  ;;  %v280_v16 = vadd.f32 %v279_v28, %v276_v26  ;;  %v2884_v33 = vstv %s2847_s15  ;;  %2484 = vpow2.f32 %v173_v22  ;;  %s2968_s15 = sld [smem:[#allocation2 + $0x44]] }
  0x4f   :  { %v197_v13 = vmul.f32 1.442695, %v196_v23  ;;  %v264_v17 = vadd.f32 %v263_v25, %v260_v24  ;;  %v287_v18 = vmul.f32 %v2823_v32, %v286_v6  ;;  %v266_v27 = vstv %s2856_s13  ;;  %s2970_s13 = sld [smem:[#allocation2 + $0x4b]] }
  0x50   :  { %v284_v35 = vadd.f32 %v283_v29, %v280_v16  ;;  %vm303_vm1 = vcmp.eq.f32.partialorder %v2867_v15, 3.0  ;;  %v244_v11 = vsub.f32 0.0, %v243_v31  ;;  %v306_v36 = vsel %vm304_vm0, %v2884_v33, 0.0 }
  0x51   :  { %v2898_v37 = vstv %s2860_s16  ;;  %vm391_vm2 = vcmp.eq.f32.partialorder %v2890_v34, 4.0  ;;  %2486 = vpow2.f32 %v197_v13  ;;  %v221_v32 = vmul.f32 1.442695, %v220_v30  ;;  %s2976_s16 = sld [smem:[#allocation2 + $0x51]] }
  0x52   :  { %v267_v38 = vadd.f32 %v266_v27, %v264_v17  ;;  %v288_v39 = vadd.f32 %v287_v18, %v284_v35  ;;  %v290_v40 = vstv %s2877_s20  ;;  %vm302_vm3 = vcmp.eq.f32.partialorder %v2867_v15, 2.0  ;;  %s2991_s20 = sld [smem:[#allocation2 + $0x45]] }
  0x53   :  { %v308_v42 = vsel %vm303_vm1, %v2898_v37, %v306_v36  ;;  %v2904_v43 = vstv %s2038_s21  ;;  %v245_v45 = vmul.f32 1.442695, %v244_v11  ;;  %vm390_vm4 = vcmp.eq.f32.partialorder %v2890_v34, 3.0  ;;  %s2994_s21 = sld [smem:[#allocation2 + $0x4c]] }
  0x54   :  { %v392_v46 = vsel %vm391_vm2, %v2884_v33, 0.0  ;;  %2488 = vpow2.f32 %v221_v32  ;;  %v268_v48 = vsub.f32 0.0, %v267_v38  ;;  %v291_v49 = vadd.f32 %v290_v40, %v288_v39 }
  0x55   :  { %vm301_vm5 = vcmp.eq.f32.partialorder %v2867_v15, 1.0  ;;  %v310_v52 = vsel %vm302_vm3, %v2904_v43, %v308_v42  ;;  %v2910_v53 = vstv %s2037_s23  ;;  %vm300_vm6 = vcmp.eq.f32.partialorder %v2867_v15, 0.0  ;;  %s3008_s23 = sld [smem:[#allocation2 + $0x5a]] }
  0x56   :  { %v2481_v41 = vpop.eup %2480  ;;  %2490 = vpow2.f32 %v245_v45  ;;  %v2913_v56 = vstv %s30_s0  ;;  %vm389_vm7 = vcmp.eq.f32.partialorder %v2890_v34, 2.0  ;;  %v393_v57 = vsel %vm390_vm4, %v2898_v37, %v392_v46  ;;  %s3011_s0 = sld [smem:[#allocation2 + $0xc9]] }
  0x57   :  { %v2483_v44 = vpop.eup %2482  ;;  %v127_v47 = vadd.f32 1.0, %v2481_v41  ;;  %v269_v58 = vmul.f32 1.442695, %v268_v48  ;;  %v292_v59 = vsub.f32 0.0, %v291_v49  ;;  %v312_v61 = vsel %vm301_vm5, %v2910_v53, %v310_v52 }
  0x58   :  { %v151_v51 = vadd.f32 1.0, %v2483_v44  ;;  %v2485_v54 = vpop.eup %2484  ;;  %vm388_vm8 = vcmp.eq.f32.partialorder %v2890_v34, 1.0  ;;  %v394_v0 = vsel %vm389_vm7, %v2904_v43, %v393_v57  ;;  %v314_v3 = vsel %vm300_vm6, %v2913_v56, %v312_v61 }
  0x59   :  { %2492 = vrcp.f32 %v127_v47  ;;  %v175_v62 = vadd.f32 1.0, %v2485_v54  ;;  %v293_v5 = vmul.f32 1.442695, %v292_v59  ;;  %vm387_vm9 = vcmp.eq.f32.partialorder %v2890_v34, 0.0 }
  0x5a   :  { %2494 = vrcp.f32 %v151_v51  ;;  %v395_v8 = vsel %vm388_vm8, %v2910_v53, %v394_v0  ;;  %v315_v55 = vmul.f32 %v314_v3, %v298_v2  ;;  %vm481_vm10 = vcmp.eq.f32.partialorder %v2931_v4, 4.0 }
  0x5b   :  { %v2487_v63 = vpop.eup %2486  ;;  %2496 = vpow2.f32 %v269_v58  ;;  %v396_v10 = vsel %vm387_vm9, %v2913_v56, %v395_v8  ;;  %vm480_vm11 = vcmp.eq.f32.partialorder %v2931_v4, 3.0  ;;  %v482_v20 = vsel %vm481_vm10, %v2884_v33, 0.0 }
  0x5c   :  { %2498 = vrcp.f32 %v175_v62  ;;  %v199_v7 = vadd.f32 1.0, %v2487_v63  ;;  %v319_v22 = vstv %s2924_s26  ;;  %v322_v23 = vstv %s2926_s27  ;;  %s3027_s26 = sld [smem:[#allocation2 + $0x4d]]  ;;  %s3036_s27 = sld [smem:[#allocation2 + $0x5b]] }
  0x5d   :  { %2500 = vpow2.f32 %v293_v5  ;;  %v397_v14 = vmul.f32 %v2112_v9, %v396_v10  ;;  %vm479_vm12 = vcmp.eq.f32.partialorder %v2931_v4, 2.0  ;;  %v483_v1 = vsel %vm480_vm11, %v2898_v37, %v482_v20 }
  0x5e   :  { %v2489_v50 = vpop.eup %2488  ;;  %2502 = vrcp.f32 %v199_v7  ;;  %v401_v24 = vstv %s2935_s30  ;;  %v404_v25 = vstv %s2937_s5  ;;  %vm477_vm13 = vcmp.eq.f32.partialorder %v2931_v4, 0.0  ;;  %s3051_s30 = sld [smem:[#allocation2 + $0x47]]  ;;  %s3054_s5 = sld [smem:[#allocation2 + $0x4e]] }
  0x5f   :  { %v223_v19 = vadd.f32 1.0, %v2489_v50  ;;  %2504 = vtanh.f32 %v315_v55  ;;  %v326_v30 = vstv %s2940_s6  ;;  %v330_v31 = vstv %s2942_s7  ;;  %s3064_s6 = sld [smem:[#allocation2 + $0x5c]]  ;;  %s3068_s7 = sld [smem:[#allocation2 + $0xe9]] }
  0x60   :  { %v2491_v60 = vpop.eup %2490  ;;  %vm478_vm14 = vcmp.eq.f32.partialorder %v2931_v4, 1.0  ;;  %v334_v16 = vstv %s2944_s8  ;;  %v484_v18 = vsel %vm479_vm12, %v2904_v43, %v483_v1  ;;  %v338_v27 = vstv %s2946_s9  ;;  %s3071_s8 = sld [smem:[#allocation2 + $0x55]] }
  0x61   :  { %2506 = vrcp.f32 %v223_v19  ;;  %v247_v15 = vadd.f32 1.0, %v2491_v60  ;;  %v408_v35 = vstv %s2955_s2  ;;  %v491_v38 = vstv %s2960_s4  ;;  %s3084_s4 = sld [smem:[#allocation2 + $0x56]]  ;;  %s3205_s2 = sld [smem:[#allocation2 + $0xca]] }
  0x62   :  { %2508 = vtanh.f32 %v397_v14  ;;  %v494_v39 = vstv %s2962_s14  ;;  %v342_v41 = vstv %s2953_s12  ;;  %v412_v42 = vstv %s2968_s15  ;;  %s3091_s14 = sld [smem:[#allocation2 + $0x5d]]  ;;  %s3098_s15 = sld [smem:[#allocation2 + $0x4f]] }
  0x63   :  { %v2958_v12 = vpop.eup %2492  ;;  %2510 = vrcp.f32 %v247_v15  ;;  %v485_v44 = vsel %vm478_vm14, %v2910_v53, %v484_v18  ;;  %v498_v45 = vstv %s2970_s13  ;;  %v582_v49 = vstv %s2976_s16  ;;  %s3107_s13 = sld [smem:[#allocation2 + $0x57]]  ;;  %s3143_s12 = sld [smem:[#allocation2 + $0x129]] }
  0x64   :  { %v2964_v21 = vpop.eup %2494  ;;  %v320_v28 = vmul.f32 %v2958_v12, %v319_v22  ;;  %v402_v13 = vmul.f32 %v2958_v12, %v401_v24  ;;  %v585_v51 = vstv %s2978_s17  ;;  %v492_v54 = vmul.f32 %v2958_v12, %v491_v38  ;;  %s3116_s17 = sld [smem:[#allocation2 + $0xf9]]  ;;  %s3237_s9 = sld [smem:[#allocation2 + $0x65]] }
  0x65   :  { %v2497_v26 = vpop.eup %2496  ;;  %v323_v6 = vmul.f32 %v2964_v21, %v322_v23  ;;  %v405_v17 = vmul.f32 %v2964_v21, %v404_v25  ;;  %v495_v57 = vmul.f32 %v2964_v21, %v494_v39  ;;  %v346_v61 = vstv %s2984_s18  ;;  %v2131_v25 = vld [vmem:[%s4902_s25 + $0x10] sm:$0xff]  ;;  %s3164_s18 = sld [smem:[#allocation2 + $0x61]]  ;;  %s3239_s16 = sld [smem:[#allocation2 + $0xea]] }
  0x66   :  { %v2987_v29 = vpop.eup %2498  ;;  %v271_v34 = vadd.f32 1.0, %v2497_v26  ;;  %v486_v62 = vsel %vm477_vm13, %v2913_v56, %v485_v44  ;;  %v416_v2 = vstv %s2991_s20  ;;  %v502_v3 = vstv %s2994_s21  ;;  %s3120_s20 = sld [smem:[#allocation2 + $0x5e]]  ;;  %s3126_s21 = sld [smem:[#allocation2 + $0x109]] }
  0x67   :  { %v2501_v11 = vpop.eup %2500  ;;  %v324_v36 = vadd.f32 %v323_v6, %v320_v28  ;;  %v327_v32 = vmul.f32 %v2987_v29, %v326_v30  ;;  %v406_v47 = vadd.f32 %v405_v17, %v402_v13  ;;  %v409_v48 = vmul.f32 %v2987_v29, %v408_v35 }
  0x68   :  { %v3017_v40 = vpop.eup %2502  ;;  %2512 = vrcp.f32 %v271_v34  ;;  %v295_v52 = vadd.f32 1.0, %v2501_v11  ;;  %v583_v5 = vmul.f32 %v2958_v12, %v582_v49  ;;  %v499_v8 = vmul.f32 %v2987_v29, %v498_v45 }
  0x69   :  { %v3029_v46 = vpop.eup %2504  ;;  %v328_v58 = vadd.f32 %v327_v32, %v324_v36  ;;  %v331_v59 = vmul.f32 %v3017_v40, %v330_v31  ;;  %v410_v4 = vadd.f32 %v409_v48, %v406_v47  ;;  %v413_v7 = vmul.f32 %v3017_v40, %v412_v42  ;;  %v3113_v47 = vld [vmem:[%s4901_s19 + $0x18] sm:$0xff]  ;;  %4903 = sst [smem:[#allocation5_spill]] %s3143_s12 }
  0x6a   :  { %v317_v0 = vmax.f32 %v3029_v46, 0.0  ;;  %v586_v50 = vmul.f32 %v2964_v21, %v585_v51  ;;  %2514 = vrcp.f32 %v295_v52  ;;  %v496_v9 = vadd.f32 %v495_v57, %v492_v54 }
  0x6b   :  { %v3047_v63 = vpop.eup %2506  ;;  %v673_v10 = vstv %s3006_s22  ;;  %v676_v60 = vstv %s3008_s23  ;;  %v332_v19 = vadd.f32 %v331_v59, %v328_v58  ;;  %v350_v22 = vstv %s2997_s1  ;;  %s3128_s22 = sld [smem:[#allocation2 + $0x50]]  ;;  %s3133_s23 = sld [smem:[#allocation2 + $0x119]] }
  0x6c   :  { %v3060_v55 = vpop.eup %2508  ;;  %v335_v20 = vmul.f32 %v3047_v63, %v334_v16  ;;  %v589_v23 = vstv %s3015_s24  ;;  %v360_v1 = vstv %s3011_s0  ;;  %v417_v15 = vmul.f32 %v3047_v63, %v416_v2  ;;  %s3136_s24 = sld [smem:[#allocation2 + $0xba]]  ;;  %s3219_s1 = sld [smem:[#allocation2 + $0xbd]] }
  0x6d   :  { %v3073_v14 = vpop.eup %2510  ;;  %v420_v24 = vstv %s3021_s3  ;;  %v506_v26 = vstv %s3027_s26  ;;  %v414_v28 = vadd.f32 %v413_v7, %v410_v4  ;;  %v503_v6 = vmul.f32 %v3017_v40, %v502_v3  ;;  %s3147_s3 = sld [smem:[#allocation2 + $0x5f]]  ;;  %s3153_s26 = sld [smem:[#allocation2 + $0xbb]] }
  0x6e   :  { %v674_v30 = vmul.f32 %v2958_v12, %v673_v10  ;;  %v677_v31 = vmul.f32 %v2964_v21, %v676_v60  ;;  %v500_v16 = vadd.f32 %v499_v8, %v496_v9  ;;  %v587_v13 = vadd.f32 %v586_v50, %v583_v5  ;;  %s3591_s0 = sld [smem:[#allocation2 + $0x7a]] }
  0x6f   :  { %v590_v17 = vmul.f32 %v2987_v29, %v589_v23  ;;  %v680_v18 = vstv %s3036_s27  ;;  %v336_v34 = vadd.f32 %v335_v20, %v332_v19  ;;  %v339_v35 = vmul.f32 %v3073_v14, %v338_v27  ;;  %s3156_s27 = sld [smem:[#allocation2 + $0x58]] }
  0x70   :  { %v3096_v11 = vmul.f32 %v2131_v25, %v486_v62  ;;  %v593_v36 = vstv %s3045_s29  ;;  %v363_v38 = vstv %s3040_s28  ;;  %v421_v39 = vmul.f32 %v3073_v14, %v420_v24  ;;  %s3166_s29 = sld [smem:[#allocation2 + $0x62]] }
  0x71   :  { %v424_v42 = vstv %s3051_s30  ;;  %v510_v44 = vstv %s3054_s5  ;;  %v418_v45 = vadd.f32 %v417_v15, %v414_v28  ;;  %v507_v27 = vmul.f32 %v3047_v63, %v506_v26  ;;  %s3173_s30 = sld [smem:[#allocation2 + $0x60]]  ;;  %s3179_s5 = sld [smem:[#allocation2 + $0x139]] }
  0x72   :  { %v3101_v32 = vpop.eup %2512  ;;  %v678_v48 = vadd.f32 %v677_v31, %v674_v30  ;;  %v681_v49 = vmul.f32 %v2987_v29, %v680_v18  ;;  %v504_v51 = vadd.f32 %v503_v6, %v500_v16  ;;  %v591_v52 = vadd.f32 %v590_v17, %v587_v13 }
  0x73   :  { %v594_v54 = vmul.f32 %v3017_v40, %v593_v36  ;;  %v684_v57 = vstv %s3064_s6  ;;  %v340_v58 = vadd.f32 %v339_v35, %v336_v34  ;;  %v343_v59 = vmul.f32 %v3101_v32, %v342_v41  ;;  %s3186_s6 = sld [smem:[#allocation2 + $0x63]] }
  0x74   :  { %v366_v62 = vstv %s3068_s7  ;;  %v597_v2 = vstv %s3071_s8  ;;  %v3131_v3 = vpop.eup %2514  ;;  %v428_v5 = vstv %s3078_s10  ;;  %v511_v4 = vmul.f32 %v3073_v14, %v510_v44  ;;  %s3190_s8 = sld [smem:[#allocation2 + $0xbc]]  ;;  %s3293_s10 = sld [smem:[#allocation2 + $0x67]] }
  0x75   :  { %vm572_vm15 = vcmp.eq.f32.partialorder %v3113_v47, 4.0  ;;  %v601_v41 = vstv %s3084_s4  ;;  %v422_v7 = vadd.f32 %v421_v39, %v418_v45  ;;  %v425_v8 = vmul.f32 %v3101_v32, %v424_v42  ;;  %s3213_s4 = sld [smem:[#allocation2 + $0x64]]  ;;  %s3533_s7 = sld [smem:[#allocation2 + $0x76]] }
  0x76   :  { %v682_v50 = vadd.f32 %v681_v49, %v678_v48  ;;  %v685_v9 = vmul.f32 %v3017_v40, %v684_v57  ;;  %v508_v10 = vadd.f32 %v507_v27, %v504_v51  ;;  %v595_v60 = vadd.f32 %v594_v54, %v591_v52 }
  0x77   :  { %v598_v19 = vmul.f32 %v3047_v63, %v597_v2  ;;  %v688_v20 = vstv %s3091_s14  ;;  %v344_v23 = vadd.f32 %v343_v59, %v340_v58  ;;  %v347_v15 = vmul.f32 %v3131_v3, %v346_v61  ;;  %4904 = sst [smem:[#allocation6_spill]] %s3179_s5  ;;  %s3225_s14 = sld [smem:[#allocation2 + $0xda]] }
  0x78   :  { %v514_v24 = vstv %s3098_s15  ;;  %vm570_vm0 = vcmp.eq.f32.partialorder %v3113_v47, 2.0  ;;  %vm571_vm1 = vcmp.eq.f32.partialorder %v3113_v47, 3.0  ;;  %v573_v25 = vsel %vm572_vm15, %v2884_v33, 0.0  ;;  %s3308_s15 = sld [smem:[#allocation2 + $0x12b]] }
  0x79   :  { %v602_v26 = vmul.f32 %v3073_v14, %v601_v41  ;;  %v605_v28 = vstv %s3107_s13  ;;  %v426_v61 = vadd.f32 %v425_v8, %v422_v7  ;;  %v429_v6 = vmul.f32 %v3131_v3, %v428_v5  ;;  %s3329_s13 = sld [smem:[#allocation2 + $0x68]] }
  0x7a   :  { %vm569_vm2 = vcmp.eq.f32.partialorder %v3113_v47, 1.0  ;;  %v686_v30 = vadd.f32 %v685_v9, %v682_v50  ;;  %v689_v31 = vmul.f32 %v3047_v63, %v688_v20  ;;  %v512_v16 = vadd.f32 %v511_v4, %v508_v10 }
  0x7b   :  { %v515_v13 = vmul.f32 %v3101_v32, %v514_v24  ;;  %v599_v17 = vadd.f32 %v598_v19, %v595_v60  ;;  %v692_v18 = vstv %s3120_s20  ;;  %v348_v34 = vadd.f32 %v347_v15, %v344_v23  ;;  %s3245_s20 = sld [smem:[#allocation2 + $0xfa]] }
  0x7c   :  { %v369_v35 = vstv %s3116_s17  ;;  %v372_v36 = vstv %s3126_s21  ;;  %v518_v39 = vstv %s3128_s22  ;;  %v375_v42 = vstv %s3133_s23  ;;  %s3247_s22 = sld [smem:[#allocation2 + $0x10a]]  ;;  %s3549_s17 = sld [smem:[#allocation2 + $0xbf]] }
  0x7d   :  { %v432_v44 = vstv %s3136_s24  ;;  %2516 = vtanh.f32 %v3096_v11  ;;  %v574_v45 = vsel %vm571_vm1, %v2898_v37, %v573_v25  ;;  %v430_v27 = vadd.f32 %v429_v6, %v426_v61  ;;  %v3195_v11 = vld [vmem:[%s4901_s19 + $0x20] sm:$0xff]  ;;  %v3234_v61 = vld [vmem:[%s4901_s19 + $0x28] sm:$0xff]  ;;  %s3253_s24 = sld [smem:[#allocation2 + $0x11a]]  ;;  %s4953_s23 = sld [smem:[#allocation33_spill]] }
  0x7e   :  { %vm568_vm3 = vcmp.eq.f32.partialorder %v3113_v47, 0.0  ;;  %v606_v48 = vmul.f32 %v3101_v32, %v605_v28  ;;  %v690_v49 = vadd.f32 %v689_v31, %v686_v30  ;;  %v693_v51 = vmul.f32 %v3073_v14, %v692_v18  ;;  %4916 = sst [smem:[#allocation18_spill]] %s3308_s15 }
  0x7f   :  { %v516_v52 = vadd.f32 %v515_v13, %v512_v16  ;;  %v519_v54 = vmul.f32 %v3131_v3, %v518_v39  ;;  %v603_v57 = vadd.f32 %v602_v26, %v599_v17  ;;  %v696_v58 = vstv %s3147_s3  ;;  %s3259_s3 = sld [smem:[#allocation2 + $0x12a]]  ;;  %s3382_s15 = sld [smem:[#allocation2 + $0xed]] }
  0x80   :  { %v351_v59 = vadd.f32 %v350_v22, %v348_v34  ;;  %v378_v2 = vstv %s3143_s12  ;;  %v522_v5 = vstv %s3153_s26  ;;  %v609_v4 = vstv %s3156_s27  ;;  %s3265_s26 = sld [smem:[#allocation2 + $0x66]]  ;;  %s3267_s27 = sld [smem:[#allocation2 + $0x13a]] }
  0x81   :  { %v575_v41 = vsel %vm570_vm0, %v2904_v43, %v574_v45  ;;  %vm663_vm4 = vcmp.eq.f32.partialorder %v3195_v11, 4.0  ;;  %v764_v7 = vstv %s3164_s18  ;;  %v767_v8 = vstv %s3166_s29  ;;  %4905 = sst [smem:[#allocation7_spill]] %s3245_s20  ;;  %s3313_s18 = sld [smem:[#allocation2 + $0x13b]] }
  0x82   :  { %v433_v50 = vadd.f32 %v432_v44, %v430_v27  ;;  %vm662_vm5 = vcmp.eq.f32.partialorder %v3195_v11, 3.0  ;;  %v694_v22 = vadd.f32 %v693_v51, %v690_v49  ;;  %v697_v9 = vmul.f32 %v3101_v32, %v696_v58  ;;  %4906 = sst [smem:[#allocation8_spill]] %s3247_s22  ;;  %s3315_s29 = sld [smem:[#allocation2 + $0xcc]] }
  0x83   :  { %v520_v10 = vadd.f32 %v519_v54, %v516_v52  ;;  %v607_v60 = vadd.f32 %v606_v48, %v603_v57  ;;  %v610_v19 = vmul.f32 %v3131_v3, %v609_v4  ;;  %v700_v20 = vstv %s3173_s30  ;;  %4907 = sst [smem:[#allocation9_spill]] %s3253_s24  ;;  %v2150_v57 = vld [vmem:[%s4902_s25 + $0x18] sm:$0xff]  ;;  %s3281_s30 = sld [smem:[#allocation2 + $0xcb]] }
  0x84   :  { %v352_v23 = vsub.f32 0.0, %v351_v59  ;;  %v664_v15 = vsel %vm663_vm4, %v2884_v33, 0.0  ;;  %v765_v24 = vmul.f32 %v2958_v12, %v764_v7  ;;  %v768_v25 = vmul.f32 %v2964_v21, %v767_v8  ;;  %s3346_s12 = sld [smem:[#allocation2 + $0xfc]] }
  0x85   :  { %v381_v26 = vstv %s3179_s5  ;;  %v576_v28 = vsel %vm569_vm2, %v2910_v53, %v575_v41  ;;  %vm659_vm6 = vcmp.eq.f32.partialorder %v3195_v11, 0.0  ;;  %v771_v6 = vstv %s3186_s6  ;;  %4908 = sst [smem:[#allocation10_spill]] %s3259_s3  ;;  %s3283_s6 = sld [smem:[#allocation2 + $0xdb]] }
  0x86   :  { %v434_v30 = vsub.f32 0.0, %v433_v50  ;;  %v613_v31 = vstv %s3190_s8  ;;  %v698_v16 = vadd.f32 %v697_v9, %v694_v22  ;;  %v701_v13 = vmul.f32 %v3131_v3, %v700_v20  ;;  %4909 = sst [smem:[#allocation11_spill]] %s3267_s27  ;;  %s3287_s8 = sld [smem:[#allocation2 + $0xeb]] }
  0x87   :  { %v3243_v17 = vpop.eup %2516  ;;  %v523_v18 = vadd.f32 %v522_v5, %v520_v10  ;;  %v611_v34 = vadd.f32 %v610_v19, %v607_v60  ;;  %vm661_vm7 = vcmp.eq.f32.partialorder %v3195_v11, 2.0  ;;  %v665_v39 = vsel %vm662_vm5, %v2898_v37, %v664_v15  ;;  %4917 = sst [smem:[#allocation19_spill]] %s3313_s18  ;;  %s3322_s5 = sld [smem:[#allocation2 + $0xdc]] }
  0x88   :  { %v353_v44 = vmul.f32 1.442695, %v352_v23  ;;  %vm754_vm8 = vcmp.eq.f32.partialorder %v3234_v61, 4.0  ;;  %v769_v45 = vadd.f32 %v768_v25, %v765_v24  ;;  %v772_v27 = vmul.f32 %v2987_v29, %v771_v6  ;;  %v2169_v25 = vld [vmem:[%s4902_s25 + $0x20] sm:$0xff]  ;;  %4918 = sst [smem:[#allocation20_spill]] %s3315_s29  ;;  %s3396_s18 = sld [smem:[#allocation2 + $0x6c]] }
  0x89   :  { %v399_v48 = vmax.f32 %v3060_v55, 0.0  ;;  %v442_v49 = vstv %s3205_s2  ;;  %v577_v51 = vsel %vm568_vm3, %v2913_v56, %v576_v28  ;;  %v775_v52 = vstv %s3213_s4  ;;  %4910 = sst [smem:[#allocation12_spill]] %s3281_s30  ;;  %s3297_s4 = sld [smem:[#allocation2 + $0x10b]] }
  0x8a   :  { %v435_v54 = vmul.f32 1.442695, %v434_v30  ;;  %vm660_vm9 = vcmp.eq.f32.partialorder %v3195_v11, 1.0  ;;  %v666_v58 = vsel %vm661_vm7, %v2904_v43, %v665_v39  ;;  %v702_v47 = vadd.f32 %v701_v13, %v698_v16  ;;  %4921 = sst [smem:[#allocation23_spill]] %s3346_s12  ;;  %s3428_s12 = sld [smem:[#allocation2 + $0x6d]] }
  0x8b   :  { %v614_v59 = vadd.f32 %v613_v31, %v611_v34  ;;  %v704_v5 = vstv %s3219_s1  ;;  %vm753_vm10 = vcmp.eq.f32.partialorder %v3234_v61, 3.0  ;;  %v755_v4 = vsel %vm754_vm8, %v2884_v33, 0.0  ;;  %4911 = sst [smem:[#allocation13_spill]] %s3283_s6  ;;  %s3306_s1 = sld [smem:[#allocation2 + $0x11b]] }
  0x8c   :  { %2518 = vpow2.f32 %v353_v44  ;;  %v524_v41 = vsub.f32 0.0, %v523_v18  ;;  %v773_v7 = vadd.f32 %v772_v27, %v769_v45  ;;  %v776_v8 = vmul.f32 %v3017_v40, %v775_v52  ;;  %4912 = sst [smem:[#allocation14_spill]] %s3287_s8  ;;  %v3336_v44 = vld [vmem:[%s4901_s19 + $0x30] sm:$0xff]  ;;  %s3357_s19 = sld [smem:[#allocation2 + $0x11c]] }
  0x8d   :  { %v446_v50 = vstv %s3225_s14  ;;  %v578_v22 = vmul.f32 %v2150_v57, %v577_v51  ;;  %v667_v9 = vsel %vm660_vm9, %v2910_v53, %v666_v58  ;;  %v779_v10 = vstv %s3237_s9  ;;  %4919 = sst [smem:[#allocation21_spill]] %s3322_s5  ;;  %s3348_s9 = sld [smem:[#allocation2 + $0x10c]] }
  0x8e   :  { %2520 = vpow2.f32 %v435_v54  ;;  %v705_v60 = vadd.f32 %v704_v5, %v702_v47  ;;  %vm752_vm11 = vcmp.eq.f32.partialorder %v3234_v61, 2.0  ;;  %v756_v19 = vsel %vm753_vm10, %v2898_v37, %v755_v4  ;;  %s3431_s5 = sld [smem:[#allocation2 + $0xfe]]  ;;  %s4952_s28 = sld [smem:[#allocation23_spill]] }
  0x8f   :  { %4914 = sst [smem:[#allocation16_spill]] %s3297_s4  ;;  %v450_v20 = vstv %s3239_s16  ;;  %v454_v23 = vstv %s3245_s20  ;;  %v458_v15 = vstv %s3247_s22  ;;  %v615_v24 = vsub.f32 0.0, %v614_v59  ;;  %s3340_s22 = sld [smem:[#allocation2 + $0x6a]] }
  0x90   :  { %v525_v28 = vmul.f32 1.442695, %v524_v41  ;;  %v668_v6 = vsel %vm659_vm6, %v2913_v56, %v667_v9  ;;  %v777_v30 = vadd.f32 %v776_v8, %v773_v7  ;;  %v780_v31 = vmul.f32 %v3047_v63, %v779_v10  ;;  %v2188_v10 = vld [vmem:[%s4902_s25 + $0x28] sm:$0xff]  ;;  %s3386_s20 = sld [smem:[#allocation2 + $0xbe]]  ;;  %s3557_s16 = sld [smem:[#allocation2 + $0x77]] }
  0x91   :  { %4915 = sst [smem:[#allocation17_spill]] %s3306_s1  ;;  %v462_v16 = vstv %s3253_s24  ;;  %vm751_vm12 = vcmp.eq.f32.partialorder %v3234_v61, 1.0  ;;  %v757_v13 = vsel %vm752_vm11, %v2904_v43, %v756_v19  ;;  %v783_v18 = vstv %s3265_s26  ;;  %s3338_s24 = sld [smem:[#allocation2 + $0x69]] }
  0x92   :  { %v466_v34 = vstv %s3259_s3  ;;  %v470_v39 = vstv %s3267_s27  ;;  %2522 = vtanh.f32 %v578_v22  ;;  %v706_v11 = vsub.f32 0.0, %v705_v60  ;;  %s3343_s26 = sld [smem:[#allocation2 + $0xec]]  ;;  %s3365_s3 = sld [smem:[#allocation2 + $0x6b]] }
  0x93   :  { %v489_v45 = vmax.f32 %v3243_v17, 0.0  ;;  %v616_v27 = vmul.f32 1.442695, %v615_v24  ;;  %v669_v51 = vmul.f32 %v2169_v25, %v668_v6  ;;  %vm750_vm13 = vcmp.eq.f32.partialorder %v3234_v61, 0.0  ;;  %4922 = sst [smem:[#allocation24_spill]] %s3348_s9  ;;  %s3359_s27 = sld [smem:[#allocation2 + $0x12c]] }
  0x94   :  { %2524 = vpow2.f32 %v525_v28  ;;  %v758_v52 = vsel %vm751_vm12, %v2910_v53, %v757_v13  ;;  %v781_v54 = vadd.f32 %v780_v31, %v777_v30  ;;  %v784_v57 = vmul.f32 %v3073_v14, %v783_v18  ;;  %4923 = sst [smem:[#allocation25_spill]] %s3357_s19  ;;  %s3403_s1 = sld [smem:[#allocation2 + $0x11d]] }
  0x95   :  { %v532_v58 = vstv %s3281_s30  ;;  %v536_v47 = vstv %s3283_s6  ;;  %v540_v59 = vstv %s3287_s8  ;;  %v787_v5 = vstv %s3293_s10  ;;  %s3369_s30 = sld [smem:[#allocation2 + $0x13c]]  ;;  %s3371_s8 = sld [smem:[#allocation2 + $0xcd]] }
  0x96   :  { %v2519_v4 = vpop.eup %2518  ;;  %v544_v41 = vstv %s3295_s11  ;;  %v548_v7 = vstv %s3297_s4  ;;  %v707_v8 = vmul.f32 1.442695, %v706_v11  ;;  %vm845_vm14 = vcmp.eq.f32.partialorder %v3336_v44, 4.0  ;;  %s3380_s10 = sld [smem:[#allocation2 + $0xdd]]  ;;  %s3433_s29 = sld [smem:[#allocation2 + $0x10e]] }
  0x97   :  { %2526 = vtanh.f32 %v669_v51  ;;  %v759_v60 = vsel %vm750_vm13, %v2913_v56, %v758_v52  ;;  %v785_v25 = vadd.f32 %v784_v57, %v781_v54  ;;  %v788_v28 = vmul.f32 %v3101_v32, %v787_v5  ;;  %s3392_s6 = sld [smem:[#allocation2 + $0xfd]]  ;;  %s3444_s19 = sld [smem:[#allocation2 + $0x6e]] }
  0x98   :  { %4920 = sst [smem:[#allocation22_spill]] %s3343_s26  ;;  %v2521_v19 = vpop.eup %2520  ;;  %2528 = vpow2.f32 %v616_v27  ;;  %v355_v6 = vadd.f32 1.0, %v2519_v4  ;;  %v791_v30 = vstv %s3329_s13  ;;  %vm844_vm15 = vcmp.eq.f32.partialorder %v3336_v44, 3.0  ;;  %s3401_s13 = sld [smem:[#allocation2 + $0x10d]] }
  0x99   :  { %4924 = sst [smem:[#allocation26_spill]] %s3359_s27  ;;  %v846_v61 = vsel %vm845_vm14, %v2884_v33, 0.0  ;;  %2530 = vpow2.f32 %v707_v8  ;;  %v760_v31 = vmul.f32 %v2188_v10, %v759_v60  ;;  %v855_v13 = vstv %s3338_s24  ;;  %s3419_s24 = sld [smem:[#allocation2 + $0xde]] }
  0x9a   :  { %v858_v18 = vstv %s3340_s22  ;;  %v437_v11 = vadd.f32 1.0, %v2521_v19  ;;  %s3407_s4 = sld [smem:[#allocation2 + $0x12d]]  ;;  %v789_v57 = vadd.f32 %v788_v28, %v785_v25  ;;  %v792_v5 = vmul.f32 %v3131_v3, %v791_v30  ;;  %s3417_s22 = sld [smem:[#allocation2 + $0xce]] }
  0x9b   :  { %4925 = sst [smem:[#allocation27_spill]] %s3369_s30  ;;  %s3409_s11 = sld [smem:[#allocation2 + $0x13d]]  ;;  %vm843_vm0 = vcmp.eq.f32.partialorder %v3336_v44, 2.0  ;;  %v847_v4 = vsel %vm844_vm15, %v2898_v37, %v846_v61  ;;  %2532 = vrcp.f32 %v355_v6  ;;  %v856_v10 = vmul.f32 %v2958_v12, %v855_v13 }
  0x9c   :  { %4926 = sst [smem:[#allocation28_spill]] %s3371_s8  ;;  %v3405_v54 = vpop.eup %2522  ;;  %v859_v60 = vmul.f32 %v2964_v21, %v858_v18  ;;  %2534 = vtanh.f32 %v760_v31  ;;  %s3425_s26 = sld [smem:[#allocation2 + $0xee]]  ;;  %v862_v30 = vstv %s3365_s3  ;;  %vm842_vm1 = vcmp.eq.f32.partialorder %v3336_v44, 1.0 }
  0x9d   :  { %4927 = sst [smem:[#allocation29_spill]] %s3380_s10  ;;  %2536 = vrcp.f32 %v437_v11  ;;  %v580_v6 = vmax.f32 %v3405_v54, 0.0  ;;  %v848_v61 = vsel %vm843_vm0, %v2904_v43, %v847_v4  ;;  %v793_v28 = vadd.f32 %v792_v5, %v789_v57  ;;  %s3442_s3 = sld [smem:[#allocation2 + $0x11e]] }
  0x9e   :  { %4928 = sst [smem:[#allocation30_spill]] %s3401_s13  ;;  %v2525_v19 = vpop.eup %2524  ;;  %v795_v8 = vstv %s3386_s20  ;;  %v860_v52 = vadd.f32 %v859_v60, %v856_v10  ;;  %v863_v4 = vmul.f32 %v2987_v29, %v862_v30  ;;  %s3452_s8 = sld [smem:[#allocation2 + $0x72]]  ;;  %vm841_vm2 = vcmp.eq.f32.partialorder %v3336_v44, 0.0 }
  0x9f   :  { %v527_v25 = vadd.f32 1.0, %v2525_v19  ;;  %s3450_s27 = sld [smem:[#allocation2 + $0x71]]  ;;  %s3455_s30 = sld [smem:[#allocation2 + $0x12e]]  ;;  %v849_v10 = vsel %vm842_vm1, %v2910_v53, %v848_v61  ;;  %v866_v60 = vstv %s3396_s18  ;;  %v796_v24 = vadd.f32 %v795_v8, %v793_v28  ;;  %v2207_v61 = vld [vmem:[%s4902_s25 + $0x30] sm:$0xff] }
  0xa0   :  { %s3457_s9 = sld [smem:[#allocation2 + $0x13e]]  ;;  %s3468_s20 = sld [smem:[#allocation2 + $0x6f]]  ;;  %v850_v13 = vsel %vm841_vm2, %v2913_v56, %v849_v10  ;;  %v864_v18 = vadd.f32 %v863_v4, %v860_v52  ;;  %v867_v51 = vmul.f32 %v3017_v40, %v866_v60  ;;  %v874_v22 = vstv %s3444_s19 }
  0xa1   :  { %4929 = sst [smem:[#allocation31_spill]] %s3409_s11  ;;  %v3446_v11 = vpop.eup %2526  ;;  %s3473_s10 = sld [smem:[#allocation2 + $0x73]]  ;;  %2538 = vrcp.f32 %v527_v25  ;;  %v870_v25 = vstv %s3428_s12  ;;  %v797_v52 = vsub.f32 0.0, %v796_v24  ;;  %v851_v60 = vmul.f32 %v2207_v61, %v850_v13 }
  0xa2   :  { %v2529_v57 = vpop.eup %2528  ;;  %s3482_s11 = sld [smem:[#allocation2 + $0x70]]  ;;  %s3494_s13 = sld [smem:[#allocation2 + $0x74]]  ;;  %v868_v27 = vadd.f32 %v867_v51, %v864_v18  ;;  %v871_v28 = vmul.f32 %v3047_v63, %v870_v25  ;;  %v886_v54 = vstv %s3549_s17 }
  0xa3   :  { %v2531_v5 = vpop.eup %2530  ;;  %v618_v8 = vadd.f32 1.0, %v2529_v57  ;;  %v825_v4 = vstv %s3442_s3  ;;  %s3511_s19 = sld [smem:[#allocation2 + $0x75]]  ;;  %s4942_s18 = sld [smem:[#allocation17_spill]] }
  0xa4   :  { %v709_v19 = vadd.f32 1.0, %v2531_v5  ;;  %v949_v31 = vstv %s3452_s8  ;;  %s4947_s8 = sld [smem:[#allocation20_spill]]  ;;  %s4950_s12 = sld [smem:[#allocation21_spill]] }
  0xa5   :  { %v2533_v30 = vpop.eup %2532  ;;  %v946_v5 = vstv %s3450_s27  ;;  %2540 = vrcp.f32 %v618_v8  ;;  %v829_v44 = vstv %s3455_s30  ;;  %v950_v51 = vmul.f32 %v2964_v21, %v949_v31  ;;  %s4944_s27 = sld [smem:[#allocation19_spill]]  ;;  %s4954_s2 = sld [smem:[#allocation24_spill]] }
  0xa6   :  { %v3490_v10 = vpop.eup %2534  ;;  %v358_v9 = vmul.f32 %v2533_v30, %v317_v0  ;;  %v833_v24 = vstv %s3457_s9  ;;  %2542 = vrcp.f32 %v709_v19  ;;  %v878_v13 = vstv %s3468_s20  ;;  %s4951_s20 = sld [smem:[#allocation22_spill]]  ;;  %s4955_s14 = sld [smem:[#allocation25_spill]] }
  0xa7   :  { %v2537_v57 = vpop.eup %2536  ;;  %v947_v61 = vmul.f32 %v2958_v12, %v946_v5  ;;  %v762_v46 = vmax.f32 %v3490_v10, 0.0  ;;  %v875_v0 = vmul.f32 %v3073_v14, %v874_v22  ;;  %v953_v30 = vstv %s3473_s10  ;;  %s3589_s10 = sld [smem:[#allocation2 + $0x79]]  ;;  %s4957_s17 = sld [smem:[#allocation26_spill]] }
  0xa8   :  { %v440_v18 = vmul.f32 %v2537_v57, %v399_v48  ;;  %v798_v19 = vmul.f32 1.442695, %v797_v52  ;;  %2544 = vtanh.f32 %v851_v60  ;;  %v872_v8 = vadd.f32 %v871_v28, %v868_v27  ;;  %s4974_s21 = sld [smem:[#allocation31_spill]]  ;;  %s3863_s30 = sld [smem:[#allocation2 + $0x87]] }
  0xa9   :  { %v882_v31 = vstv %s3482_s11  ;;  %v361_v55 = vmul.f32 %v360_v1, %v358_v9  ;;  %v364_v48 = vmul.f32 %v363_v38, %v358_v9  ;;  %v367_v22 = vmul.f32 %v366_v62, %v358_v9  ;;  %s4958_s11 = sld [smem:[#allocation27_spill]]  ;;  %s3865_s9 = sld [smem:[#allocation2 + $0x121]] }
  0xaa   :  { %v879_v25 = vmul.f32 %v3101_v32, %v878_v13  ;;  %v370_v52 = vmul.f32 %v369_v35, %v358_v9  ;;  %v373_v27 = vmul.f32 %v372_v36, %v358_v9  ;;  %v951_v28 = vadd.f32 %v950_v51, %v947_v61  ;;  %s3882_s3 = sld [smem:[#allocation2 + $0x131]] }
  0xab   :  { %v2539_v57 = vpop.eup %2538  ;;  %v954_v60 = vmul.f32 %v2987_v29, %v953_v30  ;;  %v443_v1 = vmul.f32 %v442_v49, %v440_v18  ;;  %v447_v38 = vmul.f32 %v446_v50, %v440_v18  ;;  %v451_v62 = vmul.f32 %v450_v20, %v440_v18 }
  0xac   :  { %v957_v5 = vstv %s3494_s13  ;;  %v376_v13 = vmul.f32 %v375_v42, %v358_v9  ;;  %v455_v35 = vmul.f32 %v454_v23, %v440_v18  ;;  %v459_v36 = vmul.f32 %v458_v15, %v440_v18  ;;  %s4943_s13 = sld [smem:[#allocation18_spill]] }
  0xad   :  { %v876_v61 = vadd.f32 %v875_v0, %v872_v8  ;;  %v379_v51 = vmul.f32 %v378_v2, %v358_v9  ;;  %v463_v30 = vmul.f32 %v462_v16, %v440_v18  ;;  %v467_v49 = vmul.f32 %v466_v34, %v440_v18 }
  0xae   :  { %v530_v50 = vmul.f32 %v2539_v57, %v489_v45  ;;  %v382_v20 = vmul.f32 %v381_v26, %v358_v9  ;;  %v471_v42 = vmul.f32 %v470_v39, %v440_v18  ;;  %v955_v23 = vadd.f32 %v954_v60, %v951_v28 }
  0xaf   :  { %v958_v15 = vmul.f32 %v3017_v40, %v957_v5  ;;  %v2541_v0 = vpop.eup %2540  ;;  %v444_v2 = vadd.f32 %v443_v1, %v361_v55  ;;  %v448_v16 = vadd.f32 %v447_v38, %v364_v48  ;;  %v452_v8 = vadd.f32 %v451_v62, %v367_v22 }
  0xb0   :  { %v961_v34 = vstv %s3511_s19  ;;  %v2543_v17 = vpop.eup %2542  ;;  %v456_v45 = vadd.f32 %v455_v35, %v370_v52  ;;  %v460_v26 = vadd.f32 %v459_v36, %v373_v27  ;;  %v880_v39 = vadd.f32 %v879_v25, %v876_v61  ;;  %s3576_s19 = sld [smem:[#allocation2 + $0x78]]  ;;  %v3596_v61 = vld [vmem:[%s4953_s23 + $0x38] sm:$0xff]  ;;  %4987 = sst [smem:[#allocation10_spill]] %s3882_s3 }
  0xb1   :  { %v883_v9 = vmul.f32 %v3131_v3, %v882_v31  ;;  %v464_v18 = vadd.f32 %v463_v30, %v376_v13  ;;  %v468_v57 = vadd.f32 %v467_v49, %v379_v51  ;;  %v533_v55 = vmul.f32 %v532_v58, %v530_v50 }
  0xb2   :  { %2546 = vpow2.f32 %v798_v19  ;;  %v3562_v48 = vpop.eup %2544  ;;  %v537_v22 = vmul.f32 %v536_v47, %v530_v50  ;;  %v541_v52 = vmul.f32 %v540_v59, %v530_v50  ;;  %v959_v28 = vadd.f32 %v958_v15, %v955_v23 }
  0xb3   :  { %v962_v25 = vmul.f32 %v3047_v63, %v961_v34  ;;  %v545_v31 = vmul.f32 %v544_v41, %v530_v50  ;;  %v549_v27 = vmul.f32 %v548_v7, %v530_v50  ;;  %v621_v60 = vmul.f32 %v2541_v0, %v580_v6 }
  0xb4   :  { %v965_v58 = vstv %s3533_s7  ;;  %v472_v19 = vadd.f32 %v471_v42, %v382_v20  ;;  %v4945_v1 = vstv %s4942_s18  ;;  %v4946_v47 = vstv %s4943_s13  ;;  %s3609_s18 = sld [smem:[#allocation2 + $0x7b]]  ;;  %s4966_s13 = sld [smem:[#allocation28_spill]] }
  0xb5   :  { %v553_v38 = vmul.f32 %v4945_v1, %v530_v50  ;;  %v557_v62 = vmul.f32 %v4946_v47, %v530_v50  ;;  %v884_v59 = vadd.f32 %v883_v9, %v880_v39  ;;  %v534_v5 = vadd.f32 %v533_v55, %v444_v2  ;;  %s3654_s7 = sld [smem:[#allocation2 + $0x10f]] }
  0xb6   :  { %v4948_v13 = vstv %s4944_s27  ;;  %v4949_v41 = vmax.f32 %v3446_v11, 0.0  ;;  %v538_v6 = vadd.f32 %v537_v22, %v448_v16  ;;  %v542_v36 = vadd.f32 %v541_v52, %v452_v8  ;;  %s3627_s27 = sld [smem:[#allocation2 + $0x7c]] }
  0xb7   :  { %v561_v35 = vmul.f32 %v4948_v13, %v530_v50  ;;  %v963_v51 = vadd.f32 %v962_v25, %v959_v28  ;;  %v966_v11 = vmul.f32 %v3073_v14, %v965_v58  ;;  %v546_v30 = vadd.f32 %v545_v31, %v456_v45 }
  0xb8   :  { %v3586_v7 = vmul.f32 %v2543_v17, %v4949_v41  ;;  %v550_v49 = vadd.f32 %v549_v27, %v460_v26  ;;  %v4956_v50 = vstv %s4947_s8  ;;  %v969_v42 = vstv %s3557_s16  ;;  %s3621_s16 = sld [smem:[#allocation2 + $0xc0]] }
  0xb9   :  { %v624_v20 = vmul.f32 %v4956_v50, %v621_v60  ;;  %v554_v23 = vadd.f32 %v553_v38, %v464_v18  ;;  %v558_v15 = vadd.f32 %v557_v62, %v468_v57  ;;  %v4959_v0 = vstv %s4950_s12  ;;  %s4967_s8 = sld [smem:[#allocation29_spill]]  ;;  %s3634_s12 = sld [smem:[#allocation2 + $0xdf]] }
  0xba   :  { %v628_v2 = vmul.f32 %v4959_v0, %v621_v60  ;;  %v887_v16 = vadd.f32 %v886_v54, %v884_v59  ;;  %v562_v8 = vadd.f32 %v561_v35, %v472_v19  ;;  %v4960_v34 = vstv %s4951_s20  ;;  %s3647_s20 = sld [smem:[#allocation2 + $0xef]] }
  0xbb   :  { %v632_v17 = vmul.f32 %v4960_v34, %v621_v60  ;;  %v4961_v39 = vstv %s4952_s28  ;;  %vm936_vm3 = vcmp.eq.f32.partialorder %v3596_v61, 4.0  ;;  %v4962_v45 = vstv %s4954_s2  ;;  %s3652_s28 = sld [smem:[#allocation2 + $0xff]]  ;;  %4973 = sst [smem:[#allocation8_spill]] %s3654_s7 }
  0xbc   :  { %v636_v9 = vmul.f32 %v4961_v39, %v621_v60  ;;  %v640_v26 = vmul.f32 %v4962_v45, %v621_v60  ;;  %v4963_v55 = vstv %s4955_s14  ;;  %v967_v57 = vadd.f32 %v966_v11, %v963_v51  ;;  %v2547_v52 = vpop.eup %2546  ;;  %s3671_s2 = sld [smem:[#allocation2 + $0x12f]] }
  0xbd   :  { %v644_v18 = vmul.f32 %v4963_v55, %v621_v60  ;;  %v970_v22 = vmul.f32 %v3101_v32, %v969_v42  ;;  %v625_v28 = vadd.f32 %v624_v20, %v534_v5  ;;  %v4964_v25 = vstv %s4957_s17  ;;  %s3677_s14 = sld [smem:[#allocation2 + $0x13f]]  ;;  %s3739_s17 = sld [smem:[#allocation2 + $0x110]] }
  0xbe   :  { %v648_v31 = vmul.f32 %v4964_v25, %v621_v60  ;;  %v4965_v27 = vstv %s4958_s11  ;;  %v973_v19 = vstv %s3576_s19  ;;  %v629_v1 = vadd.f32 %v628_v2, %v538_v6  ;;  %s3629_s19 = sld [smem:[#allocation2 + $0xcf]]  ;;  %s3741_s11 = sld [smem:[#allocation2 + $0x120]] }
  0xbf   :  { %v652_v58 = vmul.f32 %v4965_v27, %v621_v60  ;;  %v888_v38 = vsub.f32 0.0, %v887_v16  ;;  %vm935_vm4 = vcmp.eq.f32.partialorder %v3596_v61, 3.0  ;;  %v937_v47 = vsel %vm936_vm3, %v2884_v33, 0.0 }
  0xc0   :  { %v633_v62 = vadd.f32 %v632_v17, %v542_v36  ;;  %v637_v59 = vadd.f32 %v636_v9, %v546_v30  ;;  %v1037_v13 = vstv %s3589_s10  ;;  %v1040_v35 = vstv %s3591_s0  ;;  %s4968_s10 = sld [smem:[#allocation30_spill]]  ;;  %s3650_s0 = sld [smem:[#allocation2 + $0x7d]] }
  0xc1   :  { %v641_v5 = vadd.f32 %v640_v26, %v550_v49  ;;  %v800_v60 = vadd.f32 1.0, %v2547_v52  ;;  %v971_v41 = vadd.f32 %v970_v22, %v967_v57  ;;  %v974_v54 = vmul.f32 %v3131_v3, %v973_v19  ;;  %4972 = sst [smem:[#allocation7_spill]] %s3652_s28  ;;  %v3696_v19 = vld [vmem:[%s4953_s23 + $0x40] sm:$0xff] }
  0xc2   :  { %v645_v6 = vadd.f32 %v644_v18, %v554_v23  ;;  %v649_v51 = vadd.f32 %v648_v31, %v558_v15  ;;  %vm934_vm5 = vcmp.eq.f32.partialorder %v3596_v61, 2.0  ;;  %v938_v36 = vsel %vm935_vm4, %v2898_v37, %v937_v47 }
  0xc3   :  { %v653_v11 = vadd.f32 %v652_v58, %v562_v8  ;;  %v889_v30 = vmul.f32 1.442695, %v888_v38  ;;  %v1038_v49 = vmul.f32 %v2958_v12, %v1037_v13  ;;  %v1041_v50 = vmul.f32 %v2964_v21, %v1040_v35 }
  0xc4   :  { %v4969_v20 = vstv %s4966_s13  ;;  %v4970_v23 = vstv %s4967_s8  ;;  %v4971_v0 = vstv %s3382_s15  ;;  %v1044_v16 = vstv %s3609_s18  ;;  %s3669_s15 = sld [smem:[#allocation2 + $0x11f]]  ;;  %s3704_s18 = sld [smem:[#allocation2 + $0xf0]] }
  0xc5   :  { %v715_v42 = vmul.f32 %v4969_v20, %v3586_v7  ;;  %v719_v15 = vmul.f32 %v4970_v23, %v3586_v7  ;;  %v723_v2 = vmul.f32 %v4971_v0, %v3586_v7  ;;  %2548 = vrcp.f32 %v800_v60  ;;  %s3724_s8 = sld [smem:[#allocation2 + $0x81]] }
  0xc6   :  { %vm933_vm6 = vcmp.eq.f32.partialorder %v3596_v61, 1.0  ;;  %v939_v8 = vsel %vm934_vm5, %v2904_v43, %v938_v36  ;;  %v975_v34 = vadd.f32 %v974_v54, %v971_v41  ;;  %v4975_v17 = vstv %s3392_s6  ;;  %s3680_s6 = sld [smem:[#allocation2 + $0x7e]]  ;;  %s3837_s13 = sld [smem:[#allocation2 + $0x101]] }
  0xc7   :  { %v727_v39 = vmul.f32 %v4975_v17, %v3586_v7  ;;  %v4976_v9 = vstv %s4968_s10  ;;  %v4977_v26 = vstv %s3403_s1  ;;  %v977_v18 = vstv %s3621_s16  ;;  %s3691_s1 = sld [smem:[#allocation2 + $0xe0]]  ;;  %s3726_s10 = sld [smem:[#allocation2 + $0x82]] }
  0xc8   :  { %v731_v45 = vmul.f32 %v4976_v9, %v3586_v7  ;;  %v735_v55 = vmul.f32 %v4977_v26, %v3586_v7  ;;  %v4979_v57 = vstv %s3407_s4  ;;  %2550 = vpow2.f32 %v889_v30  ;;  %s3689_s4 = sld [smem:[#allocation2 + $0xd0]] }
  0xc9   :  { %v739_v22 = vmul.f32 %v4979_v57, %v3586_v7  ;;  %v1042_v52 = vadd.f32 %v1041_v50, %v1038_v49  ;;  %v1045_v25 = vmul.f32 %v2987_v29, %v1044_v16  ;;  %v4980_v31 = vstv %s4974_s21  ;;  %s3714_s16 = sld [smem:[#allocation2 + $0x100]]  ;;  %s3734_s21 = sld [smem:[#allocation2 + $0x7f]] }
  0xca   :  { %4978 = sst [smem:[#allocation5_spill]] %s3669_s15  ;;  %v743_v27 = vmul.f32 %v4980_v31, %v3586_v7  ;;  %vm932_vm7 = vcmp.eq.f32.partialorder %v3596_v61, 0.0  ;;  %v940_v58 = vsel %vm933_vm6, %v2910_v53, %v939_v8  ;;  %v1048_v38 = vstv %s3627_s27  ;;  %s3839_s27 = sld [smem:[#allocation2 + $0x111]] }
  0xcb   :  { %v3699_v47 = vadd.f32 %v715_v42, %v625_v28  ;;  %v3701_v13 = vadd.f32 %v719_v15, %v629_v1  ;;  %v896_v7 = vstv %s3629_s19  ;;  %v978_v35 = vadd.f32 %v977_v18, %v975_v34  ;;  %v2226_v28 = vld [vmem:[%s4902_s25 + $0x38] sm:$0xff]  ;;  %v3756_v34 = vld [vmem:[%s4953_s23 + $0x48] sm:$0xff]  ;;  %s3943_s19 = sld [smem:[#allocation2 + $0x8e]] }
  0xcc   :  { %v3706_v60 = vadd.f32 %v723_v2, %v633_v62  ;;  %v3708_v41 = vadd.f32 %v727_v39, %v637_v59  ;;  %v3710_v54 = vadd.f32 %v731_v45, %v641_v5  ;;  %v3712_v36 = vadd.f32 %v735_v55, %v645_v6 }
  0xcd   :  { %v941_v1 = vsel %vm932_vm7, %v2913_v56, %v940_v58  ;;  %vm1027_vm8 = vcmp.eq.f32.partialorder %v3696_v19, 4.0  ;;  %v1046_v62 = vadd.f32 %v1045_v25, %v1042_v52  ;;  %v1049_v59 = vmul.f32 %v3017_v40, %v1048_v38 }
  0xce   :  { %v3728_v5 = vadd.f32 %v739_v22, %v649_v51  ;;  %v3730_v6 = vadd.f32 %v743_v27, %v653_v11  ;;  %v853_v30 = vmax.f32 %v3562_v48, 0.0  ;;  %v1052_v49 = vstv %s3650_s0  ;;  %s3749_s0 = sld [smem:[#allocation2 + $0x130]] }
  0xcf   :  { %v900_v61 = vstv %s3634_s12  ;;  %v904_v50 = vstv %s3647_s20  ;;  %v908_v20 = vstv %s3652_s28  ;;  %v979_v42 = vsub.f32 0.0, %v978_v35  ;;  %v2549_v15 = vpop.eup %2548  ;;  %s3766_s28 = sld [smem:[#allocation2 + $0x80]]  ;;  %s3945_s12 = sld [smem:[#allocation2 + $0x8f]] }
  0xd0   :  { %v912_v51 = vstv %s3654_s7  ;;  %v942_v11 = vmul.f32 %v2226_v28, %v941_v1  ;;  %vm1026_vm9 = vcmp.eq.f32.partialorder %v3696_v19, 3.0  ;;  %v1028_v23 = vsel %vm1027_vm8, %v2884_v33, 0.0  ;;  %s3758_s7 = sld [smem:[#allocation2 + $0x83]]  ;;  %s3969_s20 = sld [smem:[#allocation2 + $0x112]] }
  0xd1   :  { %v916_v0 = vstv %s3669_s15  ;;  %v1050_v2 = vadd.f32 %v1049_v59, %v1046_v62  ;;  %v1053_v16 = vmul.f32 %v3047_v63, %v1052_v49  ;;  %v1056_v8 = vstv %s3680_s6  ;;  %s3764_s15 = sld [smem:[#allocation2 + $0x140]]  ;;  %s3780_s6 = sld [smem:[#allocation2 + $0x84]] }
  0xd2   :  { %v920_v17 = vstv %s3671_s2  ;;  %v924_v39 = vstv %s3677_s14  ;;  %v987_v9 = vstv %s3689_s4  ;;  %v991_v45 = vstv %s3691_s1  ;;  %v2551_v26 = vpop.eup %2550  ;;  %s3984_s2 = sld [smem:[#allocation2 + $0x132]]  ;;  %s4000_s14 = sld [smem:[#allocation2 + $0x91]] }
  0xd3   :  { %v980_v55 = vmul.f32 1.442695, %v979_v42  ;;  %v995_v18 = vstv %s3704_s18  ;;  %vm1025_vm10 = vcmp.eq.f32.partialorder %v3696_v19, 2.0  ;;  %v1029_v57 = vsel %vm1026_vm9, %v2898_v37, %v1028_v23  ;;  %s4063_s4 = sld [smem:[#allocation2 + $0x94]]  ;;  %s4090_s1 = sld [smem:[#allocation2 + $0x9b]] }
  0xd4   :  { %v803_v22 = vmul.f32 %v2549_v15, %v762_v46  ;;  %2552 = vtanh.f32 %v942_v11  ;;  %v999_v52 = vstv %s3714_s16  ;;  %v1057_v25 = vmul.f32 %v3073_v14, %v1056_v8  ;;  %s4095_s18 = sld [smem:[#allocation2 + $0xe3]]  ;;  %s4098_s16 = sld [smem:[#allocation2 + $0x95]] }
  0xd5   :  { %v1054_v31 = vadd.f32 %v1053_v16, %v1050_v2  ;;  %vm1118_vm11 = vcmp.eq.f32.partialorder %v3756_v34, 4.0  ;;  %v1128_v27 = vstv %s3724_s8  ;;  %v1131_v58 = vstv %s3726_s10  ;;  %s3795_s8 = sld [smem:[#allocation2 + $0x85]]  ;;  %s3800_s10 = sld [smem:[#allocation2 + $0xc1]] }
  0xd6   :  { %v891_v38 = vadd.f32 1.0, %v2551_v26  ;;  %vm1024_vm12 = vcmp.eq.f32.partialorder %v3696_v19, 1.0  ;;  %v1030_v35 = vsel %vm1025_vm10, %v2904_v43, %v1029_v57  ;;  %v1060_v10 = vstv %s3734_s21  ;;  %s3956_s21 = sld [smem:[#allocation2 + $0xe2]] }
  0xd7   :  { %4981 = sst [smem:[#allocation9_spill]] %s3764_s15  ;;  %2554 = vpow2.f32 %v980_v55  ;;  %v1003_v46 = vstv %s3739_s17  ;;  %v1007_v28 = vstv %s3741_s11  ;;  %vm1023_vm13 = vcmp.eq.f32.partialorder %v3696_v19, 0.0  ;;  %s4112_s17 = sld [smem:[#allocation2 + $0xf3]] }
  0xd8   :  { %vm1117_vm14 = vcmp.eq.f32.partialorder %v3756_v34, 3.0  ;;  %v1119_v1 = vsel %vm1118_vm11, %v2884_v33, 0.0  ;;  %v1129_v62 = vmul.f32 %v2958_v12, %v1128_v27  ;;  %v1132_v59 = vmul.f32 %v2964_v21, %v1131_v58  ;;  %v2245_v58 = vld [vmem:[%s4902_s25 + $0x40] sm:$0xff]  ;;  %s3920_s15 = sld [smem:[#allocation2 + $0x8c]]  ;;  %4994 = sst [smem:[#allocation13_spill]] %s3984_s2 }
  0xd9   :  { %v1031_v49 = vsel %vm1024_vm12, %v2910_v53, %v1030_v35  ;;  %v1058_v42 = vadd.f32 %v1057_v25, %v1054_v31  ;;  %v1061_v11 = vmul.f32 %v3101_v32, %v1060_v10  ;;  %v1135_v23 = vstv %s3758_s7  ;;  %s3898_s7 = sld [smem:[#allocation2 + $0x8b]]  ;;  %s4175_s2 = sld [smem:[#allocation2 + $0xa4]] }
  0xda   :  { %2556 = vrcp.f32 %v891_v38  ;;  %v1064_v16 = vstv %s3766_s28  ;;  %v4982_v8 = vstv %s3417_s22  ;;  %v4983_v55 = vstv %s3419_s24  ;;  %s3818_s22 = sld [smem:[#allocation2 + $0xd1]]  ;;  %s3829_s28 = sld [smem:[#allocation2 + $0x86]] }
  0xdb   :  { %v806_v26 = vmul.f32 %v4982_v8, %v803_v22  ;;  %v810_v57 = vmul.f32 %v4983_v55, %v803_v22  ;;  %vm1116_vm15 = vcmp.eq.f32.partialorder %v3756_v34, 2.0  ;;  %v1120_v25 = vsel %vm1117_vm14, %v2898_v37, %v1119_v1  ;;  %s3820_s24 = sld [smem:[#allocation2 + $0xe1]]  ;;  %s4114_s11 = sld [smem:[#allocation2 + $0x103]] }
  0xdc   :  { %v4984_v31 = vstv %s3425_s26  ;;  %v1032_v38 = vsel %vm1023_vm13, %v2913_v56, %v1031_v49  ;;  %v1133_v35 = vadd.f32 %v1132_v59, %v1129_v62  ;;  %v1136_v10 = vmul.f32 %v2987_v29, %v1135_v23  ;;  %s3826_s26 = sld [smem:[#allocation2 + $0xf1]] }
  0xdd   :  { %v814_v27 = vmul.f32 %v4984_v31, %v803_v22  ;;  %v4985_v1 = vstv %s3431_s5  ;;  %v1062_v55 = vadd.f32 %v1061_v11, %v1058_v42  ;;  %v1065_v31 = vmul.f32 %v3131_v3, %v1064_v16  ;;  %s3852_s5 = sld [smem:[#allocation2 + $0x89]] }
  0xde   :  { %v818_v8 = vmul.f32 %v4985_v1, %v803_v22  ;;  %v1139_v2 = vstv %s3780_s6  ;;  %v3831_v19 = vpop.eup %2552  ;;  %v4986_v49 = vstv %s3433_s29  ;;  %v826_v62 = vmul.f32 %v825_v4, %v803_v22  ;;  %s3854_s29 = sld [smem:[#allocation2 + $0x8a]]  ;;  %s3884_s6 = sld [smem:[#allocation2 + $0x141]] }
  0xdf   :  { %v822_v15 = vmul.f32 %v4986_v49, %v803_v22  ;;  %vm1115_vm0 = vcmp.eq.f32.partialorder %v3756_v34, 1.0  ;;  %v1121_v59 = vsel %vm1116_vm15, %v2904_v43, %v1120_v25  ;;  %v3846_v42 = vadd.f32 %v806_v26, %v3699_v47 }
  0xe0   :  { %v830_v11 = vmul.f32 %v829_v44, %v803_v22  ;;  %v834_v23 = vmul.f32 %v833_v24, %v803_v22  ;;  %v1033_v16 = vmul.f32 %v2245_v58, %v1032_v38  ;;  %v3857_v4 = vadd.f32 %v810_v57, %v3701_v13 }
  0xe1   :  { %v3860_v1 = vadd.f32 %v814_v27, %v3706_v60  ;;  %v1137_v25 = vadd.f32 %v1136_v10, %v1133_v35  ;;  %v1140_v47 = vmul.f32 %v3017_v40, %v1139_v2  ;;  %v2555_v44 = vpop.eup %2554  ;;  %v1066_v26 = vadd.f32 %v1065_v31, %v1062_v55 }
  0xe2   :  { %vm1114_vm1 = vcmp.eq.f32.partialorder %v3756_v34, 0.0  ;;  %v1122_v24 = vsel %vm1115_vm0, %v2910_v53, %v1121_v59  ;;  %v1143_v13 = vstv %s3795_s8  ;;  %v3873_v22 = vadd.f32 %v818_v8, %v3708_v41  ;;  %s3910_s8 = sld [smem:[#allocation2 + $0x88]] }
  0xe3   :  { %v3876_v60 = vadd.f32 %v822_v15, %v3710_v54  ;;  %v3879_v2 = vadd.f32 %v826_v62, %v3712_v36  ;;  %v1068_v57 = vstv %s3800_s10  ;;  %v3887_v27 = vadd.f32 %v830_v11, %v3728_v5  ;;  %v3896_v36 = vld [vmem:[%s4953_s23 + $0x50] sm:$0xff]  ;;  %v2264_v5 = vld [vmem:[%s4902_s25 + $0x48] sm:$0xff]  ;;  %s3939_s10 = sld [smem:[#allocation2 + $0x8d]] }
  0xe4   :  { %4988 = sst [smem:[#allocation6_spill]] %s3884_s6  ;;  %v3890_v41 = vadd.f32 %v834_v23, %v3730_v6  ;;  %v944_v54 = vmax.f32 %v3831_v19, 0.0  ;;  %2558 = vtanh.f32 %v1033_v16  ;;  %v2557_v15 = vpop.eup %2556  ;;  %v982_v58 = vadd.f32 1.0, %v2555_v44 }
  0xe5   :  { %v1123_v6 = vsel %vm1114_vm1, %v2913_v56, %v1122_v24  ;;  %v1141_v38 = vadd.f32 %v1140_v47, %v1137_v25  ;;  %v1144_v35 = vmul.f32 %v3047_v63, %v1143_v13  ;;  %v1069_v10 = vadd.f32 %v1068_v57, %v1066_v26 }
  0xe6   :  { %v1078_v8 = vstv %s3818_s22  ;;  %v1082_v55 = vstv %s3820_s24  ;;  %v1147_v31 = vstv %s3829_s28  ;;  %v1086_v49 = vstv %s3826_s26  ;;  %s3986_s28 = sld [smem:[#allocation2 + $0x142]]  ;;  %s4269_s24 = sld [smem:[#allocation2 + $0xa8]] }
  0xe7   :  { %v1090_v62 = vstv %s3837_s13  ;;  %v1094_v59 = vstv %s3839_s27  ;;  %vm1209_vm2 = vcmp.eq.f32.partialorder %v3896_v36, 4.0  ;;  %v894_v34 = vmul.f32 %v2557_v15, %v853_v30  ;;  %s4274_s26 = sld [smem:[#allocation2 + $0xac]]  ;;  %s4279_s13 = sld [smem:[#allocation2 + $0xc5]] }
  0xe8   :  { %v1124_v11 = vmul.f32 %v2264_v5, %v1123_v6  ;;  %v1219_v23 = vstv %s3852_s5  ;;  %v1222_v16 = vstv %s3854_s29  ;;  %2560 = vrcp.f32 %v982_v58  ;;  %s3936_s5 = sld [smem:[#allocation2 + $0xc2]]  ;;  %s4019_s29 = sld [smem:[#allocation2 + $0x90]] }
  0xe9   :  { %v1145_v25 = vadd.f32 %v1144_v35, %v1141_v38  ;;  %v1148_v47 = vmul.f32 %v3073_v14, %v1147_v31  ;;  %v1151_v44 = vstv %s3863_s30  ;;  %v1070_v26 = vsub.f32 0.0, %v1069_v10  ;;  %s4041_s30 = sld [smem:[#allocation2 + $0x93]]  ;;  %s4288_s27 = sld [smem:[#allocation2 + $0xad]] }
  0xea   :  { %v1098_v24 = vstv %s3865_s9  ;;  %vm1208_vm3 = vcmp.eq.f32.partialorder %v3896_v36, 3.0  ;;  %v1210_v48 = vsel %vm1209_vm2, %v2884_v33, 0.0  ;;  %v1102_v30 = vstv %s3882_s3  ;;  %s3964_s3 = sld [smem:[#allocation2 + $0x102]]  ;;  %s4293_s9 = sld [smem:[#allocation2 + $0xf4]] }
  0xeb   :  { %v1106_v13 = vstv %s3884_s6  ;;  %v1220_v57 = vmul.f32 %v2958_v12, %v1219_v23  ;;  %v1223_v15 = vmul.f32 %v2964_v21, %v1222_v16  ;;  %v897_v58 = vmul.f32 %v896_v7, %v894_v34  ;;  %s3962_s6 = sld [smem:[#allocation2 + $0xf2]]  ;;  %s4382_s22 = sld [smem:[#allocation2 + $0x115]] }
  0xec   :  { %v901_v5 = vmul.f32 %v900_v61, %v894_v34  ;;  %v1152_v6 = vmul.f32 %v3101_v32, %v1151_v44  ;;  %v1226_v38 = vstv %s3898_s7  ;;  %2562 = vtanh.f32 %v1124_v11  ;;  %s3954_s7 = sld [smem:[#allocation2 + $0xd2]]  ;;  %4995 = sst [smem:[#allocation14_spill]] %s3986_s28 }
  0xed   :  { %v1149_v35 = vadd.f32 %v1148_v47, %v1145_v25  ;;  %vm1207_vm4 = vcmp.eq.f32.partialorder %v3896_v36, 2.0  ;;  %v1211_v10 = vsel %vm1208_vm3, %v2898_v37, %v1210_v48  ;;  %v905_v61 = vmul.f32 %v904_v50, %v894_v34  ;;  %s4163_s28 = sld [smem:[#allocation2 + $0x9d]] }
  0xee   :  { %v3947_v7 = vpop.eup %2558  ;;  %v909_v31 = vmul.f32 %v908_v20, %v894_v34  ;;  %v1071_v23 = vmul.f32 1.442695, %v1070_v26  ;;  %v1155_v16 = vstv %s3910_s8  ;;  %v913_v11 = vmul.f32 %v912_v51, %v894_v34  ;;  %s3971_s8 = sld [smem:[#allocation2 + $0x122]] }
  0xef   :  { %v917_v25 = vmul.f32 %v916_v0, %v894_v34  ;;  %v1224_v47 = vadd.f32 %v1223_v15, %v1220_v57  ;;  %v1227_v50 = vmul.f32 %v2987_v29, %v1226_v38  ;;  %v921_v20 = vmul.f32 %v920_v17, %v894_v34 }
  0xf0   :  { %vm1206_vm5 = vcmp.eq.f32.partialorder %v3896_v36, 1.0  ;;  %v1212_v51 = vsel %vm1207_vm4, %v2904_v43, %v1211_v10  ;;  %v1230_v0 = vstv %s3920_s15  ;;  %v3979_v44 = vadd.f32 %v897_v58, %v3846_v42  ;;  %s4002_s15 = sld [smem:[#allocation2 + $0x92]] }
  0xf1   :  { %v925_v26 = vmul.f32 %v924_v39, %v894_v34  ;;  %v1153_v48 = vadd.f32 %v1152_v6, %v1149_v35  ;;  %v1156_v57 = vmul.f32 %v3131_v3, %v1155_v16  ;;  %v3989_v17 = vadd.f32 %v901_v5, %v3857_v4 }
  0xf2   :  { %4992 = sst [smem:[#allocation11_spill]] %s3954_s7  ;;  %v3992_v15 = vadd.f32 %v905_v61, %v3860_v1  ;;  %v3995_v38 = vadd.f32 %v909_v31, %v3873_v22  ;;  %2564 = vpow2.f32 %v1071_v23  ;;  %v2561_v39 = vpop.eup %2560  ;;  %vm1205_vm6 = vcmp.eq.f32.partialorder %v3896_v36, 0.0 }
  0xf3   :  { %v1213_v42 = vsel %vm1206_vm5, %v2910_v53, %v1212_v51  ;;  %v1228_v34 = vadd.f32 %v1227_v50, %v1224_v47  ;;  %v1231_v58 = vmul.f32 %v3017_v40, %v1230_v0  ;;  %v4005_v4 = vadd.f32 %v913_v11, %v3876_v60 }
  0xf4   :  { %4993 = sst [smem:[#allocation12_spill]] %s3971_s8  ;;  %v4008_v1 = vadd.f32 %v917_v25, %v3879_v2  ;;  %v4011_v22 = vadd.f32 %v921_v20, %v3887_v27  ;;  %v1234_v5 = vstv %s3939_s10  ;;  %v4015_v6 = vadd.f32 %v925_v26, %v3890_v41  ;;  %v2283_v41 = vld [vmem:[%s4902_s25 + $0x50] sm:$0xff]  ;;  %v4039_v25 = vld [vmem:[%s4953_s23 + $0x58] sm:$0xff]  ;;  %s4128_s10 = sld [smem:[#allocation2 + $0x96]] }
  0xf5   :  { %v1035_v35 = vmax.f32 %v3947_v7, 0.0  ;;  %v1157_v10 = vadd.f32 %v1156_v57, %v1153_v48  ;;  %v1159_v61 = vstv %s3936_s5  ;;  %v985_v60 = vmul.f32 %v2561_v39, %v944_v54  ;;  %s4132_s5 = sld [smem:[#allocation2 + $0x9c]] }
  0xf6   :  { %v1169_v2 = vstv %s3954_s7  ;;  %v1173_v27 = vstv %s3956_s21  ;;  %v1214_v31 = vsel %vm1205_vm6, %v2913_v56, %v1213_v42  ;;  %v4031_v23 = vpop.eup %2562  ;;  %v1232_v16 = vadd.f32 %v1231_v58, %v1228_v34  ;;  %s4058_s7 = sld [smem:[#allocation2 + $0x9a]]  ;;  %s4200_s8 = sld [smem:[#allocation2 + $0xe4]] }
  0xf7   :  { %v1235_v19 = vmul.f32 %v3047_v63, %v1234_v5  ;;  %v1238_v11 = vstv %s3943_s19  ;;  %v1242_v54 = vstv %s3945_s12  ;;  %v1177_v47 = vstv %s3962_s6  ;;  %s4996_s19 = sld [smem:[#allocation9_spill]]  ;;  %s4056_s12 = sld [smem:[#allocation2 + $0x99]] }
  0xf8   :  { %v1181_v50 = vstv %s3964_s3  ;;  %v1185_v36 = vstv %s3969_s20  ;;  %v4047_v51 = vadd.f32 %v1159_v61, %v1157_v10  ;;  %v1215_v48 = vmul.f32 %v2283_v41, %v1214_v31  ;;  %s5011_s3 = sld [smem:[#allocation14_spill]]  ;;  %s4486_s20 = sld [smem:[#allocation2 + $0xc8]] }
  0xf9   :  { %v988_v57 = vmul.f32 %v987_v9, %v985_v60  ;;  %v1126_v39 = vmax.f32 %v4031_v23, 0.0  ;;  %v1239_v42 = vmul.f32 %v3073_v14, %v1238_v11  ;;  %v1243_v34 = vmul.f32 %v3101_v32, %v1242_v54  ;;  %s4557_s6 = sld [smem:[#allocation2 + $0xf6]] }
  0xfa   :  { %v1236_v58 = vadd.f32 %v1235_v19, %v1232_v16  ;;  %vm1300_vm7 = vcmp.eq.f32.partialorder %v4039_v25, 4.0  ;;  %v1310_v5 = vstv %s4000_s14  ;;  %v1313_v10 = vstv %s4002_s15  ;;  %s4080_s14 = sld [smem:[#allocation2 + $0xc3]]  ;;  %s4565_s21 = sld [smem:[#allocation2 + $0x116]] }
  0xfb   :  { %v992_v61 = vmul.f32 %v991_v45, %v985_v60  ;;  %v996_v41 = vmul.f32 %v995_v18, %v985_v60  ;;  %v1000_v31 = vmul.f32 %v999_v52, %v985_v60  ;;  %v1004_v11 = vmul.f32 %v1003_v46, %v985_v60  ;;  %s4082_s15 = sld [smem:[#allocation2 + $0xd3]] }
  0xfc   :  { %v2565_v9 = vpop.eup %2564  ;;  %v1008_v54 = vmul.f32 %v1007_v28, %v985_v60  ;;  %v4997_v26 = vstv %s3749_s0  ;;  %v1246_v20 = vstv %s4019_s29  ;;  %vm1299_vm8 = vcmp.eq.f32.partialorder %v4039_v25, 3.0  ;;  %s4119_s0 = sld [smem:[#allocation2 + $0x113]] }
  0xfd   :  { %v1012_v16 = vmul.f32 %v4997_v26, %v985_v60  ;;  %v4998_v19 = vstv %s4996_s19  ;;  %v1301_v45 = vsel %vm1300_vm7, %v2884_v33, 0.0  ;;  %v1311_v18 = vmul.f32 %v2958_v12, %v1310_v5  ;;  %s4121_s29 = sld [smem:[#allocation2 + $0x123]]  ;;  %s4138_s19 = sld [smem:[#allocation2 + $0xa2]] }
  0xfe   :  { %v1016_v0 = vmul.f32 %v4998_v19, %v985_v60  ;;  %v1314_v52 = vmul.f32 %v2964_v21, %v1313_v10  ;;  %v4093_v46 = vadd.f32 %v988_v57, %v3979_v44  ;;  %v1073_v28 = vadd.f32 1.0, %v2565_v9 }
  0xff   :  { %v1240_v60 = vadd.f32 %v1239_v42, %v1236_v58  ;;  %v1317_v26 = vstv %s4041_s30  ;;  %v4101_v19 = vadd.f32 %v992_v61, %v3989_v17  ;;  %v4104_v5 = vadd.f32 %v996_v41, %v3992_v15  ;;  %s4136_s30 = sld [smem:[#allocation2 + $0xa1]] }
 0x100   :  { %v4107_v10 = vadd.f32 %v1000_v31, %v3995_v38  ;;  %v4110_v44 = vadd.f32 %v1004_v11, %v4005_v4  ;;  %v4117_v57 = vadd.f32 %v1008_v54, %v4008_v1  ;;  %2566 = vtanh.f32 %v1215_v48 }
 0x101   :  { %4999 = sst [smem:[#allocation15_spill]] %s4082_s15  ;;  %vm1298_vm9 = vcmp.eq.f32.partialorder %v4039_v25, 2.0  ;;  %v1302_v17 = vsel %vm1299_vm8, %v2898_v37, %v1301_v45  ;;  %v1315_v15 = vadd.f32 %v1314_v52, %v1311_v18  ;;  %v1318_v38 = vmul.f32 %v2987_v29, %v1317_v26 }
 0x102   :  { %5000 = sst [smem:[#allocation16_spill]] %s4119_s0  ;;  %v1401_v4 = vstv %s4056_s12  ;;  %v1404_v1 = vstv %s4058_s7  ;;  %2568 = vrcp.f32 %v1073_v28  ;;  %v1244_v48 = vadd.f32 %v1243_v34, %v1240_v60  ;;  %s4190_s0 = sld [smem:[#allocation2 + $0x9e]] }
 0x103   :  { %5001 = sst [smem:[#allocation17_spill]] %s4121_s29  ;;  %v1247_v42 = vmul.f32 %v3131_v3, %v1246_v20  ;;  %v1321_v58 = vstv %s4063_s4  ;;  %v4141_v9 = vadd.f32 %v1012_v16, %v4011_v22  ;;  %v1161_v61 = vsub.f32 0.0, %v4047_v51  ;;  %s4144_s12 = sld [smem:[#allocation2 + $0x133]] }
 0x104   :  { %vm1297_vm10 = vcmp.eq.f32.partialorder %v4039_v25, 1.0  ;;  %v1303_v20 = vsel %vm1298_vm9, %v2904_v43, %v1302_v17  ;;  %v4151_v34 = vadd.f32 %v1016_v0, %v4015_v6  ;;  %v1250_v41 = vstv %s4080_s14  ;;  %s4156_s7 = sld [smem:[#allocation2 + $0xa3]]  ;;  %s4168_s14 = sld [smem:[#allocation2 + $0x97]] }
 0x105   :  { %v1402_v31 = vmul.f32 %v2958_v12, %v1401_v4  ;;  %v1405_v22 = vmul.f32 %v2964_v21, %v1404_v1  ;;  %v1260_v51 = vstv %s4082_s15  ;;  %s4159_s4 = sld [smem:[#allocation2 + $0x143]]  ;;  %v1319_v11 = vadd.f32 %v1318_v38, %v1315_v15  ;;  %s4170_s15 = sld [smem:[#allocation2 + $0x98]]  ;;  %v2302_v4 = vld [vmem:[%s4902_s25 + $0x58] sm:$0xff] }
 0x106   :  { %v1322_v54 = vmul.f32 %v3017_v40, %v1321_v58  ;;  %v1408_v6 = vstv %s4090_s1  ;;  %v1248_v0 = vadd.f32 %v1247_v42, %v1244_v48  ;;  %vm1296_vm11 = vcmp.eq.f32.partialorder %v4039_v25, 0.0  ;;  %s4179_s1 = sld [smem:[#allocation2 + $0xc4]] }
 0x107   :  { %v1304_v16 = vsel %vm1297_vm10, %v2910_v53, %v1303_v20  ;;  %v1325_v45 = vstv %s4098_s16  ;;  %v1162_v18 = vmul.f32 1.442695, %v1161_v61  ;;  %v1406_v15 = vadd.f32 %v1405_v22, %v1402_v31  ;;  %s4195_s29 = sld [smem:[#allocation2 + $0xd4]]  ;;  %s4260_s16 = sld [smem:[#allocation2 + $0xab]] }
 0x108   :  { %v1409_v38 = vmul.f32 %v2987_v29, %v1408_v6  ;;  %v1305_v1 = vsel %vm1296_vm11, %v2913_v56, %v1304_v16  ;;  %v1323_v48 = vadd.f32 %v1322_v54, %v1319_v11  ;;  %v1326_v42 = vmul.f32 %v3047_v63, %v1325_v45 }
 0x109   :  { %v1412_v58 = vstv %s4132_s5  ;;  %v1251_v20 = vadd.f32 %v1250_v41, %v1248_v0  ;;  %v1329_v31 = vstv %s4128_s10  ;;  %v1492_v22 = vstv %s4136_s30  ;;  %s4206_s10 = sld [smem:[#allocation2 + $0xa5]]  ;;  %s4211_s5 = sld [smem:[#allocation2 + $0x9f]] }
 0x10a   :  { %v4192_v61 = vpop.eup %2566  ;;  %v1495_v6 = vstv %s4138_s19  ;;  %2570 = vpow2.f32 %v1162_v18  ;;  %v1493_v11 = vmul.f32 %v2958_v12, %v1492_v22  ;;  %v1306_v45 = vmul.f32 %v2302_v4, %v1305_v1  ;;  %s4304_s30 = sld [smem:[#allocation2 + $0xae]]  ;;  %s4308_s19 = sld [smem:[#allocation2 + $0x124]] }
 0x10b   :  { %v1496_v54 = vmul.f32 %v2964_v21, %v1495_v6  ;;  %v1410_v41 = vadd.f32 %v1409_v38, %v1406_v15  ;;  %v1413_v0 = vmul.f32 %v3017_v40, %v1412_v58  ;;  %v1499_v17 = vstv %s4156_s7  ;;  %v4219_v38 = vld [vmem:[%s4953_s23 + $0x60] sm:$0xff]  ;;  %s4245_s7 = sld [smem:[#allocation2 + $0xaa]] }
 0x10c   :  { %v2569_v16 = vpop.eup %2568  ;;  %v1327_v18 = vadd.f32 %v1326_v42, %v1323_v48  ;;  %v1330_v25 = vmul.f32 %v3073_v14, %v1329_v31  ;;  %v1416_v60 = vstv %s4163_s28  ;;  %v1217_v22 = vmax.f32 %v4192_v61, 0.0  ;;  %s4225_s28 = sld [smem:[#allocation2 + $0xa6]] }
 0x10d   :  { %v1252_v6 = vsub.f32 0.0, %v1251_v20  ;;  %v1333_v4 = vstv %s4168_s14  ;;  %v1337_v15 = vstv %s4170_s15  ;;  %v1076_v1 = vmul.f32 %v2569_v16, %v1035_v35  ;;  %s4232_s15 = sld [smem:[#allocation2 + $0xa0]]  ;;  %s4351_s14 = sld [smem:[#allocation2 + $0xd5]] }
 0x10e   :  { %v1497_v48 = vadd.f32 %v1496_v54, %v1493_v11  ;;  %v1500_v42 = vmul.f32 %v2987_v29, %v1499_v17  ;;  %v1503_v58 = vstv %s4175_s2  ;;  %2572 = vtanh.f32 %v1306_v45  ;;  %s4237_s2 = sld [smem:[#allocation2 + $0xa7]] }
 0x10f   :  { %v1341_v20 = vstv %s4179_s1  ;;  %v1414_v31 = vadd.f32 %v1413_v0, %v1410_v41  ;;  %v1417_v26 = vmul.f32 %v3047_v63, %v1416_v60  ;;  %v1331_v28 = vadd.f32 %v1330_v25, %v1327_v18  ;;  %s4322_s1 = sld [smem:[#allocation2 + $0xaf]] }
 0x110   :  { %v1334_v52 = vmul.f32 %v3101_v32, %v1333_v4  ;;  %vm1391_vm12 = vcmp.eq.f32.partialorder %v4219_v38, 4.0  ;;  %v1420_v7 = vstv %s4190_s0  ;;  %v1253_v35 = vmul.f32 1.442695, %v1252_v6  ;;  %s4243_s0 = sld [smem:[#allocation2 + $0xa9]] }
 0x111   :  { %v1338_v17 = vmul.f32 %v3131_v3, %v1337_v15  ;;  %v1351_v11 = vstv %s4195_s29  ;;  %v1504_v54 = vmul.f32 %v3017_v40, %v1503_v58  ;;  %v1079_v60 = vmul.f32 %v1078_v8, %v1076_v1  ;;  %s4619_s29 = sld [smem:[#allocation2 + $0x127]] }
 0x112   :  { %vm1390_vm13 = vcmp.eq.f32.partialorder %v4219_v38, 3.0  ;;  %v1501_v16 = vadd.f32 %v1500_v42, %v1497_v48  ;;  %v1392_v45 = vsel %vm1391_vm12, %v2884_v33, 0.0  ;;  %v1418_v41 = vadd.f32 %v1417_v26, %v1414_v31 }
 0x113   :  { %v1421_v0 = vmul.f32 %v3073_v14, %v1420_v7  ;;  %v1507_v18 = vstv %s4206_s10  ;;  %v1083_v8 = vmul.f32 %v1082_v55, %v1076_v1  ;;  %v1087_v4 = vmul.f32 %v1086_v49, %v1076_v1  ;;  %s4295_s10 = sld [smem:[#allocation2 + $0x104]] }
 0x114   :  { %v2571_v6 = vpop.eup %2570  ;;  %v1335_v15 = vadd.f32 %v1334_v52, %v1331_v28  ;;  %v1424_v48 = vstv %s4211_s5  ;;  %v1091_v42 = vmul.f32 %v1090_v62, %v1076_v1  ;;  %v1095_v58 = vmul.f32 %v1094_v59, %v1076_v1  ;;  %s4300_s5 = sld [smem:[#allocation2 + $0x114]] }
 0x115   :  { %v1505_v25 = vadd.f32 %v1504_v54, %v1501_v16  ;;  %v1508_v26 = vmul.f32 %v3047_v63, %v1507_v18  ;;  %v1099_v31 = vmul.f32 %v1098_v24, %v1076_v1  ;;  %vm1389_vm14 = vcmp.eq.f32.partialorder %v4219_v38, 2.0 }
 0x116   :  { %v1393_v55 = vsel %vm1390_vm13, %v2898_v37, %v1392_v45  ;;  %v1511_v49 = vstv %s4225_s28  ;;  %v1103_v62 = vmul.f32 %v1102_v30, %v1076_v1  ;;  %v1164_v59 = vadd.f32 1.0, %v2571_v6  ;;  %s4318_s28 = sld [smem:[#allocation2 + $0x134]] }
 0x117   :  { %v1422_v52 = vadd.f32 %v1421_v0, %v1418_v41  ;;  %v1425_v28 = vmul.f32 %v3101_v32, %v1424_v48  ;;  %v1107_v24 = vmul.f32 %v1106_v13, %v1076_v1  ;;  %2574 = vpow2.f32 %v1253_v35 }
 0x118   :  { %v1339_v7 = vadd.f32 %v1338_v17, %v1335_v15  ;;  %v1428_v54 = vstv %s4232_s15  ;;  %v4281_v16 = vpop.eup %2572  ;;  %vm1388_vm15 = vcmp.eq.f32.partialorder %v4219_v38, 1.0  ;;  %v1394_v30 = vsel %vm1389_vm14, %v2904_v43, %v1393_v55  ;;  %s4333_s15 = sld [smem:[#allocation2 + $0x144]] }
 0x119   :  { %v1509_v45 = vadd.f32 %v1508_v26, %v1505_v25  ;;  %v1512_v41 = vmul.f32 %v3073_v14, %v1511_v49  ;;  %v4291_v13 = vadd.f32 %v1079_v60, %v4093_v46  ;;  %5004 = sst [smem:[#allocation18_spill]] %s4295_s10  ;;  %v1515_v1 = vstv %s4237_s2  ;;  %s4336_s2 = sld [smem:[#allocation2 + $0xc6]] }
 0x11a   :  { %v1583_v35 = vstv %s4243_s0  ;;  %v1586_v17 = vstv %s4245_s7  ;;  %2576 = vrcp.f32 %v1164_v59  ;;  %5005 = sst [smem:[#allocation19_spill]] %s4300_s5  ;;  %vm1387_vm0 = vcmp.eq.f32.partialorder %v4219_v38, 0.0  ;;  %s4345_s0 = sld [smem:[#allocation2 + $0xb0]] }
 0x11b   :  { %v1426_v25 = vadd.f32 %v1425_v28, %v1422_v52  ;;  %v1429_v0 = vmul.f32 %v3131_v3, %v1428_v54  ;;  %v1342_v46 = vadd.f32 %v1341_v20, %v1339_v7  ;;  %v1395_v60 = vsel %vm1388_vm15, %v2910_v53, %v1394_v30  ;;  %s4378_s7 = sld [smem:[#allocation2 + $0x105]] }
 0x11c   :  { %v1584_v18 = vmul.f32 %v2958_v12, %v1583_v35  ;;  %v1587_v6 = vmul.f32 %v2964_v21, %v1586_v17  ;;  %v4316_v15 = vadd.f32 %v1083_v8, %v4101_v19  ;;  %5006 = sst [smem:[#allocation20_spill]] %s4318_s28  ;;  %v1513_v48 = vadd.f32 %v1512_v41, %v1509_v45 }
 0x11d   :  { %v1516_v26 = vmul.f32 %v3101_v32, %v1515_v1  ;;  %v1590_v20 = vstv %s4260_s16  ;;  %v4325_v55 = vadd.f32 %v1087_v4, %v4104_v5  ;;  %v4328_v49 = vadd.f32 %v1091_v42, %v4107_v10  ;;  %v2321_v42 = vld [vmem:[%s4902_s25 + $0x60] sm:$0xff]  ;;  %s4357_s16 = sld [smem:[#allocation2 + $0xe5]] }
 0x11e   :  { %v4331_v59 = vadd.f32 %v1095_v58, %v4110_v44  ;;  %v1519_v19 = vstv %s4269_s24  ;;  %v4339_v8 = vadd.f32 %v1099_v31, %v4117_v57  ;;  %v1396_v5 = vsel %vm1387_vm0, %v2913_v56, %v1395_v60  ;;  %s4366_s24 = sld [smem:[#allocation2 + $0xf5]] }
 0x11f   :  { %v1430_v4 = vadd.f32 %v1429_v0, %v1426_v25  ;;  %v1594_v10 = vstv %s4274_s26  ;;  %v1343_v44 = vsub.f32 0.0, %v1342_v46  ;;  %v1432_v58 = vstv %s4279_s13  ;;  %s4369_s26 = sld [smem:[#allocation2 + $0xb1]]  ;;  %s4373_s13 = sld [smem:[#allocation2 + $0xb2]] }
 0x120   :  { %v1588_v57 = vadd.f32 %v1587_v6, %v1584_v18  ;;  %v1591_v31 = vmul.f32 %v2987_v29, %v1590_v20  ;;  %v4355_v38 = vadd.f32 %v1103_v62, %v4141_v9  ;;  %v1517_v52 = vadd.f32 %v1516_v26, %v1513_v48  ;;  %v4391_v20 = vld [vmem:[%s4953_s23 + $0x68] sm:$0xff] }
 0x121   :  { %v1520_v28 = vmul.f32 %v3131_v3, %v1519_v19  ;;  %v1598_v7 = vstv %s4288_s27  ;;  %v2575_v54 = vpop.eup %2574  ;;  %v4362_v30 = vadd.f32 %v1107_v24, %v4151_v34  ;;  %v1359_v45 = vstv %s4293_s9  ;;  %s4375_s27 = sld [smem:[#allocation2 + $0xb3]]  ;;  %s4628_s9 = sld [smem:[#allocation2 + $0x147]] }
 0x122   :  { %v1363_v41 = vstv %s4295_s10  ;;  %v1595_v1 = vmul.f32 %v3017_v40, %v1594_v10  ;;  %v1367_v9 = vstv %s4300_s5  ;;  %v1397_v62 = vmul.f32 %v2321_v42, %v1396_v5  ;;  %s4408_s10 = sld [smem:[#allocation2 + $0xb5]]  ;;  %s5009_s5 = sld [smem:[#allocation13_spill]] }
 0x123   :  { %v1433_v35 = vadd.f32 %v1432_v58, %v1430_v4  ;;  %v1602_v17 = vstv %s4304_s30  ;;  %v1344_v34 = vmul.f32 1.442695, %v1343_v44  ;;  %v1371_v24 = vstv %s4308_s19  ;;  %s4384_s30 = sld [smem:[#allocation2 + $0x125]]  ;;  %s4635_s19 = sld [smem:[#allocation2 + $0xd8]] }
 0x124   :  { %v1592_v25 = vadd.f32 %v1591_v31, %v1588_v57  ;;  %v1599_v0 = vmul.f32 %v3047_v63, %v1598_v7  ;;  %v2577_v46 = vpop.eup %2576  ;;  %v1255_v60 = vadd.f32 1.0, %v2575_v54  ;;  %v1375_v18 = vstv %s4318_s28  ;;  %s4397_s28 = sld [smem:[#allocation2 + $0xc7]] }
 0x125   :  { %v1521_v6 = vadd.f32 %v1520_v28, %v1517_v52  ;;  %v1606_v48 = vstv %s4322_s1  ;;  %v1379_v26 = vstv %s4333_s15  ;;  %v1523_v19 = vstv %s4336_s2  ;;  %s4399_s1 = sld [smem:[#allocation2 + $0xb4]]  ;;  %s4416_s2 = sld [smem:[#allocation2 + $0xb6]] }
 0x126   :  { %v1596_v5 = vadd.f32 %v1595_v1, %v1592_v25  ;;  %v1603_v4 = vmul.f32 %v3073_v14, %v1602_v17  ;;  %v1308_v10 = vmax.f32 %v4281_v16, 0.0  ;;  %2578 = vtanh.f32 %v1397_v62  ;;  %s4645_s15 = sld [smem:[#allocation2 + $0xe8]] }
 0x127   :  { %v1434_v44 = vsub.f32 0.0, %v1433_v35  ;;  %v1610_v42 = vstv %s4345_s0  ;;  %2580 = vpow2.f32 %v1344_v34  ;;  %v1442_v58 = vstv %s4351_s14  ;;  %s5008_s0 = sld [smem:[#allocation12_spill]]  ;;  %s4656_s14 = sld [smem:[#allocation2 + $0x108]] }
 0x128   :  { %v1600_v57 = vadd.f32 %v1599_v0, %v1596_v5  ;;  %v1607_v31 = vmul.f32 %v3101_v32, %v1606_v48  ;;  %v4405_v52 = vmul.f32 %v2577_v46, %v1126_v39  ;;  %2582 = vrcp.f32 %v1255_v60 }
 0x129   :  { %v1446_v28 = vstv %s4357_s16  ;;  %v1524_v7 = vadd.f32 %v1523_v19, %v1521_v6  ;;  %v1450_v54 = vstv %s4366_s24  ;;  %vm1482_vm1 = vcmp.eq.f32.partialorder %v4391_v20, 4.0  ;;  %v4427_v19 = vld [vmem:[%s4953_s23 + $0x70] sm:$0xff]  ;;  %s4658_s16 = sld [smem:[#allocation2 + $0x118]]  ;;  %s4666_s24 = sld [smem:[#allocation2 + $0x149]] }
 0x12a   :  { %v1604_v1 = vadd.f32 %v1603_v4, %v1600_v57  ;;  %v1611_v62 = vmul.f32 %v3131_v3, %v1610_v42  ;;  %v1435_v35 = vmul.f32 1.442695, %v1434_v44  ;;  %v1674_v17 = vstv %s4369_s26  ;;  %s5015_s26 = sld [smem:[#allocation16_spill]] }
 0x12b   :  { %v1677_v34 = vstv %s4373_s13  ;;  %v1681_v25 = vstv %s4375_s27  ;;  %v1454_v23 = vstv %s4378_s7  ;;  %v1675_v0 = vmul.f32 %v2958_v12, %v1674_v17  ;;  %s4429_s13 = sld [smem:[#allocation2 + $0xb7]]  ;;  %s4440_s27 = sld [smem:[#allocation2 + $0xb8]] }
 0x12c   :  { %v1608_v39 = vadd.f32 %v1607_v31, %v1604_v1  ;;  %v1678_v46 = vmul.f32 %v2964_v21, %v1677_v34  ;;  %vm1481_vm2 = vcmp.eq.f32.partialorder %v4391_v20, 3.0  ;;  %v1525_v48 = vsub.f32 0.0, %v1524_v7  ;;  %s4668_s7 = sld [smem:[#allocation2 + $0x128]] }
 0x12d   :  { %v1483_v12 = vsel %vm1482_vm1, %v2884_v33, 0.0  ;;  %v1682_v4 = vmul.f32 %v2987_v29, %v1681_v25  ;;  %v1170_v44 = vmul.f32 %v1169_v2, %v4405_v52  ;;  %2584 = vpow2.f32 %v1435_v35 }
 0x12e   :  { %v1612_v21 = vadd.f32 %v1611_v62, %v1608_v39  ;;  %v1679_v5 = vadd.f32 %v1678_v46, %v1675_v0  ;;  %v1614_v42 = vstv %s4397_s28  ;;  %v1685_v57 = vstv %s4399_s1  ;;  %s4517_s1 = sld [smem:[#allocation2 + $0x135]]  ;;  %s4592_s28 = sld [smem:[#allocation2 + $0xd7]] }
 0x12f   :  { %v1174_v31 = vmul.f32 %v1173_v27, %v4405_v52  ;;  %v1178_v7 = vmul.f32 %v1177_v47, %v4405_v52  ;;  %v4451_v1 = vmul.f32 %v1181_v50, %v4405_v52  ;;  %vm1573_vm3 = vcmp.eq.f32.partialorder %v4427_v19, 4.0 }
 0x130   :  { %v4454_v29 = vpop.eup %2578  ;;  %vm1480_vm4 = vcmp.eq.f32.partialorder %v4391_v20, 2.0  ;;  %v1484_v2 = vsel %vm1481_vm2, %v2898_v37, %v1483_v12  ;;  %v1526_v27 = vmul.f32 1.442695, %v1525_v48  ;;  %v1689_v62 = vstv %s4408_s10  ;;  %s4519_s10 = sld [smem:[#allocation2 + $0x145]] }
 0x131   :  { %v2581_v35 = vpop.eup %2580  ;;  %v1186_v47 = vmul.f32 %v1185_v36, %v4405_v52  ;;  %v1615_v50 = vadd.f32 %v1614_v42, %v1612_v21  ;;  %v1683_v17 = vadd.f32 %v1682_v4, %v1679_v5  ;;  %v1686_v34 = vmul.f32 %v3017_v40, %v1685_v57  ;;  %v4481_v36 = vld [vmem:[%s4953_s23 + $0x78] sm:$0xff]  ;;  %s4722_s23 = sld [smem:[#allocation2 + $0x153]] }
 0x132   :  { %v2583_v25 = vpop.eup %2582  ;;  %v5010_v39 = vstv %s5008_s0  ;;  %vm1572_vm5 = vcmp.eq.f32.partialorder %v4427_v19, 3.0  ;;  %v1574_v46 = vsel %vm1573_vm3, %v2884_v33, 0.0  ;;  %v1693_v48 = vstv %s4416_s2  ;;  %s4540_s0 = sld [smem:[#allocation2 + $0xe6]]  ;;  %s4726_s2 = sld [smem:[#allocation2 + $0x161]] }
 0x133   :  { %v1190_v0 = vmul.f32 %v5010_v39, %v4405_v52  ;;  %v5012_v12 = vstv %s5009_s5  ;;  %vm1479_vm6 = vcmp.eq.f32.partialorder %v4391_v20, 1.0  ;;  %v1485_v40 = vsel %vm1480_vm4, %v2904_v43, %v1484_v2  ;;  %s4609_s5 = sld [smem:[#allocation2 + $0x107]] }
 0x134   :  { %v1194_v6 = vmul.f32 %v5012_v12, %v4405_v52  ;;  %v1690_v21 = vmul.f32 %v3047_v63, %v1689_v62  ;;  %v1346_v5 = vadd.f32 1.0, %v2581_v35  ;;  %2586 = vpow2.f32 %v1526_v27 }
 0x135   :  { %vm1571_vm7 = vcmp.eq.f32.partialorder %v4427_v19, 2.0  ;;  %v1697_v4 = vstv %s4429_s13  ;;  %v1575_v42 = vsel %vm1572_vm5, %v2898_v37, %v1574_v46  ;;  %v1616_v57 = vsub.f32 0.0, %v1615_v50  ;;  %s4538_s13 = sld [smem:[#allocation2 + $0xd6]] }
 0x136   :  { %v1687_v39 = vadd.f32 %v1686_v34, %v1683_v17  ;;  %v1694_v2 = vmul.f32 %v3073_v14, %v1693_v48  ;;  %v5013_v12 = vstv %s5011_s3  ;;  %vm1478_vm8 = vcmp.eq.f32.partialorder %v4391_v20, 0.0  ;;  %s4611_s3 = sld [smem:[#allocation2 + $0x117]] }
 0x137   :  { %v1198_v60 = vmul.f32 %v5013_v12, %v4405_v52  ;;  %vm1664_vm9 = vcmp.eq.f32.partialorder %v4481_v36, 4.0  ;;  %v1701_v63 = vstv %s4440_s27  ;;  %v1486_v27 = vsel %vm1479_vm6, %v2910_v53, %v1485_v40  ;;  %v2585_v50 = vpop.eup %2584  ;;  %s5016_s27 = sld [smem:[#allocation17_spill]] }
 0x138   :  { %v1617_v62 = vmul.f32 1.442695, %v1616_v57  ;;  %v1691_v35 = vadd.f32 %v1690_v21, %v1687_v39  ;;  %v1698_v46 = vmul.f32 %v3101_v32, %v1697_v4  ;;  %v1171_v17 = vadd.f32 %v1170_v44, %v4291_v13  ;;  %v2340_v13 = vld [vmem:[%s4902_s25 + $0x68] sm:$0xff] }
 0x139   :  { %2588 = vrcp.f32 %v1346_v5  ;;  %vm1570_vm10 = vcmp.eq.f32.partialorder %v4427_v19, 1.0  ;;  %v1576_v14 = vsel %vm1571_vm7, %v2904_v43, %v1575_v42  ;;  %vm1663_vm11 = vcmp.eq.f32.partialorder %v4481_v36, 3.0 }
 0x13a   :  { %v1665_v52 = vsel %vm1664_vm9, %v2884_v33, 0.0  ;;  %v1695_v34 = vadd.f32 %v1694_v2, %v1691_v35  ;;  %v1702_v48 = vmul.f32 %v3131_v3, %v1701_v63  ;;  %v1175_v32 = vadd.f32 %v1174_v31, %v4316_v15 }
 0x13b   :  { %v1179_v40 = vadd.f32 %v1178_v7, %v4325_v55  ;;  %v1487_v44 = vsel %vm1478_vm8, %v2913_v56, %v1486_v27  ;;  %vm1569_vm12 = vcmp.eq.f32.partialorder %v4427_v19, 0.0  ;;  %v1437_v21 = vadd.f32 1.0, %v2585_v50 }
 0x13c   :  { %v1577_v33 = vsel %vm1570_vm10, %v2910_v53, %v1576_v14  ;;  %2590 = vpow2.f32 %v1617_v62  ;;  %v1699_v3 = vadd.f32 %v1698_v46, %v1695_v34  ;;  %v1258_v15 = vmul.f32 %v2583_v25, %v1217_v22 }
 0x13d   :  { %vm1662_vm13 = vcmp.eq.f32.partialorder %v4481_v36, 2.0  ;;  %v1666_v55 = vsel %vm1663_vm11, %v2898_v37, %v1665_v52  ;;  %v1705_v20 = vstv %s4486_s20  ;;  %v1183_v31 = vadd.f32 %v4451_v1, %v4328_v49  ;;  %s4582_s20 = sld [smem:[#allocation2 + $0x146]] }
 0x13e   :  { %v1187_v7 = vadd.f32 %v1186_v47, %v4331_v59  ;;  %v1488_v5 = vmul.f32 %v2340_v13, %v1487_v44  ;;  %v1703_v4 = vadd.f32 %v1702_v48, %v1699_v3  ;;  %v2587_v61 = vpop.eup %2586  ;;  %v1191_v22 = vadd.f32 %v1190_v0, %v4339_v8  ;;  %v2359_v59 = vld [vmem:[%s4902_s25 + $0x70] sm:$0xff]  ;;  %v2378_v3 = vld [vmem:[%s4902_s25 + $0x78] sm:$0xff]  ;;  %s4728_s25 = sld [smem:[#allocation2 + $0x162]] }
 0x13f   :  { %v1195_v25 = vadd.f32 %v1194_v6, %v4355_v38  ;;  %v1199_v37 = vadd.f32 %v1198_v60, %v4362_v30  ;;  %v1578_v49 = vsel %vm1569_vm12, %v2913_v56, %v1577_v33  ;;  %2592 = vrcp.f32 %v1437_v21 }
 0x140   :  { %vm1661_vm14 = vcmp.eq.f32.partialorder %v4481_v36, 1.0  ;;  %v1667_v8 = vsel %vm1662_vm13, %v2904_v43, %v1666_v55  ;;  %v1706_v38 = vadd.f32 %v1705_v20, %v1703_v4  ;;  %v1261_v30 = vmul.f32 %v1260_v51, %v1258_v15 }
 0x141   :  { %v5017_v60 = vstv %s4095_s18  ;;  %v5018_v19 = vstv %s4112_s17  ;;  %v5019_v47 = vstv %s4114_s11  ;;  %v5020_v42 = vstv %s5015_s26  ;;  %s4563_s18 = sld [smem:[#allocation2 + $0x106]]  ;;  %s4596_s26 = sld [smem:[#allocation2 + $0xe7]] }
 0x142   :  { %v1265_v6 = vmul.f32 %v5017_v60, %v1258_v15  ;;  %v1269_v1 = vmul.f32 %v5018_v19, %v1258_v15  ;;  %v1273_v0 = vmul.f32 %v5019_v47, %v1258_v15  ;;  %v1277_v57 = vmul.f32 %v5020_v42, %v1258_v15  ;;  %s4577_s17 = sld [smem:[#allocation2 + $0x126]] }
 0x143   :  { %2594 = vtanh.f32 %v1488_v5  ;;  %v1528_v39 = vadd.f32 1.0, %v2587_v61  ;;  %v1707_v43 = vsub.f32 0.0, %v1706_v38  ;;  %v2589_v2 = vpop.eup %2588  ;;  %v5021_v12 = vstv %s5016_s27  ;;  %s4579_s11 = sld [smem:[#allocation2 + $0x136]]  ;;  %s4598_s27 = sld [smem:[#allocation2 + $0xf7]] }
 0x144   :  { %v1281_v51 = vmul.f32 %v5021_v12, %v1258_v15  ;;  %v1579_v63 = vmul.f32 %v2359_v59, %v1578_v49  ;;  %vm1660_vm15 = vcmp.eq.f32.partialorder %v4481_v36, 0.0  ;;  %v1668_v27 = vsel %vm1661_vm14, %v2910_v53, %v1667_v8 }
 0x145   :  { %v5022_v62 = vstv %s4144_s12  ;;  %v5023_v46 = vstv %s4159_s4  ;;  %v1466_v14 = vstv %s4517_s1  ;;  %v1470_v52 = vstv %s4519_s10  ;;  %s4680_s1 = sld [smem:[#allocation2 + $0x148]]  ;;  %s4682_s10 = sld [smem:[#allocation2 + $0x14b]] }
 0x146   :  { %v1285_v35 = vmul.f32 %v5022_v62, %v1258_v15  ;;  %v1289_v50 = vmul.f32 %v5023_v46, %v1258_v15  ;;  %v1262_v34 = vadd.f32 %v1261_v30, %v1171_v17  ;;  %v1266_v48 = vadd.f32 %v1265_v6, %v1175_v32  ;;  %v2591_v53 = vpop.eup %2590  ;;  %s4718_s12 = sld [smem:[#allocation2 + $0x159]]  ;;  %s4720_s4 = sld [smem:[#allocation2 + $0x15a]] }
 0x147   :  { %v1399_v13 = vmax.f32 %v4454_v29, 0.0  ;;  %v1708_v44 = vmul.f32 1.442695, %v1707_v43  ;;  %v1270_v21 = vadd.f32 %v1269_v1, %v1179_v40  ;;  %v1349_v33 = vmul.f32 %v2589_v2, %v1308_v10 }
 0x148   :  { %2596 = vrcp.f32 %v1528_v39  ;;  %v1669_v29 = vsel %vm1660_vm15, %v2913_v56, %v1668_v27  ;;  %v1274_v17 = vadd.f32 %v1273_v0, %v1183_v31  ;;  %v1278_v32 = vadd.f32 %v1277_v57, %v1187_v7 }
 0x149   :  { %v1282_v15 = vadd.f32 %v1281_v51, %v1191_v22  ;;  %2598 = vtanh.f32 %v1579_v63  ;;  %v1286_v16 = vadd.f32 %v1285_v35, %v1195_v25  ;;  %v1290_v10 = vadd.f32 %v1289_v50, %v1199_v37  ;;  %v2593_v31 = vpop.eup %2592 }
 0x14a   :  { %v1533_v40 = vstv %s4538_s13  ;;  %v1537_v55 = vstv %s4540_s0  ;;  %v1541_v56 = vstv %s4557_s6  ;;  %v1619_v36 = vadd.f32 1.0, %v2591_v53  ;;  %s4684_s13 = sld [smem:[#allocation2 + $0x14c]]  ;;  %s4699_s0 = sld [smem:[#allocation2 + $0x14d]] }
 0x14b   :  { %v1670_v20 = vmul.f32 %v2378_v3, %v1669_v29  ;;  %2600 = vpow2.f32 %v1708_v44  ;;  %v1352_v7 = vmul.f32 %v1351_v11, %v1349_v33  ;;  %v5027_v5 = vstv %s4200_s8  ;;  %s4621_s8 = sld [smem:[#allocation2 + $0x137]]  ;;  %s4701_s6 = sld [smem:[#allocation2 + $0x14e]] }
 0x14c   :  { %v1356_v4 = vmul.f32 %v5027_v5, %v1349_v33  ;;  %v1360_v61 = vmul.f32 %v1359_v45, %v1349_v33  ;;  %v1364_v22 = vmul.f32 %v1363_v41, %v1349_v33  ;;  %v1368_v25 = vmul.f32 %v1367_v9, %v1349_v33 }
 0x14d   :  { %v1372_v37 = vmul.f32 %v1371_v24, %v1349_v33  ;;  %v1376_v49 = vmul.f32 %v1375_v18, %v1349_v33  ;;  %2602 = vrcp.f32 %v1619_v36  ;;  %v2595_v11 = vpop.eup %2594  ;;  %v1380_v45 = vmul.f32 %v1379_v26, %v1349_v33 }
 0x14e   :  { %v1545_v41 = vstv %s4563_s18  ;;  %v1549_v59 = vstv %s4565_s21  ;;  %v1553_v8 = vstv %s4577_s17  ;;  %v1440_v9 = vmul.f32 %v2593_v31, %v1399_v13  ;;  %s4647_s18 = sld [smem:[#allocation2 + $0xf8]]  ;;  %s4703_s21 = sld [smem:[#allocation2 + $0x14f]] }
 0x14f   :  { %v1557_v24 = vstv %s4579_s11  ;;  %v1561_v38 = vstv %s4582_s20  ;;  %2604 = vtanh.f32 %v1670_v20  ;;  %v1353_v18 = vadd.f32 %v1352_v7, %v1262_v34  ;;  %s4705_s17 = sld [smem:[#allocation2 + $0x150]]  ;;  %s4711_s11 = sld [smem:[#allocation2 + $0x151]] }
 0x150   :  { %v1357_v30 = vadd.f32 %v1356_v4, %v1266_v48  ;;  %v1361_v60 = vadd.f32 %v1360_v61, %v1270_v21  ;;  %v1365_v26 = vadd.f32 %v1364_v22, %v1274_v17  ;;  %v1369_v6 = vadd.f32 %v1368_v25, %v1278_v32  ;;  %s4713_s20 = sld [smem:[#allocation2 + $0x152]] }
 0x151   :  { %v1373_v19 = vadd.f32 %v1372_v37, %v1282_v15  ;;  %v1377_v1 = vadd.f32 %v1376_v49, %v1286_v16  ;;  %v1490_v47 = vmax.f32 %v2595_v11, 0.0  ;;  %v1381_v42 = vadd.f32 %v1380_v45, %v1290_v10 }
 0x152   :  { %v2597_v0 = vpop.eup %2596  ;;  %v1624_v57 = vstv %s4592_s28  ;;  %v1628_v39 = vstv %s4596_s26  ;;  %v1632_v43 = vstv %s4598_s27  ;;  %v1443_v12 = vmul.f32 %v1442_v58, %v1440_v9  ;;  %s4724_s28 = sld [smem:[#allocation2 + $0x15b]]  ;;  %s4730_s26 = sld [smem:[#allocation2 + $0x154]] }
 0x153   :  { %v2599_v2 = vpop.eup %2598  ;;  %v1447_v51 = vmul.f32 %v1446_v28, %v1440_v9  ;;  %v1451_v63 = vmul.f32 %v1450_v54, %v1440_v9  ;;  %v1455_v27 = vmul.f32 %v1454_v23, %v1440_v9  ;;  %v5028_v62 = vstv %s4382_s22  ;;  %s4670_s22 = sld [smem:[#allocation2 + $0x14a]]  ;;  %s4732_s27 = sld [smem:[#allocation2 + $0x15c]] }
 0x154   :  { %v1459_v35 = vmul.f32 %v5028_v62, %v1440_v9  ;;  %v5029_v46 = vstv %s4384_s30  ;;  %v1467_v34 = vmul.f32 %v1466_v14, %v1440_v9  ;;  %v1636_v58 = vstv %s4609_s5  ;;  %s4678_s30 = sld [smem:[#allocation2 + $0x138]]  ;;  %s4734_s5 = sld [smem:[#allocation2 + $0x163]] }
 0x155   :  { %v1463_v50 = vmul.f32 %v5029_v46, %v1440_v9  ;;  %v2601_v28 = vpop.eup %2600  ;;  %v1531_v54 = vmul.f32 %v2597_v0, %v1490_v47  ;;  %v1640_v48 = vstv %s4611_s3  ;;  %v1644_v23 = vstv %s4619_s29  ;;  %s4736_s3 = sld [smem:[#allocation2 + $0x169]]  ;;  %s4738_s29 = sld [smem:[#allocation2 + $0x155]] }
 0x156   :  { %v1648_v13 = vstv %s4621_s8  ;;  %v1471_v44 = vmul.f32 %v1470_v52, %v1440_v9  ;;  %v1581_v53 = vmax.f32 %v2599_v2, 0.0  ;;  %v1652_v21 = vstv %s4628_s9  ;;  %s4740_s8 = sld [smem:[#allocation2 + $0x156]]  ;;  %s4744_s9 = sld [smem:[#allocation2 + $0x157]] }
 0x157   :  { %v1710_v33 = vadd.f32 1.0, %v2601_v28  ;;  %v2603_v3 = vpop.eup %2602  ;;  %v1444_v14 = vadd.f32 %v1443_v12, %v1353_v18  ;;  %v1448_v29 = vadd.f32 %v1447_v51, %v1357_v30  ;;  %v1452_v17 = vadd.f32 %v1451_v63, %v1361_v60 }
 0x158   :  { %v1456_v32 = vadd.f32 %v1455_v27, %v1365_v26  ;;  %v1460_v15 = vadd.f32 %v1459_v35, %v1369_v6  ;;  %v1464_v16 = vadd.f32 %v1463_v50, %v1373_v19  ;;  %v1468_v10 = vadd.f32 %v1467_v34, %v1377_v1 }
 0x159   :  { %2606 = vrcp.f32 %v1710_v33  ;;  %v2605_v52 = vpop.eup %2604  ;;  %v1534_v36 = vmul.f32 %v1533_v40, %v1531_v54  ;;  %v1538_v20 = vmul.f32 %v1537_v55, %v1531_v54  ;;  %v1542_v31 = vmul.f32 %v1541_v56, %v1531_v54 }
 0x15a   :  { %v1546_v7 = vmul.f32 %v1545_v41, %v1531_v54  ;;  %v1550_v5 = vmul.f32 %v1549_v59, %v1531_v54  ;;  %v1554_v4 = vmul.f32 %v1553_v8, %v1531_v54  ;;  %v1558_v61 = vmul.f32 %v1557_v24, %v1531_v54 }
 0x15b   :  { %v1622_v22 = vmul.f32 %v2603_v3, %v1581_v53  ;;  %v1472_v40 = vadd.f32 %v1471_v44, %v1381_v42  ;;  %v1562_v55 = vmul.f32 %v1561_v38, %v1531_v54  ;;  %v1715_v56 = vstv %s4635_s19  ;;  %s4746_s19 = sld [smem:[#allocation2 + $0x158]] }
 0x15c   :  { %v1719_v25 = vstv %s4645_s15  ;;  %v1672_v37 = vmax.f32 %v2605_v52, 0.0  ;;  %v1723_v49 = vstv %s4647_s18  ;;  %v1727_v11 = vstv %s4656_s14  ;;  %s4748_s15 = sld [smem:[#allocation2 + $0x15d]]  ;;  %s4750_s18 = sld [smem:[#allocation2 + $0x164]] }
 0x15d   :  { %v1731_v45 = vstv %s4658_s16  ;;  %v1535_v41 = vadd.f32 %v1534_v36, %v1444_v14  ;;  %v1539_v59 = vadd.f32 %v1538_v20, %v1448_v29  ;;  %v1543_v8 = vadd.f32 %v1542_v31, %v1452_v17  ;;  %s4753_s14 = sld [smem:[#allocation2 + $0x15e]]  ;;  %s4755_s16 = sld [smem:[#allocation2 + $0x15f]] }
 0x15e   :  { %v1547_v9 = vadd.f32 %v1546_v7, %v1456_v32  ;;  %v1551_v24 = vadd.f32 %v1550_v5, %v1460_v15  ;;  %v1555_v18 = vadd.f32 %v1554_v4, %v1464_v16  ;;  %v1559_v30 = vadd.f32 %v1558_v61, %v1468_v10 }
 0x15f   :  { %v1625_v38 = vmul.f32 %v1624_v57, %v1622_v22  ;;  %v1563_v60 = vadd.f32 %v1562_v55, %v1472_v40  ;;  %v1629_v26 = vmul.f32 %v1628_v39, %v1622_v22  ;;  %v1633_v6 = vmul.f32 %v1632_v43, %v1622_v22 }
 0x160   :  { %v1637_v19 = vmul.f32 %v1636_v58, %v1622_v22  ;;  %v1641_v1 = vmul.f32 %v1640_v48, %v1622_v22  ;;  %v1645_v47 = vmul.f32 %v1644_v23, %v1622_v22  ;;  %v1649_v0 = vmul.f32 %v1648_v13, %v1622_v22 }
 0x161   :  { %v1653_v42 = vmul.f32 %v1652_v21, %v1622_v22  ;;  %v1735_v57 = vstv %s4668_s7  ;;  %v1739_v39 = vstv %s4678_s30  ;;  %v1743_v2 = vstv %s4680_s1  ;;  %s4759_s7 = sld [smem:[#allocation2 + $0x16a]]  ;;  %s4764_s30 = sld [smem:[#allocation2 + $0x166]] }
 0x162   :  { %v1747_v43 = vstv %s4666_s24  ;;  %v1626_v51 = vadd.f32 %v1625_v38, %v1535_v41  ;;  %v1751_v63 = vstv %s4670_s22  ;;  %v1755_v27 = vstv %s4682_s10  ;;  %s4757_s24 = sld [smem:[#allocation2 + $0x160]]  ;;  %s4762_s22 = sld [smem:[#allocation2 + $0x165]] }
 0x163   :  { %v2607_v12 = vpop.eup %2606  ;;  %v1759_v62 = vstv %s4684_s13  ;;  %v1630_v35 = vadd.f32 %v1629_v26, %v1539_v59  ;;  %v1634_v46 = vadd.f32 %v1633_v6, %v1543_v8  ;;  %v1638_v50 = vadd.f32 %v1637_v19, %v1547_v9  ;;  %s4766_s1 = sld [smem:[#allocation2 + $0x167]]  ;;  %s4768_s10 = sld [smem:[#allocation2 + $0x168]] }
 0x164   :  { %v1713_v34 = vmul.f32 %v2607_v12, %v1672_v37  ;;  %v1642_v58 = vadd.f32 %v1641_v1, %v1551_v24  ;;  %v1646_v28 = vadd.f32 %v1645_v47, %v1555_v18  ;;  %v1650_v54 = vadd.f32 %v1649_v0, %v1559_v30  ;;  %s4773_s13 = sld [smem:[#allocation2 + $0x16b]] }
 0x165   :  { %v1654_v48 = vadd.f32 %v1653_v42, %v1563_v60  ;;  %v1763_v52 = vstv %s4699_s0  ;;  %v1767_v36 = vstv %s4701_s6  ;;  %v1771_v61 = vstv %s4703_s21  ;;  %s4777_s0 = sld [smem:[#allocation2 + $0x16c]]  ;;  %s4782_s6 = sld [smem:[#allocation2 + $0x16d]] }
 0x166   :  { %v1716_v23 = vmul.f32 %v1715_v56, %v1713_v34  ;;  %v1720_v13 = vmul.f32 %v1719_v25, %v1713_v34  ;;  %v1724_v44 = vmul.f32 %v1723_v49, %v1713_v34  ;;  %v1728_v53 = vmul.f32 %v1727_v11, %v1713_v34  ;;  %s4798_s21 = sld [smem:[#allocation2 + $0x16e]] }
 0x167   :  { %v1732_v21 = vmul.f32 %v1731_v45, %v1713_v34  ;;  %v1736_v33 = vmul.f32 %v1735_v57, %v1713_v34  ;;  %v1740_v3 = vmul.f32 %v1739_v39, %v1713_v34  ;;  %v1744_v14 = vmul.f32 %v1743_v2, %v1713_v34 }
 0x168   :  { %v1717_v29 = vadd.f32 %v1716_v23, %v1626_v51  ;;  %v1721_v17 = vadd.f32 %v1720_v13, %v1630_v35  ;;  %v1725_v32 = vadd.f32 %v1724_v44, %v1634_v46  ;;  %v1729_v15 = vadd.f32 %v1728_v53, %v1638_v50 }
 0x169   :  { %v1733_v16 = vadd.f32 %v1732_v21, %v1642_v58  ;;  %v1737_v10 = vadd.f32 %v1736_v33, %v1646_v28  ;;  %v1741_v20 = vadd.f32 %v1740_v3, %v1650_v54  ;;  %v1745_v22 = vadd.f32 %v1744_v14, %v1654_v48 }
 0x16a   :  { %v1748_v31 = vadd.f32 %v1747_v43, %v1717_v29  ;;  %v1752_v7 = vadd.f32 %v1751_v63, %v1721_v17  ;;  %v1756_v5 = vadd.f32 %v1755_v27, %v1725_v32  ;;  %v1760_v4 = vadd.f32 %v1759_v62, %v1729_v15 }
 0x16b   :  { %v1764_v40 = vadd.f32 %v1763_v52, %v1733_v16  ;;  %v1768_v55 = vadd.f32 %v1767_v36, %v1737_v10  ;;  %v1775_v56 = vstv %s4705_s17  ;;  %v1772_v25 = vadd.f32 %v1771_v61, %v1741_v20  ;;  %s4807_s17 = sld [smem:[#allocation2 + $0x171]] }
 0x16c   :  { %2608 = vtanh.f32 %v1748_v31  ;;  %v1779_v37 = vstv %s4711_s11  ;;  %v1782_v49 = vstv %s4713_s20  ;;  %v1786_v11 = vstv %s4722_s23  ;;  %s4809_s11 = sld [smem:[#allocation2 + $0x16f]]  ;;  %s4811_s20 = sld [smem:[#allocation2 + $0x172]] }
 0x16d   :  { %2610 = vtanh.f32 %v1752_v7  ;;  %v1776_v45 = vadd.f32 %v1775_v56, %v1745_v22  ;;  %v1790_v41 = vstv %s4730_s26  ;;  %v1794_v59 = vstv %s4738_s29  ;;  %s2440_s23 = sld [smem:[#allocation2 + $0x174]]  ;;  %s2444_s26 = sld [smem:[#allocation2 + $0x178]] }
 0x16e   :  { %2612 = vtanh.f32 %v1756_v5  ;;  %v1798_v8 = vstv %s4740_s8  ;;  %v1802_v9 = vstv %s4744_s9  ;;  %v1806_v24 = vstv %s4746_s19  ;;  %s2453_s29 = sld [smem:[#allocation2 + $0x17f]]  ;;  %s2456_s8 = sld [smem:[#allocation2 + $0x181]] }
 0x16f   :  { %2614 = vtanh.f32 %v1760_v4  ;;  %v1814_v18 = vstv %s4718_s12  ;;  %v1817_v30 = vstv %s4720_s4  ;;  %v1821_v38 = vstv %s4724_s28  ;;  %s4813_s12 = sld [smem:[#allocation2 + $0x173]]  ;;  %s4816_s4 = sld [smem:[#allocation2 + $0x170]] }
 0x170   :  { %2616 = vtanh.f32 %v1764_v40  ;;  %v1825_v60 = vstv %s4732_s27  ;;  %v1829_v26 = vstv %s4748_s15  ;;  %v1833_v6 = vstv %s4753_s14  ;;  %s2441_s28 = sld [smem:[#allocation2 + $0x175]]  ;;  %s2445_s27 = sld [smem:[#allocation2 + $0x179]] }
 0x171   :  { %2618 = vtanh.f32 %v1768_v55  ;;  %v1837_v19 = vstv %s4755_s16  ;;  %v1841_v1 = vstv %s4757_s24  ;;  %v1849_v47 = vstv %s4726_s2  ;;  %s2442_s2 = sld [smem:[#allocation2 + $0x176]]  ;;  %s2446_s9 = sld [smem:[#allocation2 + $0x17a]] }
 0x172   :  { %2620 = vtanh.f32 %v1772_v25  ;;  %v1852_v0 = vstv %s4728_s25  ;;  %v1856_v42 = vstv %s4734_s5  ;;  %v1860_v57 = vstv %s4750_s18  ;;  %s2443_s25 = sld [smem:[#allocation2 + $0x177]]  ;;  %s2447_s5 = sld [smem:[#allocation2 + $0x17b]] }
 0x173   :  { %2622 = vtanh.f32 %v1776_v45  ;;  %v1864_v39 = vstv %s4762_s22  ;;  %v1868_v2 = vstv %s4764_s30  ;;  %v1872_v12 = vstv %s4766_s1  ;;  %s2449_s19 = sld [smem:[#allocation2 + $0x17c]]  ;;  %s2452_s15 = sld [smem:[#allocation2 + $0x17e]] }
 0x174   :  { %v1876_v51 = vstv %s4768_s10  ;;  %v1884_v63 = vstv %s4736_s3  ;;  %v1887_v27 = vstv %s4759_s7  ;;  %v1891_v34 = vstv %s4773_s13  ;;  %s2450_s3 = sld [smem:[#allocation2 + $0x17d]]  ;;  %s2455_s18 = sld [smem:[#allocation2 + $0x180]] }
 0x175   :  { %v1895_v23 = vstv %s4777_s0  ;;  %v1899_v33 = vstv %s4782_s6  ;;  %v1903_v55 = vstv %s4798_s21  ;;  %s2448_s14 = sld [smem:[#allocation2 + $0x182]]  ;;  %s2451_s16 = sld [smem:[#allocation2 + $0x183]] }
 0x176   :  { %v2609_v43 = vpop.eup %2608  ;;  %s2454_s24 = sld [smem:[#allocation2 + $0x184]]  ;;  %s2457_s7 = sld [smem:[#allocation2 + $0x185]] }
 0x177   :  { %v2611_v62 = vpop.eup %2610  ;;  %v1780_v35 = vmul.f32 %v2609_v43, %v1779_v37  ;;  %v1815_v46 = vmul.f32 %v2609_v43, %v1814_v18  ;;  %v1850_v50 = vmul.f32 %v2609_v43, %v1849_v47  ;;  %v1885_v52 = vmul.f32 %v2609_v43, %v1884_v63  ;;  %s5030_s1 = sld [smem:[#allocation34_spill]]  ;;  %s2459_s13 = sld [smem:[#allocation2 + $0x187]] }
 0x178   :  { %v2613_v58 = vpop.eup %2612  ;;  %v1783_v28 = vmul.f32 %v2611_v62, %v1782_v49  ;;  %v1818_v54 = vmul.f32 %v2611_v62, %v1817_v30  ;;  %v1853_v48 = vmul.f32 %v2611_v62, %v1852_v0  ;;  %v1888_v36 = vmul.f32 %v2611_v62, %v1887_v27  ;;  %s2458_s10 = sld [smem:[#allocation2 + $0x186]]  ;;  %s2460_s0 = sld [smem:[#allocation2 + $0x188]] }
 0x179   :  { %v2615_v13 = vpop.eup %2614  ;;  %v1787_v44 = vmul.f32 %v2613_v58, %v1786_v11  ;;  %v1822_v53 = vmul.f32 %v2613_v58, %v1821_v38  ;;  %v1857_v21 = vmul.f32 %v2613_v58, %v1856_v42  ;;  %v1892_v40 = vmul.f32 %v2613_v58, %v1891_v34  ;;  %s2461_s6 = sld [smem:[#allocation2 + $0x189]]  ;;  %s2462_s21 = sld [smem:[#allocation2 + $0x18a]] }
 0x17a   :  { %v2617_v3 = vpop.eup %2616  ;;  %v1784_v14 = vadd.f32 %v1783_v28, %v1780_v35  ;;  %v1791_v29 = vmul.f32 %v2615_v13, %v1790_v41  ;;  %v1819_v17 = vadd.f32 %v1818_v54, %v1815_v46  ;;  %v1826_v32 = vmul.f32 %v2615_v13, %v1825_v60 }
 0x17b   :  { %v2619_v15 = vpop.eup %2618  ;;  %v1854_v16 = vadd.f32 %v1853_v48, %v1850_v50  ;;  %v1861_v10 = vmul.f32 %v2615_v13, %v1860_v57  ;;  %v1795_v7 = vmul.f32 %v2617_v3, %v1794_v59  ;;  %v1830_v4 = vmul.f32 %v2617_v3, %v1829_v26 }
 0x17c   :  { %v2621_v20 = vpop.eup %2620  ;;  %v1788_v31 = vadd.f32 %v1787_v44, %v1784_v14  ;;  %v1823_v5 = vadd.f32 %v1822_v53, %v1819_v17  ;;  %v1865_v22 = vmul.f32 %v2617_v3, %v1864_v39  ;;  %v1799_v37 = vmul.f32 %v2619_v15, %v1798_v8 }
 0x17d   :  { %v1858_v61 = vadd.f32 %v1857_v21, %v1854_v16  ;;  %v2623_v56 = vpop.eup %2622  ;;  %v1834_v11 = vmul.f32 %v2619_v15, %v1833_v6  ;;  %v1803_v45 = vmul.f32 %v2621_v20, %v1802_v9  ;;  %v1838_v41 = vmul.f32 %v2621_v20, %v1837_v19 }
 0x17e   :  { %v1792_v25 = vadd.f32 %v1791_v29, %v1788_v31  ;;  %v1827_v49 = vadd.f32 %v1826_v32, %v1823_v5  ;;  %v1869_v18 = vmul.f32 %v2619_v15, %v1868_v2  ;;  %v1889_v60 = vadd.f32 %v1888_v36, %v1885_v52 }
 0x17f   :  { %v1862_v59 = vadd.f32 %v1861_v10, %v1858_v61  ;;  %v1896_v26 = vmul.f32 %v2615_v13, %v1895_v23  ;;  %v1807_v47 = vmul.f32 %v2623_v56, %v1806_v24  ;;  %v1842_v0 = vmul.f32 %v2623_v56, %v1841_v1 }
 0x180   :  { %v1796_v30 = vadd.f32 %v1795_v7, %v1792_v25  ;;  %v1831_v38 = vadd.f32 %v1830_v4, %v1827_v49  ;;  %v1873_v42 = vmul.f32 %v2621_v20, %v1872_v12  ;;  %v1893_v19 = vadd.f32 %v1892_v40, %v1889_v60 }
 0x181   :  { %v1866_v8 = vadd.f32 %v1865_v22, %v1862_v59  ;;  %v1900_v57 = vmul.f32 %v2617_v3, %v1899_v33  ;;  %v1810_v39 = vstv %s4807_s17  ;;  %v1877_v43 = vmul.f32 %v2623_v56, %v1876_v51 }
 0x182   :  { %v1800_v6 = vadd.f32 %v1799_v37, %v1796_v30  ;;  %v1835_v9 = vadd.f32 %v1834_v11, %v1831_v38  ;;  %v1907_v63 = vstv %s4809_s11  ;;  %v1897_v24 = vadd.f32 %v1896_v26, %v1893_v19 }
 0x183   :  { %v1870_v2 = vadd.f32 %v1869_v18, %v1866_v8  ;;  %v1904_v35 = vmul.f32 %v2619_v15, %v1903_v55  ;;  %v1845_v1 = vstv %s4811_s20  ;;  %v1880_v50 = vstv %s4813_s12  ;;  %s5031_s20 = sld [smem:[#allocation35_spill]] }
 0x184   :  { %v1804_v27 = vadd.f32 %v1803_v45, %v1800_v6  ;;  %v1839_v62 = vadd.f32 %v1838_v41, %v1835_v9  ;;  %v1911_v12 = vstv %s4816_s4  ;;  %v1901_v28 = vadd.f32 %v1900_v57, %v1897_v24 }
 0x185   :  { %v1874_v46 = vadd.f32 %v1873_v42, %v1870_v2  ;;  %v1908_v54 = vmul.f32 %v2621_v20, %v1907_v63  ;;  %v1912_v53 = vmul.f32 %v2623_v56, %v1911_v12  ;;  %v1915_v33 = vstv %s2440_s23  ;;  %v2042_v56 = vld [vmem:[%s5030_s1 + $0x10] sm:$0xff] }
 0x186   :  { %v1808_v34 = vadd.f32 %v1807_v47, %v1804_v27  ;;  %v1843_v58 = vadd.f32 %v1842_v0, %v1839_v62  ;;  %v1905_v44 = vadd.f32 %v1904_v35, %v1901_v28  ;;  %v1919_v29 = vstv %s2441_s28 }
 0x187   :  { %v1878_v48 = vadd.f32 %v1877_v43, %v1874_v46  ;;  %v1922_v17 = vstv %s2442_s2  ;;  %v1926_v15 = vstv %s2443_s25  ;;  %v1930_v7 = vstv %s2444_s26 }
 0x188   :  { %v1811_v23 = vadd.f32 %v1810_v39, %v1808_v34  ;;  %v1846_v13 = vadd.f32 %v1845_v1, %v1843_v58  ;;  %v1909_v21 = vadd.f32 %v1908_v54, %v1905_v44  ;;  %v1934_v22 = vstv %s2445_s27 }
 0x189   :  { %v1881_v51 = vadd.f32 %v1880_v50, %v1878_v48  ;;  %v1941_v25 = vstv %s2447_s5  ;;  %v1952_v37 = vstv %s2450_s3  ;;  %v1963_v49 = vstv %s2453_s29 }
 0x18a   :  { %2624 = vtanh.f32 %v1811_v23  ;;  %v1913_v3 = vadd.f32 %v1912_v53, %v1909_v21  ;;  %v1974_v11 = vstv %s2456_s8  ;;  %v1938_v45 = vstv %s2446_s9 }
 0x18b   :  { %2626 = vtanh.f32 %v1846_v13  ;;  %v1949_v41 = vstv %s2449_s19  ;;  %v1960_v59 = vstv %s2452_s15  ;;  %v1971_v18 = vstv %s2455_s18 }
 0x18c   :  { %2628 = vtanh.f32 %v1881_v51  ;;  %v1916_v14 = vadd.f32 %v1915_v33, %v1913_v3  ;;  %v1942_v30 = vmul.f32 %v2042_v56, %v1941_v25  ;;  %v1953_v38 = vmul.f32 %v2042_v56, %v1952_v37 }
 0x18d   :  { %v1964_v60 = vmul.f32 %v2042_v56, %v1963_v49  ;;  %v1975_v26 = vmul.f32 %v2042_v56, %v1974_v11  ;;  %v1945_v9 = vstv %s2448_s14  ;;  %v1956_v19 = vstv %s2451_s16 }
 0x18e   :  { %2630 = vtanh.f32 %v1916_v14  ;;  %v1967_v57 = vstv %s2454_s24  ;;  %v1978_v39 = vstv %s2457_s7  ;;  %v1982_v46 = vstv %s2458_s10 }
 0x18f   :  { %v1985_v50 = vstv %s2459_s13  ;;  %v1989_v34 = vstv %s2460_s0  ;;  %v1993_v54 = vstv %s2461_s6  ;;  %v1997_v33 = vstv %s2462_s21 }
 0x194   :  { %v2625_v32 = vpop.eup %2624 }
 0x195   :  { %v2627_v16 = vpop.eup %2626  ;;  %v1920_v10 = vmul.f32 %v2625_v32, %v1919_v29 }
 0x196   :  { %v2629_v52 = vpop.eup %2628  ;;  %v1923_v36 = vmul.f32 %v2627_v16, %v1922_v17 }
 0x197   :  { %v1927_v20 = vmul.f32 %v2629_v52, %v1926_v15 }
 0x198   :  { %v1924_v31 = vadd.f32 %v1923_v36, %v1920_v10  ;;  %v2631_v5 = vpop.eup %2630 }
 0x199   :  { %v1931_v61 = vmul.f32 %v2631_v5, %v1930_v7 }
 0x19a   :  { %v1928_v4 = vadd.f32 %v1927_v20, %v1924_v31 }
 0x19c   :  { %v1932_v40 = vadd.f32 %v1931_v61, %v1928_v4 }
 0x19e   :  { %v1935_v55 = vadd.f32 %v1934_v22, %v1932_v40 }
 0x1a0   :  { %2632 = vtanh.f32 %v1935_v55 }
 0x1aa   :  { %v2633_v47 = vpop.eup %2632 }
 0x1ab   :  { %v1939_v0 = vmul.f32 %v2633_v47, %v1938_v45  ;;  %v1950_v8 = vmul.f32 %v2633_v47, %v1949_v41  ;;  %v1961_v42 = vmul.f32 %v2633_v47, %v1960_v59  ;;  %v1972_v6 = vmul.f32 %v2633_v47, %v1971_v18 }
 0x1ad   :  { %v1943_v2 = vadd.f32 %v1942_v30, %v1939_v0  ;;  %v1954_v43 = vadd.f32 %v1953_v38, %v1950_v8  ;;  %v1965_v63 = vadd.f32 %v1964_v60, %v1961_v42  ;;  %v1976_v27 = vadd.f32 %v1975_v26, %v1972_v6 }
 0x1af   :  { %v1946_v62 = vadd.f32 %v1945_v9, %v1943_v2  ;;  %v1957_v24 = vadd.f32 %v1956_v19, %v1954_v43  ;;  %v1968_v35 = vadd.f32 %v1967_v57, %v1965_v63  ;;  %v1979_v1 = vadd.f32 %v1978_v39, %v1976_v27 }
 0x1b1   :  { %2634 = vtanh.f32 %v1946_v62 }
 0x1b2   :  { %2636 = vtanh.f32 %v1957_v24 }
 0x1b3   :  { %2638 = vtanh.f32 %v1968_v35 }
 0x1b4   :  { %2640 = vtanh.f32 %v1979_v1 }
 0x1bb   :  { %v2635_v12 = vpop.eup %2634 }
 0x1bc   :  { %v2637_v58 = vpop.eup %2636  ;;  %v1983_v28 = vmul.f32 %v2635_v12, %v1982_v46 }
 0x1bd   :  { %v2639_v48 = vpop.eup %2638  ;;  %v1986_v23 = vmul.f32 %v2637_v58, %v1985_v50 }
 0x1be   :  { %v2641_v13 = vpop.eup %2640  ;;  %v1990_v44 = vmul.f32 %v2639_v48, %v1989_v34 }
 0x1bf   :  { %v1987_v53 = vadd.f32 %v1986_v23, %v1983_v28  ;;  %v1994_v51 = vmul.f32 %v2641_v13, %v1993_v54 }
 0x1c1   :  { %v1991_v21 = vadd.f32 %v1990_v44, %v1987_v53 }
 0x1c3   :  { %v1995_v3 = vadd.f32 %v1994_v51, %v1991_v21 }
 0x1c5   :  { %v1998_v14 = vadd.f32 %v1997_v33, %v1995_v3 }
 0x1c7   :  { %1999 = vst [vmem:[%s5031_s20] sm:$0xff] %v1998_v14 }
 0x1c8   :  { %2004 = vsyncpa [#allocation3], 1 }

</bundles_post_ra>
